<compile_context>
chip_gen: v6e
topology: v6e:2x2x1
jax: 0.10.0
libtpu: 0.0.40
codegen_flags: <defaults>
</compile_context>

<pallas_src>
import jax
import jax.numpy as jnp
from jax.experimental import pallas as pl
from jax.experimental.pallas import tpu as pltpu

H1 = 128          # lstm1 hidden size
H2 = 64           # lstm2 hidden size (logical)
H2P = 128         # lstm2 hidden size padded to a full 128-lane vreg
G = 4 * H1        # 512 == 4*H2P as well


def _gates_to_state(gates, c, H):
    """PyTorch gate order i, f, g, o.  gates: (B, 4H) f32, c: (B, H) f32."""
    i_g = jax.nn.sigmoid(gates[:, 0 * H:1 * H])
    f_g = jax.nn.sigmoid(gates[:, 1 * H:2 * H])
    g_g = jnp.tanh(gates[:, 2 * H:3 * H])
    o_g = jax.nn.sigmoid(gates[:, 3 * H:4 * H])
    c_new = f_g * c + i_g * g_g
    h_new = o_g * jnp.tanh(c_new)
    return h_new, c_new


def stock_predictor_kernel(x_ref, vec_ref, whh1_ref, w2_ref, o_ref):
    """x_ref: (B, T) f32. vec_ref: (8, 512) f32 packed small vectors.
    whh1_ref: (H1, 4*H1) bf16. w2_ref: (H1+H2P, 4*H2P) bf16 = [wih2; whh2] stacked.
    o_ref: (B, 1) f32."""
    B, T = x_ref.shape

    # --- packed small-vector slab (one DMA); layout defined in make_params ---
    wih1 = vec_ref[0:1, :]                 # (1, 4*H1)   lstm1 input weight (Din=1)
    b1 = vec_ref[1:2, :]                   # (1, 4*H1)   lstm1 bias (b_ih + b_hh)
    b2 = vec_ref[2:3, :]                   # (1, 4*H2P)  lstm2 bias, gate-padded
    s1 = vec_ref[3:4, 0:H1]                # (1, H1)     BN1 scale (eval fold)
    sh1 = vec_ref[3:4, H1:2 * H1]          # (1, H1)     BN1 shift
    wfc = vec_ref[3:4, 2 * H1:3 * H1]      # (1, H2P)    BN2-scale * fc weight (pad = 0)
    cst = vec_ref[3:4, 3 * H1:3 * H1 + 1]  # (1, 1)      dot(BN2-shift, fc) + fc bias

    # --- layer-1 input projection for all T, hoisted off the recurrence chain.
    #     Din == 1 -> outer-product broadcast on the VPU, no MXU.
    xw1 = [x_ref[:, t:t + 1] * wih1 + b1 for t in range(T)]   # T x (B, 4*H1)

    # zero initial hidden / cell state (PyTorch default).  NOTE: padded-lane
    # invariant (h2/c2 lanes >= H2 stay exactly 0) requires zero init + zero
    # padded biases/weights.
    h1 = jnp.zeros((B, H1), jnp.float32)
    c1 = jnp.zeros((B, H1), jnp.float32)
    h2 = jnp.zeros((B, H2P), jnp.float32)
    c2 = jnp.zeros((B, H2P), jnp.float32)

    # T is small and static -> fully unrolled recurrence (static slices / LLO overlap)
    for t in range(T):
        # ---- LSTM1 step: bf16 MXU operands, f32 accumulation and state ----
        g1 = xw1[t] + jnp.dot(h1.astype(jnp.bfloat16), whh1_ref[...],
                              preferred_element_type=jnp.float32)
        h1, c1 = _gates_to_state(g1, c1, H1)
        a1 = jnp.maximum(h1, 0.0) * s1 + sh1          # ReLU + folded BN1 (eval), f32

        # ---- LSTM2 step: input projection + recurrence fused into one matmul ----
        k2 = jnp.concatenate([a1, h2], axis=-1).astype(jnp.bfloat16)   # (B, H1+H2P)
        g2 = b2 + jnp.dot(k2, w2_ref[...], preferred_element_type=jnp.float32)
        h2, c2 = _gates_to_state(g2, c2, H2P)

    # Head on last timestep only: ReLU, then (BN2 + Linear + bias) folded into
    # a VPU multiply + XLU lane reduction (no MXU weight push for N=1).
    a2 = jnp.maximum(h2, 0.0)                         # (B, H2P), padded lanes == 0
    o_ref[...] = jnp.sum(a2 * wfc, axis=-1, keepdims=True) + cst


def stock_predictor_pallas(x, params):
    B, T, Fin = x.shape
    assert Fin == 1, "StockPredictor uses input_size=1"
    x2d = x[..., 0]                                   # (B, T), lane-dense enough for tiny T
    Bp = max(8, ((B + 7) // 8) * 8)                   # pad batch to the f32 sublane tile
    if Bp != B:
        x2d = jnp.zeros((Bp, T), x2d.dtype).at[:B].set(x2d)

    out = pl.pallas_call(
        stock_predictor_kernel,
        out_shape=jax.ShapeDtypeStruct((Bp, 1), jnp.float32),
        in_specs=[pl.BlockSpec(memory_space=pltpu.MemorySpace.VMEM)] * 4,
        out_specs=pl.BlockSpec(memory_space=pltpu.MemorySpace.VMEM),
    )(x2d, params["vec"], params["whh1_bf16"], params["w2_bf16"])
    return out[:B]


@jax.jit
def stock_predictor_forward(x, params):
    # Dropout1/2/3 are identity in eval mode.
    # TODO(synk): training-mode dropout / batch-statistics BatchNorm not implemented.
    return stock_predictor_pallas(x, params)


# ----------------------------------------------------------------------------
# Parameter construction: deterministic PyTorch-like init, converted to the
# kernel layout (pre-transposed, gate blocks of LSTM2 zero-padded 64 -> 128,
# [wih2; whh2] K-stacked, big matrices in bf16, small vectors packed in a slab).
# ----------------------------------------------------------------------------
def make_params(key):
    def unif(k, shape, bound):
        return jax.random.uniform(k, shape, jnp.float32, -bound, bound)

    ks = jax.random.split(key, 10)
    eps = 1e-5
    k1 = 1.0 / float(H1) ** 0.5
    k2 = 1.0 / float(H2) ** 0.5

    # PyTorch-layout raw parameters
    w_ih1 = unif(ks[0], (4 * H1, 1), k1)
    w_hh1 = unif(ks[1], (4 * H1, H1), k1)
    b1 = unif(ks[2], (4 * H1,), k1) + unif(ks[3], (4 * H1,), k1)     # b_ih + b_hh
    w_ih2 = unif(ks[4], (4 * H2, H1), k2)
    w_hh2 = unif(ks[5], (4 * H2, H2), k2)
    b2 = unif(ks[6], (4 * H2,), k2) + unif(ks[7], (4 * H2,), k2)
    w_fc = unif(ks[8], (1, H2), k2)
    b_fc = unif(ks[9], (1,), k2)

    # BatchNorm1d eval mode (fresh init: gamma=1, beta=0, rmean=0, rvar=1) folded
    def bn_fold(H):
        gamma = jnp.ones((H,), jnp.float32)
        beta = jnp.zeros((H,), jnp.float32)
        rmean = jnp.zeros((H,), jnp.float32)
        rvar = jnp.ones((H,), jnp.float32)
        scale = gamma / jnp.sqrt(rvar + eps)
        shift = beta - rmean * scale
        return scale, shift

    s1, sh1 = bn_fold(H1)
    s2, sh2 = bn_fold(H2)

    def pad_gate_cols(w_t, h, hp):
        # (rows, 4*h) -> (rows, 4*hp): each gate block right-padded with zeros
        rows = w_t.shape[0]
        blocks = w_t.reshape(rows, 4, h)
        out = jnp.zeros((rows, 4, hp), jnp.float32).at[:, :, :h].set(blocks)
        return out.reshape(rows, 4 * hp)

    # LSTM1 recurrent weight, pre-transposed, bf16 MXU operand
    whh1_bf16 = w_hh1.T.astype(jnp.bfloat16)                         # (H1, 4*H1)

    # LSTM2: K-stack [wih2; whh2], gate columns padded 64->128, whh2 rows padded to 128
    wih2_t = pad_gate_cols(w_ih2.T, H2, H2P)                         # (H1, 4*H2P)
    whh2_t = jnp.zeros((H2P, 4 * H2P), jnp.float32).at[:H2, :].set(
        pad_gate_cols(w_hh2.T, H2, H2P))                             # (H2P, 4*H2P)
    w2_bf16 = jnp.concatenate([wih2_t, whh2_t], axis=0).astype(jnp.bfloat16)

    b2_p = pad_gate_cols(b2.reshape(1, 4 * H2), H2, H2P)             # (1, 4*H2P)

    # Fold BN2 + Linear(64->1) + bias: y = sum(relu(h2) * (s2*w_fc)) + (sh2.w_fc + b_fc)
    wfc_eff = jnp.zeros((H2P,), jnp.float32).at[:H2].set(s2 * w_fc[0])
    cst = jnp.sum(sh2 * w_fc[0]) + b_fc[0]

    # Pack all small vectors into a single (8, 512) f32 slab (one DMA, one VMEM tile row-group)
    vec = jnp.zeros((8, 4 * H1), jnp.float32)
    vec = vec.at[0, :].set(w_ih1.T[0])                # row 0: wih1 (Din=1)
    vec = vec.at[1, :].set(b1)                        # row 1: lstm1 bias
    vec = vec.at[2, :].set(b2_p[0])                   # row 2: lstm2 bias (gate-padded)
    vec = vec.at[3, 0:H1].set(s1)                     # row 3: [s1 | sh1 | wfc_eff | cst 0...]
    vec = vec.at[3, H1:2 * H1].set(sh1)
    vec = vec.at[3, 2 * H1:3 * H1].set(wfc_eff)
    vec = vec.at[3, 3 * H1].set(cst)

    return {"vec": vec, "whh1_bf16": whh1_bf16, "w2_bf16": w2_bf16}


if __name__ == "__main__":
    B, T, F = 2, 8, 1   # batch=2, seq=8, feature=1 (matches LSTM(input_size=1))
    key = jax.random.PRNGKey(0)
    k_x, k_p = jax.random.split(key)
    x = jax.random.normal(k_x, (B, T, F), dtype=jnp.float32)
    params = make_params(k_p)

    y = stock_predictor_forward(x, params)
    jax.block_until_ready(y)
    assert y.shape == (B, 1) and y.dtype == jnp.float32
    print("KERNEL_OK")
</pallas_src>

<mosaic_0001>
module attributes {stable_mosaic.version = 11 : i64} {
  func.func @stock_predictor_kernel(%arg0: memref<8x8xf32, #tpu.memory_space<vmem>>, %arg1: memref<8x512xf32, #tpu.memory_space<vmem>>, %arg2: memref<128x512xbf16, #tpu.memory_space<vmem>>, %arg3: memref<256x512xbf16, #tpu.memory_space<vmem>>, %arg4: memref<8x1xf32, #tpu.memory_space<vmem>>) attributes {dimension_semantics = [], scalar_prefetch = 0 : i64, scratch_operands = 0 : i64, tpu.core_type = #tpu.core_type<tc>} {
    %c0 = arith.constant 0 : index
    %c0_0 = arith.constant 0 : index
    %0 = vector.load %arg1[%c0, %c0_0] : memref<8x512xf32, #tpu.memory_space<vmem>>, vector<1x512xf32>
    %c1 = arith.constant 1 : index
    %c0_1 = arith.constant 0 : index
    %1 = vector.load %arg1[%c1, %c0_1] : memref<8x512xf32, #tpu.memory_space<vmem>>, vector<1x512xf32>
    %c2 = arith.constant 2 : index
    %c0_2 = arith.constant 0 : index
    %2 = vector.load %arg1[%c2, %c0_2] : memref<8x512xf32, #tpu.memory_space<vmem>>, vector<1x512xf32>
    %c3 = arith.constant 3 : index
    %c0_3 = arith.constant 0 : index
    %3 = vector.load %arg1[%c3, %c0_3] : memref<8x512xf32, #tpu.memory_space<vmem>>, vector<1x128xf32>
    %c3_4 = arith.constant 3 : index
    %c128 = arith.constant 128 : index
    %4 = vector.load %arg1[%c3_4, %c128] : memref<8x512xf32, #tpu.memory_space<vmem>>, vector<1x128xf32>
    %c3_5 = arith.constant 3 : index
    %c256 = arith.constant 256 : index
    %5 = vector.load %arg1[%c3_5, %c256] : memref<8x512xf32, #tpu.memory_space<vmem>>, vector<1x128xf32>
    %c3_6 = arith.constant 3 : index
    %c384 = arith.constant 384 : index
    %6 = vector.load %arg1[%c3_6, %c384] : memref<8x512xf32, #tpu.memory_space<vmem>>, vector<1x1xf32>
    %c0_7 = arith.constant 0 : index
    %c0_8 = arith.constant 0 : index
    %7 = vector.load %arg0[%c0_7, %c0_8] : memref<8x8xf32, #tpu.memory_space<vmem>>, vector<8x1xf32>
    %8 = vector.broadcast %7 : vector<8x1xf32> to vector<8x512xf32>
    %9 = vector.broadcast %0 : vector<1x512xf32> to vector<8x512xf32>
    %10 = arith.mulf %8, %9 : vector<8x512xf32>
    %11 = vector.broadcast %1 : vector<1x512xf32> to vector<8x512xf32>
    %12 = arith.addf %10, %11 : vector<8x512xf32>
    %c0_9 = arith.constant 0 : index
    %c1_10 = arith.constant 1 : index
    %13 = vector.load %arg0[%c0_9, %c1_10] : memref<8x8xf32, #tpu.memory_space<vmem>>, vector<8x1xf32>
    %14 = vector.broadcast %13 : vector<8x1xf32> to vector<8x512xf32>
    %15 = vector.broadcast %0 : vector<1x512xf32> to vector<8x512xf32>
    %16 = arith.mulf %14, %15 : vector<8x512xf32>
    %17 = vector.broadcast %1 : vector<1x512xf32> to vector<8x512xf32>
    %18 = arith.addf %16, %17 : vector<8x512xf32>
    %c0_11 = arith.constant 0 : index
    %c2_12 = arith.constant 2 : index
    %19 = vector.load %arg0[%c0_11, %c2_12] : memref<8x8xf32, #tpu.memory_space<vmem>>, vector<8x1xf32>
    %20 = vector.broadcast %19 : vector<8x1xf32> to vector<8x512xf32>
    %21 = vector.broadcast %0 : vector<1x512xf32> to vector<8x512xf32>
    %22 = arith.mulf %20, %21 : vector<8x512xf32>
    %23 = vector.broadcast %1 : vector<1x512xf32> to vector<8x512xf32>
    %24 = arith.addf %22, %23 : vector<8x512xf32>
    %c0_13 = arith.constant 0 : index
    %c3_14 = arith.constant 3 : index
    %25 = vector.load %arg0[%c0_13, %c3_14] : memref<8x8xf32, #tpu.memory_space<vmem>>, vector<8x1xf32>
    %26 = vector.broadcast %25 : vector<8x1xf32> to vector<8x512xf32>
    %27 = vector.broadcast %0 : vector<1x512xf32> to vector<8x512xf32>
    %28 = arith.mulf %26, %27 : vector<8x512xf32>
    %29 = vector.broadcast %1 : vector<1x512xf32> to vector<8x512xf32>
    %30 = arith.addf %28, %29 : vector<8x512xf32>
    %c0_15 = arith.constant 0 : index
    %c4 = arith.constant 4 : index
    %31 = vector.load %arg0[%c0_15, %c4] : memref<8x8xf32, #tpu.memory_space<vmem>>, vector<8x1xf32>
    %32 = vector.broadcast %31 : vector<8x1xf32> to vector<8x512xf32>
    %33 = vector.broadcast %0 : vector<1x512xf32> to vector<8x512xf32>
    %34 = arith.mulf %32, %33 : vector<8x512xf32>
    %35 = vector.broadcast %1 : vector<1x512xf32> to vector<8x512xf32>
    %36 = arith.addf %34, %35 : vector<8x512xf32>
    %c0_16 = arith.constant 0 : index
    %c5 = arith.constant 5 : index
    %37 = vector.load %arg0[%c0_16, %c5] : memref<8x8xf32, #tpu.memory_space<vmem>>, vector<8x1xf32>
    %38 = vector.broadcast %37 : vector<8x1xf32> to vector<8x512xf32>
    %39 = vector.broadcast %0 : vector<1x512xf32> to vector<8x512xf32>
    %40 = arith.mulf %38, %39 : vector<8x512xf32>
    %41 = vector.broadcast %1 : vector<1x512xf32> to vector<8x512xf32>
    %42 = arith.addf %40, %41 : vector<8x512xf32>
    %c0_17 = arith.constant 0 : index
    %c6 = arith.constant 6 : index
    %43 = vector.load %arg0[%c0_17, %c6] : memref<8x8xf32, #tpu.memory_space<vmem>>, vector<8x1xf32>
    %44 = vector.broadcast %43 : vector<8x1xf32> to vector<8x512xf32>
    %45 = vector.broadcast %0 : vector<1x512xf32> to vector<8x512xf32>
    %46 = arith.mulf %44, %45 : vector<8x512xf32>
    %47 = vector.broadcast %1 : vector<1x512xf32> to vector<8x512xf32>
    %48 = arith.addf %46, %47 : vector<8x512xf32>
    %c0_18 = arith.constant 0 : index
    %c7 = arith.constant 7 : index
    %49 = vector.load %arg0[%c0_18, %c7] : memref<8x8xf32, #tpu.memory_space<vmem>>, vector<8x1xf32>
    %50 = vector.broadcast %49 : vector<8x1xf32> to vector<8x512xf32>
    %51 = vector.broadcast %0 : vector<1x512xf32> to vector<8x512xf32>
    %52 = arith.mulf %50, %51 : vector<8x512xf32>
    %53 = vector.broadcast %1 : vector<1x512xf32> to vector<8x512xf32>
    %54 = arith.addf %52, %53 : vector<8x512xf32>
    %cst = arith.constant 0.000000e+00 : f32
    %55 = vector.broadcast %cst : f32 to vector<8x128xf32>
    %cst_19 = arith.constant 0.000000e+00 : f32
    %56 = vector.broadcast %cst_19 : f32 to vector<8x128xf32>
    %cst_20 = arith.constant 0.000000e+00 : f32
    %57 = vector.broadcast %cst_20 : f32 to vector<8x128xf32>
    %cst_21 = arith.constant 0.000000e+00 : f32
    %58 = vector.broadcast %cst_21 : f32 to vector<8x128xf32>
    %59 = arith.truncf %55 : vector<8x128xf32> to vector<8x128xbf16>
    %c0_22 = arith.constant 0 : index
    %c0_23 = arith.constant 0 : index
    %60 = vector.load %arg2[%c0_22, %c0_23] : memref<128x512xbf16, #tpu.memory_space<vmem>>, vector<128x512xbf16>
    %cst_24 = arith.constant dense<0.000000e+00> : vector<8x512xf32>
    %61 = tpu.matmul %59, %60, %cst_24 {dimension_numbers = #tpu.dot_dimension_numbers<[1], [0], [0], [1], [0, 0, 1, 1], [], []>} : vector<8x128xbf16>, vector<128x512xbf16>, vector<8x512xf32> -> vector<8x512xf32>
    %62 = arith.addf %12, %61 : vector<8x512xf32>
    %63 = vector.extract_strided_slice %62 {offsets = [0, 0], sizes = [8, 128], strides = [1, 1]} : vector<8x512xf32> to vector<8x128xf32>
    %64 = arith.negf %63 : vector<8x128xf32>
    %65 = math.exp %64 : vector<8x128xf32>
    %cst_25 = arith.constant 1.000000e+00 : f32
    %66 = vector.broadcast %cst_25 : f32 to vector<8x128xf32>
    %67 = arith.addf %66, %65 : vector<8x128xf32>
    %68 = arith.divf %66, %67 : vector<8x128xf32>
    %69 = vector.extract_strided_slice %62 {offsets = [0, 128], sizes = [8, 128], strides = [1, 1]} : vector<8x512xf32> to vector<8x128xf32>
    %70 = arith.negf %69 : vector<8x128xf32>
    %71 = math.exp %70 : vector<8x128xf32>
    %cst_26 = arith.constant 1.000000e+00 : f32
    %72 = vector.broadcast %cst_26 : f32 to vector<8x128xf32>
    %73 = arith.addf %72, %71 : vector<8x128xf32>
    %74 = arith.divf %72, %73 : vector<8x128xf32>
    %75 = vector.extract_strided_slice %62 {offsets = [0, 256], sizes = [8, 128], strides = [1, 1]} : vector<8x512xf32> to vector<8x128xf32>
    %76 = math.tanh %75 : vector<8x128xf32>
    %77 = vector.extract_strided_slice %62 {offsets = [0, 384], sizes = [8, 128], strides = [1, 1]} : vector<8x512xf32> to vector<8x128xf32>
    %78 = arith.negf %77 : vector<8x128xf32>
    %79 = math.exp %78 : vector<8x128xf32>
    %cst_27 = arith.constant 1.000000e+00 : f32
    %80 = vector.broadcast %cst_27 : f32 to vector<8x128xf32>
    %81 = arith.addf %80, %79 : vector<8x128xf32>
    %82 = arith.divf %80, %81 : vector<8x128xf32>
    %83 = arith.mulf %74, %56 : vector<8x128xf32>
    %84 = arith.mulf %68, %76 : vector<8x128xf32>
    %85 = arith.addf %83, %84 : vector<8x128xf32>
    %86 = math.tanh %85 : vector<8x128xf32>
    %87 = arith.mulf %82, %86 : vector<8x128xf32>
    %cst_28 = arith.constant 0.000000e+00 : f32
    %88 = vector.broadcast %cst_28 : f32 to vector<8x128xf32>
    %89 = arith.maximumf %87, %88 : vector<8x128xf32>
    %90 = vector.broadcast %3 : vector<1x128xf32> to vector<8x128xf32>
    %91 = arith.mulf %89, %90 : vector<8x128xf32>
    %92 = vector.broadcast %4 : vector<1x128xf32> to vector<8x128xf32>
    %93 = arith.addf %91, %92 : vector<8x128xf32>
    %94 = tpu.concatenate %93, %57 in 1 : vector<8x128xf32>, vector<8x128xf32> -> vector<8x256xf32>
    %95 = arith.truncf %94 : vector<8x256xf32> to vector<8x256xbf16>
    %c0_29 = arith.constant 0 : index
    %c0_30 = arith.constant 0 : index
    %96 = vector.load %arg3[%c0_29, %c0_30] : memref<256x512xbf16, #tpu.memory_space<vmem>>, vector<256x512xbf16>
    %cst_31 = arith.constant dense<0.000000e+00> : vector<8x512xf32>
    %97 = tpu.matmul %95, %96, %cst_31 {dimension_numbers = #tpu.dot_dimension_numbers<[1], [0], [0], [1], [0, 0, 1, 1], [], []>} : vector<8x256xbf16>, vector<256x512xbf16>, vector<8x512xf32> -> vector<8x512xf32>
    %98 = vector.broadcast %2 : vector<1x512xf32> to vector<8x512xf32>
    %99 = arith.addf %98, %97 : vector<8x512xf32>
    %100 = vector.extract_strided_slice %99 {offsets = [0, 0], sizes = [8, 128], strides = [1, 1]} : vector<8x512xf32> to vector<8x128xf32>
    %101 = arith.negf %100 : vector<8x128xf32>
    %102 = math.exp %101 : vector<8x128xf32>
    %cst_32 = arith.constant 1.000000e+00 : f32
    %103 = vector.broadcast %cst_32 : f32 to vector<8x128xf32>
    %104 = arith.addf %103, %102 : vector<8x128xf32>
    %105 = arith.divf %103, %104 : vector<8x128xf32>
    %106 = vector.extract_strided_slice %99 {offsets = [0, 128], sizes = [8, 128], strides = [1, 1]} : vector<8x512xf32> to vector<8x128xf32>
    %107 = arith.negf %106 : vector<8x128xf32>
    %108 = math.exp %107 : vector<8x128xf32>
    %cst_33 = arith.constant 1.000000e+00 : f32
    %109 = vector.broadcast %cst_33 : f32 to vector<8x128xf32>
    %110 = arith.addf %109, %108 : vector<8x128xf32>
    %111 = arith.divf %109, %110 : vector<8x128xf32>
    %112 = vector.extract_strided_slice %99 {offsets = [0, 256], sizes = [8, 128], strides = [1, 1]} : vector<8x512xf32> to vector<8x128xf32>
    %113 = math.tanh %112 : vector<8x128xf32>
    %114 = vector.extract_strided_slice %99 {offsets = [0, 384], sizes = [8, 128], strides = [1, 1]} : vector<8x512xf32> to vector<8x128xf32>
    %115 = arith.negf %114 : vector<8x128xf32>
    %116 = math.exp %115 : vector<8x128xf32>
    %cst_34 = arith.constant 1.000000e+00 : f32
    %117 = vector.broadcast %cst_34 : f32 to vector<8x128xf32>
    %118 = arith.addf %117, %116 : vector<8x128xf32>
    %119 = arith.divf %117, %118 : vector<8x128xf32>
    %120 = arith.mulf %111, %58 : vector<8x128xf32>
    %121 = arith.mulf %105, %113 : vector<8x128xf32>
    %122 = arith.addf %120, %121 : vector<8x128xf32>
    %123 = math.tanh %122 : vector<8x128xf32>
    %124 = arith.mulf %119, %123 : vector<8x128xf32>
    %125 = arith.truncf %87 : vector<8x128xf32> to vector<8x128xbf16>
    %c0_35 = arith.constant 0 : index
    %c0_36 = arith.constant 0 : index
    %126 = vector.load %arg2[%c0_35, %c0_36] : memref<128x512xbf16, #tpu.memory_space<vmem>>, vector<128x512xbf16>
    %cst_37 = arith.constant dense<0.000000e+00> : vector<8x512xf32>
    %127 = tpu.matmul %125, %126, %cst_37 {dimension_numbers = #tpu.dot_dimension_numbers<[1], [0], [0], [1], [0, 0, 1, 1], [], []>} : vector<8x128xbf16>, vector<128x512xbf16>, vector<8x512xf32> -> vector<8x512xf32>
    %128 = arith.addf %18, %127 : vector<8x512xf32>
    %129 = vector.extract_strided_slice %128 {offsets = [0, 0], sizes = [8, 128], strides = [1, 1]} : vector<8x512xf32> to vector<8x128xf32>
    %130 = arith.negf %129 : vector<8x128xf32>
    %131 = math.exp %130 : vector<8x128xf32>
    %cst_38 = arith.constant 1.000000e+00 : f32
    %132 = vector.broadcast %cst_38 : f32 to vector<8x128xf32>
    %133 = arith.addf %132, %131 : vector<8x128xf32>
    %134 = arith.divf %132, %133 : vector<8x128xf32>
    %135 = vector.extract_strided_slice %128 {offsets = [0, 128], sizes = [8, 128], strides = [1, 1]} : vector<8x512xf32> to vector<8x128xf32>
    %136 = arith.negf %135 : vector<8x128xf32>
    %137 = math.exp %136 : vector<8x128xf32>
    %cst_39 = arith.constant 1.000000e+00 : f32
    %138 = vector.broadcast %cst_39 : f32 to vector<8x128xf32>
    %139 = arith.addf %138, %137 : vector<8x128xf32>
    %140 = arith.divf %138, %139 : vector<8x128xf32>
    %141 = vector.extract_strided_slice %128 {offsets = [0, 256], sizes = [8, 128], strides = [1, 1]} : vector<8x512xf32> to vector<8x128xf32>
    %142 = math.tanh %141 : vector<8x128xf32>
    %143 = vector.extract_strided_slice %128 {offsets = [0, 384], sizes = [8, 128], strides = [1, 1]} : vector<8x512xf32> to vector<8x128xf32>
    %144 = arith.negf %143 : vector<8x128xf32>
    %145 = math.exp %144 : vector<8x128xf32>
    %cst_40 = arith.constant 1.000000e+00 : f32
    %146 = vector.broadcast %cst_40 : f32 to vector<8x128xf32>
    %147 = arith.addf %146, %145 : vector<8x128xf32>
    %148 = arith.divf %146, %147 : vector<8x128xf32>
    %149 = arith.mulf %140, %85 : vector<8x128xf32>
    %150 = arith.mulf %134, %142 : vector<8x128xf32>
    %151 = arith.addf %149, %150 : vector<8x128xf32>
    %152 = math.tanh %151 : vector<8x128xf32>
    %153 = arith.mulf %148, %152 : vector<8x128xf32>
    %cst_41 = arith.constant 0.000000e+00 : f32
    %154 = vector.broadcast %cst_41 : f32 to vector<8x128xf32>
    %155 = arith.maximumf %153, %154 : vector<8x128xf32>
    %156 = vector.broadcast %3 : vector<1x128xf32> to vector<8x128xf32>
    %157 = arith.mulf %155, %156 : vector<8x128xf32>
    %158 = vector.broadcast %4 : vector<1x128xf32> to vector<8x128xf32>
    %159 = arith.addf %157, %158 : vector<8x128xf32>
    %160 = tpu.concatenate %159, %124 in 1 : vector<8x128xf32>, vector<8x128xf32> -> vector<8x256xf32>
    %161 = arith.truncf %160 : vector<8x256xf32> to vector<8x256xbf16>
    %c0_42 = arith.constant 0 : index
    %c0_43 = arith.constant 0 : index
    %162 = vector.load %arg3[%c0_42, %c0_43] : memref<256x512xbf16, #tpu.memory_space<vmem>>, vector<256x512xbf16>
    %cst_44 = arith.constant dense<0.000000e+00> : vector<8x512xf32>
    %163 = tpu.matmul %161, %162, %cst_44 {dimension_numbers = #tpu.dot_dimension_numbers<[1], [0], [0], [1], [0, 0, 1, 1], [], []>} : vector<8x256xbf16>, vector<256x512xbf16>, vector<8x512xf32> -> vector<8x512xf32>
    %164 = vector.broadcast %2 : vector<1x512xf32> to vector<8x512xf32>
    %165 = arith.addf %164, %163 : vector<8x512xf32>
    %166 = vector.extract_strided_slice %165 {offsets = [0, 0], sizes = [8, 128], strides = [1, 1]} : vector<8x512xf32> to vector<8x128xf32>
    %167 = arith.negf %166 : vector<8x128xf32>
    %168 = math.exp %167 : vector<8x128xf32>
    %cst_45 = arith.constant 1.000000e+00 : f32
    %169 = vector.broadcast %cst_45 : f32 to vector<8x128xf32>
    %170 = arith.addf %169, %168 : vector<8x128xf32>
    %171 = arith.divf %169, %170 : vector<8x128xf32>
    %172 = vector.extract_strided_slice %165 {offsets = [0, 128], sizes = [8, 128], strides = [1, 1]} : vector<8x512xf32> to vector<8x128xf32>
    %173 = arith.negf %172 : vector<8x128xf32>
    %174 = math.exp %173 : vector<8x128xf32>
    %cst_46 = arith.constant 1.000000e+00 : f32
    %175 = vector.broadcast %cst_46 : f32 to vector<8x128xf32>
    %176 = arith.addf %175, %174 : vector<8x128xf32>
    %177 = arith.divf %175, %176 : vector<8x128xf32>
    %178 = vector.extract_strided_slice %165 {offsets = [0, 256], sizes = [8, 128], strides = [1, 1]} : vector<8x512xf32> to vector<8x128xf32>
    %179 = math.tanh %178 : vector<8x128xf32>
    %180 = vector.extract_strided_slice %165 {offsets = [0, 384], sizes = [8, 128], strides = [1, 1]} : vector<8x512xf32> to vector<8x128xf32>
    %181 = arith.negf %180 : vector<8x128xf32>
    %182 = math.exp %181 : vector<8x128xf32>
    %cst_47 = arith.constant 1.000000e+00 : f32
    %183 = vector.broadcast %cst_47 : f32 to vector<8x128xf32>
    %184 = arith.addf %183, %182 : vector<8x128xf32>
    %185 = arith.divf %183, %184 : vector<8x128xf32>
    %186 = arith.mulf %177, %122 : vector<8x128xf32>
    %187 = arith.mulf %171, %179 : vector<8x128xf32>
    %188 = arith.addf %186, %187 : vector<8x128xf32>
    %189 = math.tanh %188 : vector<8x128xf32>
    %190 = arith.mulf %185, %189 : vector<8x128xf32>
    %191 = arith.truncf %153 : vector<8x128xf32> to vector<8x128xbf16>
    %c0_48 = arith.constant 0 : index
    %c0_49 = arith.constant 0 : index
    %192 = vector.load %arg2[%c0_48, %c0_49] : memref<128x512xbf16, #tpu.memory_space<vmem>>, vector<128x512xbf16>
    %cst_50 = arith.constant dense<0.000000e+00> : vector<8x512xf32>
    %193 = tpu.matmul %191, %192, %cst_50 {dimension_numbers = #tpu.dot_dimension_numbers<[1], [0], [0], [1], [0, 0, 1, 1], [], []>} : vector<8x128xbf16>, vector<128x512xbf16>, vector<8x512xf32> -> vector<8x512xf32>
    %194 = arith.addf %24, %193 : vector<8x512xf32>
    %195 = vector.extract_strided_slice %194 {offsets = [0, 0], sizes = [8, 128], strides = [1, 1]} : vector<8x512xf32> to vector<8x128xf32>
    %196 = arith.negf %195 : vector<8x128xf32>
    %197 = math.exp %196 : vector<8x128xf32>
    %cst_51 = arith.constant 1.000000e+00 : f32
    %198 = vector.broadcast %cst_51 : f32 to vector<8x128xf32>
    %199 = arith.addf %198, %197 : vector<8x128xf32>
    %200 = arith.divf %198, %199 : vector<8x128xf32>
    %201 = vector.extract_strided_slice %194 {offsets = [0, 128], sizes = [8, 128], strides = [1, 1]} : vector<8x512xf32> to vector<8x128xf32>
    %202 = arith.negf %201 : vector<8x128xf32>
    %203 = math.exp %202 : vector<8x128xf32>
    %cst_52 = arith.constant 1.000000e+00 : f32
    %204 = vector.broadcast %cst_52 : f32 to vector<8x128xf32>
    %205 = arith.addf %204, %203 : vector<8x128xf32>
    %206 = arith.divf %204, %205 : vector<8x128xf32>
    %207 = vector.extract_strided_slice %194 {offsets = [0, 256], sizes = [8, 128], strides = [1, 1]} : vector<8x512xf32> to vector<8x128xf32>
    %208 = math.tanh %207 : vector<8x128xf32>
    %209 = vector.extract_strided_slice %194 {offsets = [0, 384], sizes = [8, 128], strides = [1, 1]} : vector<8x512xf32> to vector<8x128xf32>
    %210 = arith.negf %209 : vector<8x128xf32>
    %211 = math.exp %210 : vector<8x128xf32>
    %cst_53 = arith.constant 1.000000e+00 : f32
    %212 = vector.broadcast %cst_53 : f32 to vector<8x128xf32>
    %213 = arith.addf %212, %211 : vector<8x128xf32>
    %214 = arith.divf %212, %213 : vector<8x128xf32>
    %215 = arith.mulf %206, %151 : vector<8x128xf32>
    %216 = arith.mulf %200, %208 : vector<8x128xf32>
    %217 = arith.addf %215, %216 : vector<8x128xf32>
    %218 = math.tanh %217 : vector<8x128xf32>
    %219 = arith.mulf %214, %218 : vector<8x128xf32>
    %cst_54 = arith.constant 0.000000e+00 : f32
    %220 = vector.broadcast %cst_54 : f32 to vector<8x128xf32>
    %221 = arith.maximumf %219, %220 : vector<8x128xf32>
    %222 = vector.broadcast %3 : vector<1x128xf32> to vector<8x128xf32>
    %223 = arith.mulf %221, %222 : vector<8x128xf32>
    %224 = vector.broadcast %4 : vector<1x128xf32> to vector<8x128xf32>
    %225 = arith.addf %223, %224 : vector<8x128xf32>
    %226 = tpu.concatenate %225, %190 in 1 : vector<8x128xf32>, vector<8x128xf32> -> vector<8x256xf32>
    %227 = arith.truncf %226 : vector<8x256xf32> to vector<8x256xbf16>
    %c0_55 = arith.constant 0 : index
    %c0_56 = arith.constant 0 : index
    %228 = vector.load %arg3[%c0_55, %c0_56] : memref<256x512xbf16, #tpu.memory_space<vmem>>, vector<256x512xbf16>
    %cst_57 = arith.constant dense<0.000000e+00> : vector<8x512xf32>
    %229 = tpu.matmul %227, %228, %cst_57 {dimension_numbers = #tpu.dot_dimension_numbers<[1], [0], [0], [1], [0, 0, 1, 1], [], []>} : vector<8x256xbf16>, vector<256x512xbf16>, vector<8x512xf32> -> vector<8x512xf32>
    %230 = vector.broadcast %2 : vector<1x512xf32> to vector<8x512xf32>
    %231 = arith.addf %230, %229 : vector<8x512xf32>
    %232 = vector.extract_strided_slice %231 {offsets = [0, 0], sizes = [8, 128], strides = [1, 1]} : vector<8x512xf32> to vector<8x128xf32>
    %233 = arith.negf %232 : vector<8x128xf32>
    %234 = math.exp %233 : vector<8x128xf32>
    %cst_58 = arith.constant 1.000000e+00 : f32
    %235 = vector.broadcast %cst_58 : f32 to vector<8x128xf32>
    %236 = arith.addf %235, %234 : vector<8x128xf32>
    %237 = arith.divf %235, %236 : vector<8x128xf32>
    %238 = vector.extract_strided_slice %231 {offsets = [0, 128], sizes = [8, 128], strides = [1, 1]} : vector<8x512xf32> to vector<8x128xf32>
    %239 = arith.negf %238 : vector<8x128xf32>
    %240 = math.exp %239 : vector<8x128xf32>
    %cst_59 = arith.constant 1.000000e+00 : f32
    %241 = vector.broadcast %cst_59 : f32 to vector<8x128xf32>
    %242 = arith.addf %241, %240 : vector<8x128xf32>
    %243 = arith.divf %241, %242 : vector<8x128xf32>
    %244 = vector.extract_strided_slice %231 {offsets = [0, 256], sizes = [8, 128], strides = [1, 1]} : vector<8x512xf32> to vector<8x128xf32>
    %245 = math.tanh %244 : vector<8x128xf32>
    %246 = vector.extract_strided_slice %231 {offsets = [0, 384], sizes = [8, 128], strides = [1, 1]} : vector<8x512xf32> to vector<8x128xf32>
    %247 = arith.negf %246 : vector<8x128xf32>
    %248 = math.exp %247 : vector<8x128xf32>
    %cst_60 = arith.constant 1.000000e+00 : f32
    %249 = vector.broadcast %cst_60 : f32 to vector<8x128xf32>
    %250 = arith.addf %249, %248 : vector<8x128xf32>
    %251 = arith.divf %249, %250 : vector<8x128xf32>
    %252 = arith.mulf %243, %188 : vector<8x128xf32>
    %253 = arith.mulf %237, %245 : vector<8x128xf32>
    %254 = arith.addf %252, %253 : vector<8x128xf32>
    %255 = math.tanh %254 : vector<8x128xf32>
    %256 = arith.mulf %251, %255 : vector<8x128xf32>
    %257 = arith.truncf %219 : vector<8x128xf32> to vector<8x128xbf16>
    %c0_61 = arith.constant 0 : index
    %c0_62 = arith.constant 0 : index
    %258 = vector.load %arg2[%c0_61, %c0_62] : memref<128x512xbf16, #tpu.memory_space<vmem>>, vector<128x512xbf16>
    %cst_63 = arith.constant dense<0.000000e+00> : vector<8x512xf32>
    %259 = tpu.matmul %257, %258, %cst_63 {dimension_numbers = #tpu.dot_dimension_numbers<[1], [0], [0], [1], [0, 0, 1, 1], [], []>} : vector<8x128xbf16>, vector<128x512xbf16>, vector<8x512xf32> -> vector<8x512xf32>
    %260 = arith.addf %30, %259 : vector<8x512xf32>
    %261 = vector.extract_strided_slice %260 {offsets = [0, 0], sizes = [8, 128], strides = [1, 1]} : vector<8x512xf32> to vector<8x128xf32>
    %262 = arith.negf %261 : vector<8x128xf32>
    %263 = math.exp %262 : vector<8x128xf32>
    %cst_64 = arith.constant 1.000000e+00 : f32
    %264 = vector.broadcast %cst_64 : f32 to vector<8x128xf32>
    %265 = arith.addf %264, %263 : vector<8x128xf32>
    %266 = arith.divf %264, %265 : vector<8x128xf32>
    %267 = vector.extract_strided_slice %260 {offsets = [0, 128], sizes = [8, 128], strides = [1, 1]} : vector<8x512xf32> to vector<8x128xf32>
    %268 = arith.negf %267 : vector<8x128xf32>
    %269 = math.exp %268 : vector<8x128xf32>
    %cst_65 = arith.constant 1.000000e+00 : f32
    %270 = vector.broadcast %cst_65 : f32 to vector<8x128xf32>
    %271 = arith.addf %270, %269 : vector<8x128xf32>
    %272 = arith.divf %270, %271 : vector<8x128xf32>
    %273 = vector.extract_strided_slice %260 {offsets = [0, 256], sizes = [8, 128], strides = [1, 1]} : vector<8x512xf32> to vector<8x128xf32>
    %274 = math.tanh %273 : vector<8x128xf32>
    %275 = vector.extract_strided_slice %260 {offsets = [0, 384], sizes = [8, 128], strides = [1, 1]} : vector<8x512xf32> to vector<8x128xf32>
    %276 = arith.negf %275 : vector<8x128xf32>
    %277 = math.exp %276 : vector<8x128xf32>
    %cst_66 = arith.constant 1.000000e+00 : f32
    %278 = vector.broadcast %cst_66 : f32 to vector<8x128xf32>
    %279 = arith.addf %278, %277 : vector<8x128xf32>
    %280 = arith.divf %278, %279 : vector<8x128xf32>
    %281 = arith.mulf %272, %217 : vector<8x128xf32>
    %282 = arith.mulf %266, %274 : vector<8x128xf32>
    %283 = arith.addf %281, %282 : vector<8x128xf32>
    %284 = math.tanh %283 : vector<8x128xf32>
    %285 = arith.mulf %280, %284 : vector<8x128xf32>
    %cst_67 = arith.constant 0.000000e+00 : f32
    %286 = vector.broadcast %cst_67 : f32 to vector<8x128xf32>
    %287 = arith.maximumf %285, %286 : vector<8x128xf32>
    %288 = vector.broadcast %3 : vector<1x128xf32> to vector<8x128xf32>
    %289 = arith.mulf %287, %288 : vector<8x128xf32>
    %290 = vector.broadcast %4 : vector<1x128xf32> to vector<8x128xf32>
    %291 = arith.addf %289, %290 : vector<8x128xf32>
    %292 = tpu.concatenate %291, %256 in 1 : vector<8x128xf32>, vector<8x128xf32> -> vector<8x256xf32>
    %293 = arith.truncf %292 : vector<8x256xf32> to vector<8x256xbf16>
    %c0_68 = arith.constant 0 : index
    %c0_69 = arith.constant 0 : index
    %294 = vector.load %arg3[%c0_68, %c0_69] : memref<256x512xbf16, #tpu.memory_space<vmem>>, vector<256x512xbf16>
    %cst_70 = arith.constant dense<0.000000e+00> : vector<8x512xf32>
    %295 = tpu.matmul %293, %294, %cst_70 {dimension_numbers = #tpu.dot_dimension_numbers<[1], [0], [0], [1], [0, 0, 1, 1], [], []>} : vector<8x256xbf16>, vector<256x512xbf16>, vector<8x512xf32> -> vector<8x512xf32>
    %296 = vector.broadcast %2 : vector<1x512xf32> to vector<8x512xf32>
    %297 = arith.addf %296, %295 : vector<8x512xf32>
    %298 = vector.extract_strided_slice %297 {offsets = [0, 0], sizes = [8, 128], strides = [1, 1]} : vector<8x512xf32> to vector<8x128xf32>
    %299 = arith.negf %298 : vector<8x128xf32>
    %300 = math.exp %299 : vector<8x128xf32>
    %cst_71 = arith.constant 1.000000e+00 : f32
    %301 = vector.broadcast %cst_71 : f32 to vector<8x128xf32>
    %302 = arith.addf %301, %300 : vector<8x128xf32>
    %303 = arith.divf %301, %302 : vector<8x128xf32>
    %304 = vector.extract_strided_slice %297 {offsets = [0, 128], sizes = [8, 128], strides = [1, 1]} : vector<8x512xf32> to vector<8x128xf32>
    %305 = arith.negf %304 : vector<8x128xf32>
    %306 = math.exp %305 : vector<8x128xf32>
    %cst_72 = arith.constant 1.000000e+00 : f32
    %307 = vector.broadcast %cst_72 : f32 to vector<8x128xf32>
    %308 = arith.addf %307, %306 : vector<8x128xf32>
    %309 = arith.divf %307, %308 : vector<8x128xf32>
    %310 = vector.extract_strided_slice %297 {offsets = [0, 256], sizes = [8, 128], strides = [1, 1]} : vector<8x512xf32> to vector<8x128xf32>
    %311 = math.tanh %310 : vector<8x128xf32>
    %312 = vector.extract_strided_slice %297 {offsets = [0, 384], sizes = [8, 128], strides = [1, 1]} : vector<8x512xf32> to vector<8x128xf32>
    %313 = arith.negf %312 : vector<8x128xf32>
    %314 = math.exp %313 : vector<8x128xf32>
    %cst_73 = arith.constant 1.000000e+00 : f32
    %315 = vector.broadcast %cst_73 : f32 to vector<8x128xf32>
    %316 = arith.addf %315, %314 : vector<8x128xf32>
    %317 = arith.divf %315, %316 : vector<8x128xf32>
    %318 = arith.mulf %309, %254 : vector<8x128xf32>
    %319 = arith.mulf %303, %311 : vector<8x128xf32>
    %320 = arith.addf %318, %319 : vector<8x128xf32>
    %321 = math.tanh %320 : vector<8x128xf32>
    %322 = arith.mulf %317, %321 : vector<8x128xf32>
    %323 = arith.truncf %285 : vector<8x128xf32> to vector<8x128xbf16>
    %c0_74 = arith.constant 0 : index
    %c0_75 = arith.constant 0 : index
    %324 = vector.load %arg2[%c0_74, %c0_75] : memref<128x512xbf16, #tpu.memory_space<vmem>>, vector<128x512xbf16>
    %cst_76 = arith.constant dense<0.000000e+00> : vector<8x512xf32>
    %325 = tpu.matmul %323, %324, %cst_76 {dimension_numbers = #tpu.dot_dimension_numbers<[1], [0], [0], [1], [0, 0, 1, 1], [], []>} : vector<8x128xbf16>, vector<128x512xbf16>, vector<8x512xf32> -> vector<8x512xf32>
    %326 = arith.addf %36, %325 : vector<8x512xf32>
    %327 = vector.extract_strided_slice %326 {offsets = [0, 0], sizes = [8, 128], strides = [1, 1]} : vector<8x512xf32> to vector<8x128xf32>
    %328 = arith.negf %327 : vector<8x128xf32>
    %329 = math.exp %328 : vector<8x128xf32>
    %cst_77 = arith.constant 1.000000e+00 : f32
    %330 = vector.broadcast %cst_77 : f32 to vector<8x128xf32>
    %331 = arith.addf %330, %329 : vector<8x128xf32>
    %332 = arith.divf %330, %331 : vector<8x128xf32>
    %333 = vector.extract_strided_slice %326 {offsets = [0, 128], sizes = [8, 128], strides = [1, 1]} : vector<8x512xf32> to vector<8x128xf32>
    %334 = arith.negf %333 : vector<8x128xf32>
    %335 = math.exp %334 : vector<8x128xf32>
    %cst_78 = arith.constant 1.000000e+00 : f32
    %336 = vector.broadcast %cst_78 : f32 to vector<8x128xf32>
    %337 = arith.addf %336, %335 : vector<8x128xf32>
    %338 = arith.divf %336, %337 : vector<8x128xf32>
    %339 = vector.extract_strided_slice %326 {offsets = [0, 256], sizes = [8, 128], strides = [1, 1]} : vector<8x512xf32> to vector<8x128xf32>
    %340 = math.tanh %339 : vector<8x128xf32>
    %341 = vector.extract_strided_slice %326 {offsets = [0, 384], sizes = [8, 128], strides = [1, 1]} : vector<8x512xf32> to vector<8x128xf32>
    %342 = arith.negf %341 : vector<8x128xf32>
    %343 = math.exp %342 : vector<8x128xf32>
    %cst_79 = arith.constant 1.000000e+00 : f32
    %344 = vector.broadcast %cst_79 : f32 to vector<8x128xf32>
    %345 = arith.addf %344, %343 : vector<8x128xf32>
    %346 = arith.divf %344, %345 : vector<8x128xf32>
    %347 = arith.mulf %338, %283 : vector<8x128xf32>
    %348 = arith.mulf %332, %340 : vector<8x128xf32>
    %349 = arith.addf %347, %348 : vector<8x128xf32>
    %350 = math.tanh %349 : vector<8x128xf32>
    %351 = arith.mulf %346, %350 : vector<8x128xf32>
    %cst_80 = arith.constant 0.000000e+00 : f32
    %352 = vector.broadcast %cst_80 : f32 to vector<8x128xf32>
    %353 = arith.maximumf %351, %352 : vector<8x128xf32>
    %354 = vector.broadcast %3 : vector<1x128xf32> to vector<8x128xf32>
    %355 = arith.mulf %353, %354 : vector<8x128xf32>
    %356 = vector.broadcast %4 : vector<1x128xf32> to vector<8x128xf32>
    %357 = arith.addf %355, %356 : vector<8x128xf32>
    %358 = tpu.concatenate %357, %322 in 1 : vector<8x128xf32>, vector<8x128xf32> -> vector<8x256xf32>
    %359 = arith.truncf %358 : vector<8x256xf32> to vector<8x256xbf16>
    %c0_81 = arith.constant 0 : index
    %c0_82 = arith.constant 0 : index
    %360 = vector.load %arg3[%c0_81, %c0_82] : memref<256x512xbf16, #tpu.memory_space<vmem>>, vector<256x512xbf16>
    %cst_83 = arith.constant dense<0.000000e+00> : vector<8x512xf32>
    %361 = tpu.matmul %359, %360, %cst_83 {dimension_numbers = #tpu.dot_dimension_numbers<[1], [0], [0], [1], [0, 0, 1, 1], [], []>} : vector<8x256xbf16>, vector<256x512xbf16>, vector<8x512xf32> -> vector<8x512xf32>
    %362 = vector.broadcast %2 : vector<1x512xf32> to vector<8x512xf32>
    %363 = arith.addf %362, %361 : vector<8x512xf32>
    %364 = vector.extract_strided_slice %363 {offsets = [0, 0], sizes = [8, 128], strides = [1, 1]} : vector<8x512xf32> to vector<8x128xf32>
    %365 = arith.negf %364 : vector<8x128xf32>
    %366 = math.exp %365 : vector<8x128xf32>
    %cst_84 = arith.constant 1.000000e+00 : f32
    %367 = vector.broadcast %cst_84 : f32 to vector<8x128xf32>
    %368 = arith.addf %367, %366 : vector<8x128xf32>
    %369 = arith.divf %367, %368 : vector<8x128xf32>
    %370 = vector.extract_strided_slice %363 {offsets = [0, 128], sizes = [8, 128], strides = [1, 1]} : vector<8x512xf32> to vector<8x128xf32>
    %371 = arith.negf %370 : vector<8x128xf32>
    %372 = math.exp %371 : vector<8x128xf32>
    %cst_85 = arith.constant 1.000000e+00 : f32
    %373 = vector.broadcast %cst_85 : f32 to vector<8x128xf32>
    %374 = arith.addf %373, %372 : vector<8x128xf32>
    %375 = arith.divf %373, %374 : vector<8x128xf32>
    %376 = vector.extract_strided_slice %363 {offsets = [0, 256], sizes = [8, 128], strides = [1, 1]} : vector<8x512xf32> to vector<8x128xf32>
    %377 = math.tanh %376 : vector<8x128xf32>
    %378 = vector.extract_strided_slice %363 {offsets = [0, 384], sizes = [8, 128], strides = [1, 1]} : vector<8x512xf32> to vector<8x128xf32>
    %379 = arith.negf %378 : vector<8x128xf32>
    %380 = math.exp %379 : vector<8x128xf32>
    %cst_86 = arith.constant 1.000000e+00 : f32
    %381 = vector.broadcast %cst_86 : f32 to vector<8x128xf32>
    %382 = arith.addf %381, %380 : vector<8x128xf32>
    %383 = arith.divf %381, %382 : vector<8x128xf32>
    %384 = arith.mulf %375, %320 : vector<8x128xf32>
    %385 = arith.mulf %369, %377 : vector<8x128xf32>
    %386 = arith.addf %384, %385 : vector<8x128xf32>
    %387 = math.tanh %386 : vector<8x128xf32>
    %388 = arith.mulf %383, %387 : vector<8x128xf32>
    %389 = arith.truncf %351 : vector<8x128xf32> to vector<8x128xbf16>
    %c0_87 = arith.constant 0 : index
    %c0_88 = arith.constant 0 : index
    %390 = vector.load %arg2[%c0_87, %c0_88] : memref<128x512xbf16, #tpu.memory_space<vmem>>, vector<128x512xbf16>
    %cst_89 = arith.constant dense<0.000000e+00> : vector<8x512xf32>
    %391 = tpu.matmul %389, %390, %cst_89 {dimension_numbers = #tpu.dot_dimension_numbers<[1], [0], [0], [1], [0, 0, 1, 1], [], []>} : vector<8x128xbf16>, vector<128x512xbf16>, vector<8x512xf32> -> vector<8x512xf32>
    %392 = arith.addf %42, %391 : vector<8x512xf32>
    %393 = vector.extract_strided_slice %392 {offsets = [0, 0], sizes = [8, 128], strides = [1, 1]} : vector<8x512xf32> to vector<8x128xf32>
    %394 = arith.negf %393 : vector<8x128xf32>
    %395 = math.exp %394 : vector<8x128xf32>
    %cst_90 = arith.constant 1.000000e+00 : f32
    %396 = vector.broadcast %cst_90 : f32 to vector<8x128xf32>
    %397 = arith.addf %396, %395 : vector<8x128xf32>
    %398 = arith.divf %396, %397 : vector<8x128xf32>
    %399 = vector.extract_strided_slice %392 {offsets = [0, 128], sizes = [8, 128], strides = [1, 1]} : vector<8x512xf32> to vector<8x128xf32>
    %400 = arith.negf %399 : vector<8x128xf32>
    %401 = math.exp %400 : vector<8x128xf32>
    %cst_91 = arith.constant 1.000000e+00 : f32
    %402 = vector.broadcast %cst_91 : f32 to vector<8x128xf32>
    %403 = arith.addf %402, %401 : vector<8x128xf32>
    %404 = arith.divf %402, %403 : vector<8x128xf32>
    %405 = vector.extract_strided_slice %392 {offsets = [0, 256], sizes = [8, 128], strides = [1, 1]} : vector<8x512xf32> to vector<8x128xf32>
    %406 = math.tanh %405 : vector<8x128xf32>
    %407 = vector.extract_strided_slice %392 {offsets = [0, 384], sizes = [8, 128], strides = [1, 1]} : vector<8x512xf32> to vector<8x128xf32>
    %408 = arith.negf %407 : vector<8x128xf32>
    %409 = math.exp %408 : vector<8x128xf32>
    %cst_92 = arith.constant 1.000000e+00 : f32
    %410 = vector.broadcast %cst_92 : f32 to vector<8x128xf32>
    %411 = arith.addf %410, %409 : vector<8x128xf32>
    %412 = arith.divf %410, %411 : vector<8x128xf32>
    %413 = arith.mulf %404, %349 : vector<8x128xf32>
    %414 = arith.mulf %398, %406 : vector<8x128xf32>
    %415 = arith.addf %413, %414 : vector<8x128xf32>
    %416 = math.tanh %415 : vector<8x128xf32>
    %417 = arith.mulf %412, %416 : vector<8x128xf32>
    %cst_93 = arith.constant 0.000000e+00 : f32
    %418 = vector.broadcast %cst_93 : f32 to vector<8x128xf32>
    %419 = arith.maximumf %417, %418 : vector<8x128xf32>
    %420 = vector.broadcast %3 : vector<1x128xf32> to vector<8x128xf32>
    %421 = arith.mulf %419, %420 : vector<8x128xf32>
    %422 = vector.broadcast %4 : vector<1x128xf32> to vector<8x128xf32>
    %423 = arith.addf %421, %422 : vector<8x128xf32>
    %424 = tpu.concatenate %423, %388 in 1 : vector<8x128xf32>, vector<8x128xf32> -> vector<8x256xf32>
    %425 = arith.truncf %424 : vector<8x256xf32> to vector<8x256xbf16>
    %c0_94 = arith.constant 0 : index
    %c0_95 = arith.constant 0 : index
    %426 = vector.load %arg3[%c0_94, %c0_95] : memref<256x512xbf16, #tpu.memory_space<vmem>>, vector<256x512xbf16>
    %cst_96 = arith.constant dense<0.000000e+00> : vector<8x512xf32>
    %427 = tpu.matmul %425, %426, %cst_96 {dimension_numbers = #tpu.dot_dimension_numbers<[1], [0], [0], [1], [0, 0, 1, 1], [], []>} : vector<8x256xbf16>, vector<256x512xbf16>, vector<8x512xf32> -> vector<8x512xf32>
    %428 = vector.broadcast %2 : vector<1x512xf32> to vector<8x512xf32>
    %429 = arith.addf %428, %427 : vector<8x512xf32>
    %430 = vector.extract_strided_slice %429 {offsets = [0, 0], sizes = [8, 128], strides = [1, 1]} : vector<8x512xf32> to vector<8x128xf32>
    %431 = arith.negf %430 : vector<8x128xf32>
    %432 = math.exp %431 : vector<8x128xf32>
    %cst_97 = arith.constant 1.000000e+00 : f32
    %433 = vector.broadcast %cst_97 : f32 to vector<8x128xf32>
    %434 = arith.addf %433, %432 : vector<8x128xf32>
    %435 = arith.divf %433, %434 : vector<8x128xf32>
    %436 = vector.extract_strided_slice %429 {offsets = [0, 128], sizes = [8, 128], strides = [1, 1]} : vector<8x512xf32> to vector<8x128xf32>
    %437 = arith.negf %436 : vector<8x128xf32>
    %438 = math.exp %437 : vector<8x128xf32>
    %cst_98 = arith.constant 1.000000e+00 : f32
    %439 = vector.broadcast %cst_98 : f32 to vector<8x128xf32>
    %440 = arith.addf %439, %438 : vector<8x128xf32>
    %441 = arith.divf %439, %440 : vector<8x128xf32>
    %442 = vector.extract_strided_slice %429 {offsets = [0, 256], sizes = [8, 128], strides = [1, 1]} : vector<8x512xf32> to vector<8x128xf32>
    %443 = math.tanh %442 : vector<8x128xf32>
    %444 = vector.extract_strided_slice %429 {offsets = [0, 384], sizes = [8, 128], strides = [1, 1]} : vector<8x512xf32> to vector<8x128xf32>
    %445 = arith.negf %444 : vector<8x128xf32>
    %446 = math.exp %445 : vector<8x128xf32>
    %cst_99 = arith.constant 1.000000e+00 : f32
    %447 = vector.broadcast %cst_99 : f32 to vector<8x128xf32>
    %448 = arith.addf %447, %446 : vector<8x128xf32>
    %449 = arith.divf %447, %448 : vector<8x128xf32>
    %450 = arith.mulf %441, %386 : vector<8x128xf32>
    %451 = arith.mulf %435, %443 : vector<8x128xf32>
    %452 = arith.addf %450, %451 : vector<8x128xf32>
    %453 = math.tanh %452 : vector<8x128xf32>
    %454 = arith.mulf %449, %453 : vector<8x128xf32>
    %455 = arith.truncf %417 : vector<8x128xf32> to vector<8x128xbf16>
    %c0_100 = arith.constant 0 : index
    %c0_101 = arith.constant 0 : index
    %456 = vector.load %arg2[%c0_100, %c0_101] : memref<128x512xbf16, #tpu.memory_space<vmem>>, vector<128x512xbf16>
    %cst_102 = arith.constant dense<0.000000e+00> : vector<8x512xf32>
    %457 = tpu.matmul %455, %456, %cst_102 {dimension_numbers = #tpu.dot_dimension_numbers<[1], [0], [0], [1], [0, 0, 1, 1], [], []>} : vector<8x128xbf16>, vector<128x512xbf16>, vector<8x512xf32> -> vector<8x512xf32>
    %458 = arith.addf %48, %457 : vector<8x512xf32>
    %459 = vector.extract_strided_slice %458 {offsets = [0, 0], sizes = [8, 128], strides = [1, 1]} : vector<8x512xf32> to vector<8x128xf32>
    %460 = arith.negf %459 : vector<8x128xf32>
    %461 = math.exp %460 : vector<8x128xf32>
    %cst_103 = arith.constant 1.000000e+00 : f32
    %462 = vector.broadcast %cst_103 : f32 to vector<8x128xf32>
    %463 = arith.addf %462, %461 : vector<8x128xf32>
    %464 = arith.divf %462, %463 : vector<8x128xf32>
    %465 = vector.extract_strided_slice %458 {offsets = [0, 128], sizes = [8, 128], strides = [1, 1]} : vector<8x512xf32> to vector<8x128xf32>
    %466 = arith.negf %465 : vector<8x128xf32>
    %467 = math.exp %466 : vector<8x128xf32>
    %cst_104 = arith.constant 1.000000e+00 : f32
    %468 = vector.broadcast %cst_104 : f32 to vector<8x128xf32>
    %469 = arith.addf %468, %467 : vector<8x128xf32>
    %470 = arith.divf %468, %469 : vector<8x128xf32>
    %471 = vector.extract_strided_slice %458 {offsets = [0, 256], sizes = [8, 128], strides = [1, 1]} : vector<8x512xf32> to vector<8x128xf32>
    %472 = math.tanh %471 : vector<8x128xf32>
    %473 = vector.extract_strided_slice %458 {offsets = [0, 384], sizes = [8, 128], strides = [1, 1]} : vector<8x512xf32> to vector<8x128xf32>
    %474 = arith.negf %473 : vector<8x128xf32>
    %475 = math.exp %474 : vector<8x128xf32>
    %cst_105 = arith.constant 1.000000e+00 : f32
    %476 = vector.broadcast %cst_105 : f32 to vector<8x128xf32>
    %477 = arith.addf %476, %475 : vector<8x128xf32>
    %478 = arith.divf %476, %477 : vector<8x128xf32>
    %479 = arith.mulf %470, %415 : vector<8x128xf32>
    %480 = arith.mulf %464, %472 : vector<8x128xf32>
    %481 = arith.addf %479, %480 : vector<8x128xf32>
    %482 = math.tanh %481 : vector<8x128xf32>
    %483 = arith.mulf %478, %482 : vector<8x128xf32>
    %cst_106 = arith.constant 0.000000e+00 : f32
    %484 = vector.broadcast %cst_106 : f32 to vector<8x128xf32>
    %485 = arith.maximumf %483, %484 : vector<8x128xf32>
    %486 = vector.broadcast %3 : vector<1x128xf32> to vector<8x128xf32>
    %487 = arith.mulf %485, %486 : vector<8x128xf32>
    %488 = vector.broadcast %4 : vector<1x128xf32> to vector<8x128xf32>
    %489 = arith.addf %487, %488 : vector<8x128xf32>
    %490 = tpu.concatenate %489, %454 in 1 : vector<8x128xf32>, vector<8x128xf32> -> vector<8x256xf32>
    %491 = arith.truncf %490 : vector<8x256xf32> to vector<8x256xbf16>
    %c0_107 = arith.constant 0 : index
    %c0_108 = arith.constant 0 : index
    %492 = vector.load %arg3[%c0_107, %c0_108] : memref<256x512xbf16, #tpu.memory_space<vmem>>, vector<256x512xbf16>
    %cst_109 = arith.constant dense<0.000000e+00> : vector<8x512xf32>
    %493 = tpu.matmul %491, %492, %cst_109 {dimension_numbers = #tpu.dot_dimension_numbers<[1], [0], [0], [1], [0, 0, 1, 1], [], []>} : vector<8x256xbf16>, vector<256x512xbf16>, vector<8x512xf32> -> vector<8x512xf32>
    %494 = vector.broadcast %2 : vector<1x512xf32> to vector<8x512xf32>
    %495 = arith.addf %494, %493 : vector<8x512xf32>
    %496 = vector.extract_strided_slice %495 {offsets = [0, 0], sizes = [8, 128], strides = [1, 1]} : vector<8x512xf32> to vector<8x128xf32>
    %497 = arith.negf %496 : vector<8x128xf32>
    %498 = math.exp %497 : vector<8x128xf32>
    %cst_110 = arith.constant 1.000000e+00 : f32
    %499 = vector.broadcast %cst_110 : f32 to vector<8x128xf32>
    %500 = arith.addf %499, %498 : vector<8x128xf32>
    %501 = arith.divf %499, %500 : vector<8x128xf32>
    %502 = vector.extract_strided_slice %495 {offsets = [0, 128], sizes = [8, 128], strides = [1, 1]} : vector<8x512xf32> to vector<8x128xf32>
    %503 = arith.negf %502 : vector<8x128xf32>
    %504 = math.exp %503 : vector<8x128xf32>
    %cst_111 = arith.constant 1.000000e+00 : f32
    %505 = vector.broadcast %cst_111 : f32 to vector<8x128xf32>
    %506 = arith.addf %505, %504 : vector<8x128xf32>
    %507 = arith.divf %505, %506 : vector<8x128xf32>
    %508 = vector.extract_strided_slice %495 {offsets = [0, 256], sizes = [8, 128], strides = [1, 1]} : vector<8x512xf32> to vector<8x128xf32>
    %509 = math.tanh %508 : vector<8x128xf32>
    %510 = vector.extract_strided_slice %495 {offsets = [0, 384], sizes = [8, 128], strides = [1, 1]} : vector<8x512xf32> to vector<8x128xf32>
    %511 = arith.negf %510 : vector<8x128xf32>
    %512 = math.exp %511 : vector<8x128xf32>
    %cst_112 = arith.constant 1.000000e+00 : f32
    %513 = vector.broadcast %cst_112 : f32 to vector<8x128xf32>
    %514 = arith.addf %513, %512 : vector<8x128xf32>
    %515 = arith.divf %513, %514 : vector<8x128xf32>
    %516 = arith.mulf %507, %452 : vector<8x128xf32>
    %517 = arith.mulf %501, %509 : vector<8x128xf32>
    %518 = arith.addf %516, %517 : vector<8x128xf32>
    %519 = math.tanh %518 : vector<8x128xf32>
    %520 = arith.mulf %515, %519 : vector<8x128xf32>
    %521 = arith.truncf %483 : vector<8x128xf32> to vector<8x128xbf16>
    %c0_113 = arith.constant 0 : index
    %c0_114 = arith.constant 0 : index
    %522 = vector.load %arg2[%c0_113, %c0_114] : memref<128x512xbf16, #tpu.memory_space<vmem>>, vector<128x512xbf16>
    %cst_115 = arith.constant dense<0.000000e+00> : vector<8x512xf32>
    %523 = tpu.matmul %521, %522, %cst_115 {dimension_numbers = #tpu.dot_dimension_numbers<[1], [0], [0], [1], [0, 0, 1, 1], [], []>} : vector<8x128xbf16>, vector<128x512xbf16>, vector<8x512xf32> -> vector<8x512xf32>
    %524 = arith.addf %54, %523 : vector<8x512xf32>
    %525 = vector.extract_strided_slice %524 {offsets = [0, 0], sizes = [8, 128], strides = [1, 1]} : vector<8x512xf32> to vector<8x128xf32>
    %526 = arith.negf %525 : vector<8x128xf32>
    %527 = math.exp %526 : vector<8x128xf32>
    %cst_116 = arith.constant 1.000000e+00 : f32
    %528 = vector.broadcast %cst_116 : f32 to vector<8x128xf32>
    %529 = arith.addf %528, %527 : vector<8x128xf32>
    %530 = arith.divf %528, %529 : vector<8x128xf32>
    %531 = vector.extract_strided_slice %524 {offsets = [0, 128], sizes = [8, 128], strides = [1, 1]} : vector<8x512xf32> to vector<8x128xf32>
    %532 = arith.negf %531 : vector<8x128xf32>
    %533 = math.exp %532 : vector<8x128xf32>
    %cst_117 = arith.constant 1.000000e+00 : f32
    %534 = vector.broadcast %cst_117 : f32 to vector<8x128xf32>
    %535 = arith.addf %534, %533 : vector<8x128xf32>
    %536 = arith.divf %534, %535 : vector<8x128xf32>
    %537 = vector.extract_strided_slice %524 {offsets = [0, 256], sizes = [8, 128], strides = [1, 1]} : vector<8x512xf32> to vector<8x128xf32>
    %538 = math.tanh %537 : vector<8x128xf32>
    %539 = vector.extract_strided_slice %524 {offsets = [0, 384], sizes = [8, 128], strides = [1, 1]} : vector<8x512xf32> to vector<8x128xf32>
    %540 = arith.negf %539 : vector<8x128xf32>
    %541 = math.exp %540 : vector<8x128xf32>
    %cst_118 = arith.constant 1.000000e+00 : f32
    %542 = vector.broadcast %cst_118 : f32 to vector<8x128xf32>
    %543 = arith.addf %542, %541 : vector<8x128xf32>
    %544 = arith.divf %542, %543 : vector<8x128xf32>
    %545 = arith.mulf %536, %481 : vector<8x128xf32>
    %546 = arith.mulf %530, %538 : vector<8x128xf32>
    %547 = arith.addf %545, %546 : vector<8x128xf32>
    %548 = math.tanh %547 : vector<8x128xf32>
    %549 = arith.mulf %544, %548 : vector<8x128xf32>
    %cst_119 = arith.constant 0.000000e+00 : f32
    %550 = vector.broadcast %cst_119 : f32 to vector<8x128xf32>
    %551 = arith.maximumf %549, %550 : vector<8x128xf32>
    %552 = vector.broadcast %3 : vector<1x128xf32> to vector<8x128xf32>
    %553 = arith.mulf %551, %552 : vector<8x128xf32>
    %554 = vector.broadcast %4 : vector<1x128xf32> to vector<8x128xf32>
    %555 = arith.addf %553, %554 : vector<8x128xf32>
    %556 = tpu.concatenate %555, %520 in 1 : vector<8x128xf32>, vector<8x128xf32> -> vector<8x256xf32>
    %557 = arith.truncf %556 : vector<8x256xf32> to vector<8x256xbf16>
    %c0_120 = arith.constant 0 : index
    %c0_121 = arith.constant 0 : index
    %558 = vector.load %arg3[%c0_120, %c0_121] : memref<256x512xbf16, #tpu.memory_space<vmem>>, vector<256x512xbf16>
    %cst_122 = arith.constant dense<0.000000e+00> : vector<8x512xf32>
    %559 = tpu.matmul %557, %558, %cst_122 {dimension_numbers = #tpu.dot_dimension_numbers<[1], [0], [0], [1], [0, 0, 1, 1], [], []>} : vector<8x256xbf16>, vector<256x512xbf16>, vector<8x512xf32> -> vector<8x512xf32>
    %560 = vector.broadcast %2 : vector<1x512xf32> to vector<8x512xf32>
    %561 = arith.addf %560, %559 : vector<8x512xf32>
    %562 = vector.extract_strided_slice %561 {offsets = [0, 0], sizes = [8, 128], strides = [1, 1]} : vector<8x512xf32> to vector<8x128xf32>
    %563 = arith.negf %562 : vector<8x128xf32>
    %564 = math.exp %563 : vector<8x128xf32>
    %cst_123 = arith.constant 1.000000e+00 : f32
    %565 = vector.broadcast %cst_123 : f32 to vector<8x128xf32>
    %566 = arith.addf %565, %564 : vector<8x128xf32>
    %567 = arith.divf %565, %566 : vector<8x128xf32>
    %568 = vector.extract_strided_slice %561 {offsets = [0, 128], sizes = [8, 128], strides = [1, 1]} : vector<8x512xf32> to vector<8x128xf32>
    %569 = arith.negf %568 : vector<8x128xf32>
    %570 = math.exp %569 : vector<8x128xf32>
    %cst_124 = arith.constant 1.000000e+00 : f32
    %571 = vector.broadcast %cst_124 : f32 to vector<8x128xf32>
    %572 = arith.addf %571, %570 : vector<8x128xf32>
    %573 = arith.divf %571, %572 : vector<8x128xf32>
    %574 = vector.extract_strided_slice %561 {offsets = [0, 256], sizes = [8, 128], strides = [1, 1]} : vector<8x512xf32> to vector<8x128xf32>
    %575 = math.tanh %574 : vector<8x128xf32>
    %576 = vector.extract_strided_slice %561 {offsets = [0, 384], sizes = [8, 128], strides = [1, 1]} : vector<8x512xf32> to vector<8x128xf32>
    %577 = arith.negf %576 : vector<8x128xf32>
    %578 = math.exp %577 : vector<8x128xf32>
    %cst_125 = arith.constant 1.000000e+00 : f32
    %579 = vector.broadcast %cst_125 : f32 to vector<8x128xf32>
    %580 = arith.addf %579, %578 : vector<8x128xf32>
    %581 = arith.divf %579, %580 : vector<8x128xf32>
    %582 = arith.mulf %573, %518 : vector<8x128xf32>
    %583 = arith.mulf %567, %575 : vector<8x128xf32>
    %584 = arith.addf %582, %583 : vector<8x128xf32>
    %585 = math.tanh %584 : vector<8x128xf32>
    %586 = arith.mulf %581, %585 : vector<8x128xf32>
    %cst_126 = arith.constant 0.000000e+00 : f32
    %587 = vector.broadcast %cst_126 : f32 to vector<8x128xf32>
    %588 = arith.maximumf %586, %587 : vector<8x128xf32>
    %589 = vector.broadcast %5 : vector<1x128xf32> to vector<8x128xf32>
    %590 = arith.mulf %588, %589 : vector<8x128xf32>
    %cst_127 = arith.constant dense<0.000000e+00> : vector<8xf32>
    %591 = vector.multi_reduction <add>, %590, %cst_127 [1] : vector<8x128xf32> to vector<8xf32>
    %592 = vector.shape_cast %591 : vector<8xf32> to vector<8x1xf32>
    %593 = vector.broadcast %6 : vector<1x1xf32> to vector<8x1xf32>
    %594 = arith.addf %592, %593 : vector<8x1xf32>
    %c0_128 = arith.constant 0 : index
    %c0_129 = arith.constant 0 : index
    %595 = vector.load %arg4[%c0_128, %c0_129] : memref<8x1xf32, #tpu.memory_space<vmem>>, vector<8x1xf32>
    tpu.vector_store %arg4[%c0_128, %c0_129], %594 {strides = array<i32>} : memref<8x1xf32, #tpu.memory_space<vmem>>, vector<8x1xf32>,
    return
  }
}

</mosaic_0001>

<bundles_post_ra>
// kernel: stock_predictor_forward.1
= control target key start
LH: loop header
LB: loop body
LE: loop exit
PB: predicated region body
PF: predicated region fallthrough
CT: control target
= control target key end

     0   :  { %9 = vsyncpa [#allocation3], 0  ;;  %s5123_s0 = inlined_call_operand.vmem [shape: f32[8,8], index: 0, kind: input, shape index: {}]   ;;  %s5124_s1 = inlined_call_operand.hbm [shape: f32[8,512], index: 1, kind: input, shape index: {}]   ;;  %s5125_s2 = inlined_call_operand.hbm [shape: bf16[128,512], index: 2, kind: input, shape index: {}]   ;;  %s5126_s3 = inlined_call_operand.hbm [shape: bf16[256,512], index: 3, kind: input, shape index: {}]   ;;  %s5127_s4 = inlined_call_operand.vmem [shape: f32[8,1], index: 4, kind: output, shape index: {}]  }
   0x1   :  { %10 = vsyncpa [#allocation5], 0  ;;  %s3452_s15 = smov [#allocation4]  }
   0x2   :  { %s28_s16 = sshll.u32 %s3452_s15, 4  ;;  %s29_s16 = int_to_ptr.vmem [resolvable:$true] %s28_s16 }
   0x3   :  { %s3396_s17 = scalar_lea.vmem %s29_s16, 4096  ;;  %p3401_p1 = scmp.lt.s32.totalorder %s29_s16, %s29_s16 }
   0x4   :  { %p3397_p0 = scmp.ne.s32.totalorder %s29_s16, %s3396_s17  ;;  %p3402_p2 = scmp.lt.s32.totalorder %s3396_s17, %s3396_s17 }
   0x6   :  { %p3403_p3 = por %p3402_p2, %p3401_p1 }
   0x8   :  { %p3404_p4 = pnand %p3403_p3, %p3397_p0 }
   0xa   :  { %3407 = shalt.err (!%p3404_p4)
}
   0xb   :  { %s3453_s18 = smov 256   ;;  %s3454_s19 = smov 16  }
   0xc   :  { %34 = dma.hbm_to_vmem [thread:$0]  %s5125_s2, 4096, %s29_s16, [#allocation5], %s3453_s18, %s3453_s18, %s3454_s19  }
   0xd   :  { %s3455_s22 = smov [#allocation2]   ;;  %s3456_s24 = smov [#allocation6]  }
   0xe   :  { %s19_s23 = sshll.u32 %s3455_s22, 4  ;;  %s40_s25 = sshll.u32 %s3456_s24, 4  ;;  %s20_s23 = int_to_ptr.vmem [resolvable:$true] %s19_s23  ;;  %s41_s25 = int_to_ptr.vmem [resolvable:$true] %s40_s25 }
   0xf   :  { %s3416_s26 = scalar_lea.vmem %s20_s23, 512  ;;  %p3421_p6 = scmp.lt.s32.totalorder %s20_s23, %s20_s23 }
  0x10   :  { %p3417_p5 = scmp.ne.s32.totalorder %s20_s23, %s3416_s26  ;;  %p3422_p7 = scmp.lt.s32.totalorder %s3416_s26, %s3416_s26 }
  0x12   :  { %p3423_p8 = por %p3422_p7, %p3421_p6 }
  0x14   :  { %p3424_p9 = pnand %p3423_p8, %p3417_p5 }
  0x16   :  { %3427 = shalt.err (!%p3424_p9)
}
  0x17   :  { %22 = dma.hbm_to_vmem [thread:$0]  %s5124_s1, 512, %s20_s23, [#allocation3]  }
  0x18   :  { %s3436_s29 = scalar_lea.vmem %s41_s25, 8192  ;;  %p3441_p11 = scmp.lt.s32.totalorder %s41_s25, %s41_s25 }
  0x19   :  { %p3437_p10 = scmp.ne.s32.totalorder %s41_s25, %s3436_s29  ;;  %p3442_p12 = scmp.lt.s32.totalorder %s3436_s29, %s3436_s29 }
  0x1b   :  { %p3443_p13 = por %p3442_p12, %p3441_p11 }
  0x1d   :  { %p3444_p0 = pnand %p3443_p13, %p3437_p10 }
  0x1f   :  { %3447 = shalt.err (!%p3444_p0)
}
  0x20   :  { %46 = dma.hbm_to_vmem [thread:$0]  %s5126_s3, 8192, %s41_s25, [#allocation5], %s3453_s18, %s3453_s18, %s3454_s19  }
  0x21   :  { %3448 = dma.done.wait [#allocation3], 512  }
  0x22   :  { %3449 = vsyncadd [#allocation3], 4294966784 }
  0x23   :  { %3450 = dma.done.wait [#allocation5], 12288  }
  0x24   :  { %3451 = vsyncadd [#allocation5], 4294955008  ;;  %v5128_v0 = vmov 0   ;;  %v3503_v1 = vld [vmem:[#allocation4 + $0xe4] ss:$16 sps:$4 sm:$0xff]   ;;  %vm2615_vm0 = vcmask 7168  }
  0x25   :  { %430 = vmatprep.mubr.bf16.mxu0 %v5128_v0  ;;  %471 = vmatprep.mubr.bf16.mxu1 %v5128_v0  ;;  %5493 = vst [vmem:[#allocation9_spill] sm:$0xff] %v3503_v1  ;;  %v3505_v2 = vld [vmem:[#allocation4 + $0xec] ss:$16 sps:$4 sm:$0xff]   ;;  %v3508_v3 = vld [vmem:[#allocation4 + $0xe0] ss:$16 sps:$4 sm:$0xff]  }
  0x26   :  { %2781 = vset.pattern.permute.xlu0 %v5128_v0  ;;  %5494 = vst [vmem:[#allocation10_spill] sm:$0xff] %v3505_v2  ;;  %398 = vmatprep.subr.bf16.mxu0 %v3503_v1  ;;  %v3510_v4 = vld [vmem:[#allocation4 + $0xe8] ss:$16 sps:$4 sm:$0xff]   ;;  %v3513_v5 = vld [vmem:[#allocation4 + $0xc4] ss:$16 sps:$4 sm:$0xff]  }
  0x27   :  { %439 = vmatprep.subr.bf16.mxu1 %v3505_v2  ;;  %399 = vmatpush1.bf16.msra.mxu0 %v3508_v3  ;;  %v3517_v6 = vld [vmem:[#allocation4 + $0xcc] ss:$16 sps:$4 sm:$0xff]   ;;  %v3519_v7 = vld [vmem:[#allocation4 + $0xc0] ss:$16 sps:$4 sm:$0xff]   ;;  %v3522_v8 = vld [vmem:[#allocation4 + $0xc8] ss:$16 sps:$4 sm:$0xff]  }
  0x28   :  { %440 = vmatpush1.bf16.msra.mxu1 %v3510_v4  ;;  %400 = vmatprep.subr.bf16.mxu0 %v3513_v5  ;;  %v3525_v9 = vld [vmem:[#allocation4 + $0xa4] ss:$16 sps:$4 sm:$0xff]   ;;  %v3527_v10 = vld [vmem:[#allocation4 + $0xac] ss:$16 sps:$4 sm:$0xff]   ;;  %v3529_v11 = vld [vmem:[#allocation4 + $0xa0] ss:$16 sps:$4 sm:$0xff]  }
  0x29   :  { %441 = vmatprep.subr.bf16.mxu1 %v3517_v6  ;;  %v3531_v12 = vld [vmem:[#allocation4 + $0xa8] ss:$16 sps:$4 sm:$0xff]   ;;  %v3535_v13 = vld [vmem:[#allocation4 + $0x84] ss:$16 sps:$4 sm:$0xff]   ;;  %v3539_v14 = vld [vmem:[#allocation4 + $0x8c] ss:$16 sps:$4 sm:$0xff]  }
  0x2a   :  { %v3541_v15 = vld [vmem:[#allocation4 + $0x80] ss:$16 sps:$4 sm:$0xff]   ;;  %v3545_v16 = vld [vmem:[#allocation4 + $0x88] ss:$16 sps:$4 sm:$0xff]   ;;  %v3547_v17 = vld [vmem:[#allocation4 + $0x64] ss:$16 sps:$4 sm:$0xff]  }
  0x2b   :  { %401 = vmatpush1.bf16.msra.mxu0 %v3519_v7  ;;  %v3551_v18 = vld [vmem:[#allocation4 + $0x6c] ss:$16 sps:$4 sm:$0xff]   ;;  %v3553_v19 = vld [vmem:[#allocation4 + $0x60] ss:$16 sps:$4 sm:$0xff]   ;;  %v3555_v20 = vld [vmem:[#allocation4 + $0x68] ss:$16 sps:$4 sm:$0xff]  }
  0x2c   :  { %442 = vmatpush1.bf16.msra.mxu1 %v3522_v8  ;;  %402 = vmatprep.subr.bf16.mxu0 %v3525_v9  ;;  %v3559_v21 = vld [vmem:[#allocation4 + $0x44] ss:$16 sps:$4 sm:$0xff]   ;;  %v3563_v22 = vld [vmem:[#allocation4 + $0x4c] ss:$16 sps:$4 sm:$0xff]   ;;  %v3567_v23 = vld [vmem:[#allocation4 + $0x40] ss:$16 sps:$4 sm:$0xff]  }
  0x2d   :  { %443 = vmatprep.subr.bf16.mxu1 %v3527_v10  ;;  %v3569_v24 = vld [vmem:[#allocation4 + $0x48] ss:$16 sps:$4 sm:$0xff]   ;;  %v3573_v25 = vld [vmem:[#allocation4 + $0x24] ss:$16 sps:$4 sm:$0xff]   ;;  %v3575_v26 = vld [vmem:[#allocation4 + $0x2c] ss:$16 sps:$4 sm:$0xff]  }
  0x2e   :  { %v3580_v27 = vld [vmem:[%s5123_s0] sm:$0xff]  ;;  %v3584_v29 = vld [vmem:[#allocation4 + $0x28] ss:$16 sps:$4 sm:$0xff]   ;;  %v3589_v31 = vld [vmem:[#allocation4 + $0xc] ss:$16 sps:$4 sm:$0xff]  }
  0x2f   :  { %403 = vmatpush1.bf16.msra.mxu0 %v3529_v11  ;;  %5495 = vst [vmem:[#allocation11_spill] sm:$0xff] %v3580_v27  ;;  %v3582_v28 = vld [vmem:[#allocation4 + $0x20] ss:$16 sps:$4 sm:$0xff]   ;;  %69 = vperm.xlu0 %2781, %v3580_v27   ;;  %v3587_v30 = vld [vmem:[#allocation4 + $0x4] ss:$16 sps:$4 sm:$0xff]  }
  0x30   :  { %444 = vmatpush1.bf16.msra.mxu1 %v3531_v12  ;;  %404 = vmatprep.subr.bf16.mxu0 %v3535_v13  ;;  %v3595_v32 = vld [vmem:[#allocation4] ss:$16 sps:$4 sm:$0xff]   ;;  %v3597_v33 = vld [vmem:[#allocation4 + $0x8] ss:$16 sps:$4 sm:$0xff]   ;;  %v3607_v34 = vld [vmem:[#allocation6 + $0xe4] ss:$16 sps:$4 sm:$0xff]  }
  0x31   :  { %445 = vmatprep.subr.bf16.mxu1 %v3539_v14  ;;  %v3609_v35 = vld [vmem:[#allocation6 + $0xec] ss:$16 sps:$4 sm:$0xff]   ;;  %v3611_v36 = vld [vmem:[#allocation6 + $0xe0] ss:$16 sps:$4 sm:$0xff]   ;;  %v3613_v37 = vld [vmem:[#allocation6 + $0xe8] ss:$16 sps:$4 sm:$0xff]  }
  0x32   :  { %v3619_v38 = vld [vmem:[#allocation6 + $0xc4] ss:$16 sps:$4 sm:$0xff]   ;;  %v3621_v39 = vld [vmem:[#allocation6 + $0xcc] ss:$16 sps:$4 sm:$0xff]   ;;  %v3623_v40 = vld [vmem:[#allocation6 + $0xc0] ss:$16 sps:$4 sm:$0xff]  }
  0x33   :  { %405 = vmatpush1.bf16.msra.mxu0 %v3541_v15  ;;  %v3625_v41 = vld [vmem:[#allocation6 + $0xc8] ss:$16 sps:$4 sm:$0xff]   ;;  %v3631_v42 = vld [vmem:[#allocation6 + $0xa4] ss:$16 sps:$4 sm:$0xff]   ;;  %v3633_v43 = vld [vmem:[#allocation6 + $0xac] ss:$16 sps:$4 sm:$0xff]  }
  0x34   :  { %446 = vmatpush1.bf16.msra.mxu1 %v3545_v16  ;;  %406 = vmatprep.subr.bf16.mxu0 %v3547_v17  ;;  %v3635_v44 = vld [vmem:[#allocation6 + $0xa0] ss:$16 sps:$4 sm:$0xff]   ;;  %v3637_v45 = vld [vmem:[#allocation6 + $0xa8] ss:$16 sps:$4 sm:$0xff]   ;;  %v3643_v46 = vld [vmem:[#allocation6 + $0x84] ss:$16 sps:$4 sm:$0xff]  }
  0x35   :  { %447 = vmatprep.subr.bf16.mxu1 %v3551_v18  ;;  %5496 = vst [vmem:[#allocation12_spill] sm:$0xff] %v3637_v45  ;;  %5497 = vst [vmem:[#allocation13_spill] sm:$0xff] %v3643_v46  ;;  %v3645_v47 = vld [vmem:[#allocation6 + $0x8c] ss:$16 sps:$4 sm:$0xff]   ;;  %v3647_v48 = vld [vmem:[#allocation6 + $0x80] ss:$16 sps:$4 sm:$0xff]  }
  0x36   :  { %5498 = vst [vmem:[#allocation14_spill] sm:$0xff] %v3645_v47  ;;  %5499 = vst [vmem:[#allocation15_spill] sm:$0xff] %v3647_v48  ;;  %v3649_v49 = vld [vmem:[#allocation6 + $0x88] ss:$16 sps:$4 sm:$0xff]   ;;  %v3655_v50 = vld [vmem:[#allocation6 + $0x64] ss:$16 sps:$4 sm:$0xff]  }
  0x37   :  { %407 = vmatpush1.bf16.msra.mxu0 %v3553_v19  ;;  %5500 = vst [vmem:[#allocation16_spill] sm:$0xff] %v3649_v49  ;;  %5501 = vst [vmem:[#allocation17_spill] sm:$0xff] %v3655_v50  ;;  %v3657_v51 = vld [vmem:[#allocation6 + $0x6c] ss:$16 sps:$4 sm:$0xff]   ;;  %v3659_v52 = vld [vmem:[#allocation6 + $0x60] ss:$16 sps:$4 sm:$0xff]  }
  0x38   :  { %448 = vmatpush1.bf16.msra.mxu1 %v3555_v20  ;;  %408 = vmatprep.subr.bf16.mxu0 %v3559_v21  ;;  %5502 = vst [vmem:[#allocation18_spill] sm:$0xff] %v3657_v51  ;;  %5503 = vst [vmem:[#allocation19_spill] sm:$0xff] %v3659_v52  ;;  %v3661_v53 = vld [vmem:[#allocation6 + $0x68] ss:$16 sps:$4 sm:$0xff]   ;;  %v3667_v54 = vld [vmem:[#allocation6 + $0x44] ss:$16 sps:$4 sm:$0xff]  }
  0x39   :  { %449 = vmatprep.subr.bf16.mxu1 %v3563_v22  ;;  %5504 = vst [vmem:[#allocation20_spill] sm:$0xff] %v3661_v53  ;;  %5505 = vst [vmem:[#allocation21_spill] sm:$0xff] %v3667_v54  ;;  %v3669_v55 = vld [vmem:[#allocation6 + $0x4c] ss:$16 sps:$4 sm:$0xff]   ;;  %v3671_v56 = vld [vmem:[#allocation6 + $0x40] ss:$16 sps:$4 sm:$0xff]  }
  0x3a   :  { %5506 = vst [vmem:[#allocation22_spill] sm:$0xff] %v3669_v55  ;;  %5507 = vst [vmem:[#allocation23_spill] sm:$0xff] %v3671_v56  ;;  %v3673_v57 = vld [vmem:[#allocation6 + $0x48] ss:$16 sps:$4 sm:$0xff]   ;;  %v3679_v58 = vld [vmem:[#allocation6 + $0x24] ss:$16 sps:$4 sm:$0xff]  }
  0x3b   :  { %409 = vmatpush1.bf16.msra.mxu0 %v3567_v23  ;;  %5508 = vst [vmem:[#allocation24_spill] sm:$0xff] %v3673_v57  ;;  %5509 = vst [vmem:[#allocation25_spill] sm:$0xff] %v3679_v58  ;;  %v3681_v59 = vld [vmem:[#allocation6 + $0x2c] ss:$16 sps:$4 sm:$0xff]   ;;  %v3683_v60 = vld [vmem:[#allocation6 + $0x20] ss:$16 sps:$4 sm:$0xff]  }
  0x3c   :  { %450 = vmatpush1.bf16.msra.mxu1 %v3569_v24  ;;  %410 = vmatprep.subr.bf16.mxu0 %v3573_v25  ;;  %5510 = vst [vmem:[#allocation26_spill] sm:$0xff] %v3681_v59  ;;  %5511 = vst [vmem:[#allocation27_spill] sm:$0xff] %v3683_v60  ;;  %v3685_v61 = vld [vmem:[#allocation6 + $0x28] ss:$16 sps:$4 sm:$0xff]   ;;  %v3691_v62 = vld [vmem:[#allocation6 + $0x4] ss:$16 sps:$4 sm:$0xff]  }
  0x3d   :  { %451 = vmatprep.subr.bf16.mxu1 %v3575_v26  ;;  %5512 = vst [vmem:[#allocation28_spill] sm:$0xff] %v3685_v61  ;;  %5513 = vst [vmem:[#allocation29_spill] sm:$0xff] %v3691_v62  ;;  %v3693_v63 = vld [vmem:[#allocation6 + $0xc] ss:$16 sps:$4 sm:$0xff]  }
  0x3e   :  { %5514 = vst [vmem:[#allocation30_spill] sm:$0xff] %v3693_v63 }
  0x3f   :  { %411 = vmatpush1.bf16.msra.mxu0 %v3582_v28 }
  0x40   :  { %452 = vmatpush1.bf16.msra.mxu1 %v3584_v29  ;;  %412 = vmatprep.subr.bf16.mxu0 %v3587_v30 }
  0x41   :  { %453 = vmatprep.subr.bf16.mxu1 %v3589_v31 }
  0x43   :  { %413 = vmatpush1.bf16.msra.mxu0 %v3595_v32 }
  0x44   :  { %454 = vmatpush1.bf16.msra.mxu1 %v3597_v33  ;;  %897 = vmatprep.subr.bf16.mxu0 %v3607_v34 }
  0x45   :  { %938 = vmatprep.subr.bf16.mxu1 %v3609_v35 }
  0x46   :  { %431 = vmatmul.mubr.bf16.vlgmr.msra.gmra.mxu0 %v5128_v0 }
  0x47   :  { %472 = vmatmul.mubr.bf16.vlgmr.msra.gmra.mxu1 %v5128_v0  ;;  %898 = vmatpush1.bf16.msra.mxu0 %v3611_v36  ;;  %v3695_v0 = vld [vmem:[#allocation6] ss:$16 sps:$4 sm:$0xff]  }
  0x48   :  { %939 = vmatpush1.bf16.msra.mxu1 %v3613_v37  ;;  %899 = vmatprep.subr.bf16.mxu0 %v3619_v38  ;;  %5515 = vst [vmem:[#allocation31_spill] sm:$0xff] %v3695_v0 }
  0x49   :  { %940 = vmatprep.subr.bf16.mxu1 %v3621_v39 }
  0x4b   :  { %900 = vmatpush1.bf16.msra.mxu0 %v3623_v40 }
  0x4c   :  { %941 = vmatpush1.bf16.msra.mxu1 %v3625_v41  ;;  %901 = vmatprep.subr.bf16.mxu0 %v3631_v42 }
  0x4d   :  { %942 = vmatprep.subr.bf16.mxu1 %v3633_v43 }
  0x4f   :  { %902 = vmatpush1.bf16.msra.mxu0 %v3635_v44 }
  0x50   :  { %943 = vmatpush1.bf16.msra.mxu1 %v3637_v45  ;;  %903 = vmatprep.subr.bf16.mxu0 %v3643_v46 }
  0x51   :  { %944 = vmatprep.subr.bf16.mxu1 %v3645_v47 }
  0x53   :  { %904 = vmatpush1.bf16.msra.mxu0 %v3647_v48 }
  0x54   :  { %945 = vmatpush1.bf16.msra.mxu1 %v3649_v49  ;;  %905 = vmatprep.subr.bf16.mxu0 %v3655_v50 }
  0x55   :  { %946 = vmatprep.subr.bf16.mxu1 %v3657_v51 }
  0x57   :  { %906 = vmatpush1.bf16.msra.mxu0 %v3659_v52 }
  0x58   :  { %947 = vmatpush1.bf16.msra.mxu1 %v3661_v53  ;;  %907 = vmatprep.subr.bf16.mxu0 %v3667_v54 }
  0x59   :  { %948 = vmatprep.subr.bf16.mxu1 %v3669_v55  ;;  %v3762_v55 = vld [vmem:[#allocation6 + $0x14c] ss:$16 sps:$4 sm:$0xff]  }
  0x5a   :  { %5538 = vst [vmem:[#allocation54_spill] sm:$0xff] %v3762_v55 }
  0x5b   :  { %908 = vmatpush1.bf16.msra.mxu0 %v3671_v56  ;;  %v3737_v56 = vld [vmem:[#allocation6 + $0x184] ss:$16 sps:$4 sm:$0xff]  }
  0x5c   :  { %949 = vmatpush1.bf16.msra.mxu1 %v3673_v57  ;;  %909 = vmatprep.subr.bf16.mxu0 %v3679_v58  ;;  %v3697_v57 = vld [vmem:[#allocation6 + $0x8] ss:$16 sps:$4 sm:$0xff]   ;;  %5529 = vst [vmem:[#allocation45_spill] sm:$0xff] %v3737_v56 }
  0x5d   :  { %950 = vmatprep.subr.bf16.mxu1 %v3681_v59  ;;  %5516 = vst [vmem:[#allocation32_spill] sm:$0xff] %v3697_v57  ;;  %v3703_v59 = vld [vmem:[#allocation6 + $0x1e4] ss:$16 sps:$4 sm:$0xff]   ;;  %v3709_v58 = vld [vmem:[#allocation6 + $0x1e8] ss:$16 sps:$4 sm:$0xff]  }
  0x5e   :  { %5517 = vst [vmem:[#allocation33_spill] sm:$0xff] %v3703_v59  ;;  %5520 = vst [vmem:[#allocation36_spill] sm:$0xff] %v3709_v58 }
  0x5f   :  { %910 = vmatpush1.bf16.msra.mxu0 %v3683_v60  ;;  %v3705_v60 = vld [vmem:[#allocation6 + $0x1ec] ss:$16 sps:$4 sm:$0xff]  }
  0x60   :  { %951 = vmatpush1.bf16.msra.mxu1 %v3685_v61  ;;  %911 = vmatprep.subr.bf16.mxu0 %v3691_v62  ;;  %5518 = vst [vmem:[#allocation34_spill] sm:$0xff] %v3705_v60  ;;  %v3707_v61 = vld [vmem:[#allocation6 + $0x1e0] ss:$16 sps:$4 sm:$0xff]   ;;  %v3721_v62 = vld [vmem:[#allocation6 + $0x1c8] ss:$16 sps:$4 sm:$0xff]  }
  0x61   :  { %952 = vmatprep.subr.bf16.mxu1 %v3693_v63  ;;  %5519 = vst [vmem:[#allocation35_spill] sm:$0xff] %v3707_v61  ;;  %v3715_v63 = vld [vmem:[#allocation6 + $0x1c4] ss:$16 sps:$4 sm:$0xff]   ;;  %5524 = vst [vmem:[#allocation40_spill] sm:$0xff] %v3721_v62 }
  0x62   :  { %5521 = vst [vmem:[#allocation37_spill] sm:$0xff] %v3715_v63 }
  0x63   :  { %912 = vmatpush1.bf16.msra.mxu0 %v3695_v0  ;;  %v3717_v0 = vld [vmem:[#allocation6 + $0x1cc] ss:$16 sps:$4 sm:$0xff]  }
  0x64   :  { %953 = vmatpush1.bf16.msra.mxu1 %v3697_v57  ;;  %913 = vmatprep.subr.bf16.mxu0 %v3703_v59  ;;  %5522 = vst [vmem:[#allocation38_spill] sm:$0xff] %v3717_v0  ;;  %v3719_v57 = vld [vmem:[#allocation6 + $0x1c0] ss:$16 sps:$4 sm:$0xff]   ;;  %v3733_v59 = vld [vmem:[#allocation6 + $0x1a8] ss:$16 sps:$4 sm:$0xff]  }
  0x65   :  { %954 = vmatprep.subr.bf16.mxu1 %v3705_v60  ;;  %5523 = vst [vmem:[#allocation39_spill] sm:$0xff] %v3719_v57  ;;  %v3727_v60 = vld [vmem:[#allocation6 + $0x1a4] ss:$16 sps:$4 sm:$0xff]   ;;  %5528 = vst [vmem:[#allocation44_spill] sm:$0xff] %v3733_v59 }
  0x66   :  { %5525 = vst [vmem:[#allocation41_spill] sm:$0xff] %v3727_v60 }
  0x67   :  { %914 = vmatpush2.bf16.msra.mxu0 %v3707_v61  ;;  %v3729_v61 = vld [vmem:[#allocation6 + $0x1ac] ss:$16 sps:$4 sm:$0xff]  }
  0x68   :  { %955 = vmatpush2.bf16.msra.mxu1 %v3709_v58  ;;  %915 = vmatprep.subr.bf16.mxu0 %v3715_v63  ;;  %5526 = vst [vmem:[#allocation42_spill] sm:$0xff] %v3729_v61  ;;  %v3731_v58 = vld [vmem:[#allocation6 + $0x1a0] ss:$16 sps:$4 sm:$0xff]   ;;  %v3739_v63 = vld [vmem:[#allocation6 + $0x18c] ss:$16 sps:$4 sm:$0xff]  }
  0x69   :  { %956 = vmatprep.subr.bf16.mxu1 %v3717_v0  ;;  %5527 = vst [vmem:[#allocation43_spill] sm:$0xff] %v3731_v58  ;;  %5530 = vst [vmem:[#allocation46_spill] sm:$0xff] %v3739_v63  ;;  %v3749_v0 = vld [vmem:[#allocation6 + $0x164] ss:$16 sps:$4 sm:$0xff]  }
  0x6a   :  { %5533 = vst [vmem:[#allocation49_spill] sm:$0xff] %v3749_v0 }
  0x6b   :  { %916 = vmatpush2.bf16.msra.mxu0 %v3719_v57  ;;  %v3745_v57 = vld [vmem:[#allocation6 + $0x188] ss:$16 sps:$4 sm:$0xff]  }
  0x6c   :  { %957 = vmatpush2.bf16.msra.mxu1 %v3721_v62  ;;  %917 = vmatprep.subr.bf16.mxu0 %v3727_v60  ;;  %v3743_v62 = vld [vmem:[#allocation6 + $0x180] ss:$16 sps:$4 sm:$0xff]   ;;  %5532 = vst [vmem:[#allocation48_spill] sm:$0xff] %v3745_v57  ;;  %v3751_v60 = vld [vmem:[#allocation6 + $0x16c] ss:$16 sps:$4 sm:$0xff]  }
  0x6d   :  { %958 = vmatprep.subr.bf16.mxu1 %v3729_v61  ;;  %5531 = vst [vmem:[#allocation47_spill] sm:$0xff] %v3743_v62  ;;  %5534 = vst [vmem:[#allocation50_spill] sm:$0xff] %v3751_v60  ;;  %v3755_v61 = vld [vmem:[#allocation6 + $0x160] ss:$16 sps:$4 sm:$0xff]  }
  0x6e   :  { %5535 = vst [vmem:[#allocation51_spill] sm:$0xff] %v3755_v61 }
  0x6f   :  { %918 = vmatpush2.bf16.msra.mxu0 %v3731_v58  ;;  %v3757_v58 = vld [vmem:[#allocation6 + $0x168] ss:$16 sps:$4 sm:$0xff]  }
  0x70   :  { %959 = vmatpush2.bf16.msra.mxu1 %v3733_v59  ;;  %919 = vmatprep.subr.bf16.mxu0 %v3737_v56  ;;  %5536 = vst [vmem:[#allocation52_spill] sm:$0xff] %v3757_v58  ;;  %v3760_v59 = vld [vmem:[#allocation6 + $0x144] ss:$16 sps:$4 sm:$0xff]   ;;  %v3775_v56 = vld [vmem:[#allocation6 + $0x12c] ss:$16 sps:$4 sm:$0xff]  }
  0x71   :  { %960 = vmatprep.subr.bf16.mxu1 %v3739_v63  ;;  %5537 = vst [vmem:[#allocation53_spill] sm:$0xff] %v3760_v59  ;;  %v3458_v63 = vmov 0.0|0.0   ;;  %5542 = vst [vmem:[#allocation58_spill] sm:$0xff] %v3775_v56 }
  0x72   :  { %929 = vmatprep.mubr.bf16.mxu0 %v3458_v63  ;;  %970 = vmatprep.mubr.bf16.mxu1 %v3458_v63  ;;  %v3791_v63 = vld [vmem:[#allocation6 + $0x100] ss:$16 sps:$4 sm:$0xff]  }
  0x73   :  { %920 = vmatpush2.bf16.msra.mxu0 %v3743_v62  ;;  %v3767_v62 = vld [vmem:[#allocation6 + $0x140] ss:$16 sps:$4 sm:$0xff]   ;;  %5547 = vst [vmem:[#allocation63_spill] sm:$0xff] %v3791_v63 }
  0x74   :  { %961 = vmatpush2.bf16.msra.mxu1 %v3745_v57  ;;  %921 = vmatprep.subr.bf16.mxu0 %v3749_v0  ;;  %5539 = vst [vmem:[#allocation55_spill] sm:$0xff] %v3767_v62  ;;  %v3769_v57 = vld [vmem:[#allocation6 + $0x148] ss:$16 sps:$4 sm:$0xff]   ;;  %v3773_v0 = vld [vmem:[#allocation6 + $0x124] ss:$16 sps:$4 sm:$0xff]  }
  0x75   :  { %962 = vmatprep.subr.bf16.mxu1 %v3751_v60  ;;  %5540 = vst [vmem:[#allocation56_spill] sm:$0xff] %v3769_v57  ;;  %5541 = vst [vmem:[#allocation57_spill] sm:$0xff] %v3773_v0 }
  0x77   :  { %922 = vmatpush2.bf16.msra.mxu0 %v3755_v61  ;;  %v3779_v61 = vld [vmem:[#allocation6 + $0x120] ss:$16 sps:$4 sm:$0xff]  }
  0x78   :  { %963 = vmatpush2.bf16.msra.mxu1 %v3757_v58  ;;  %923 = vmatprep.subr.bf16.mxu0 %v3760_v59  ;;  %5543 = vst [vmem:[#allocation59_spill] sm:$0xff] %v3779_v61  ;;  %v3781_v58 = vld [vmem:[#allocation6 + $0x128] ss:$16 sps:$4 sm:$0xff]   ;;  %v3785_v59 = vld [vmem:[#allocation6 + $0x104] ss:$16 sps:$4 sm:$0xff]  }
  0x79   :  { %964 = vmatprep.subr.bf16.mxu1 %v3762_v55  ;;  %5544 = vst [vmem:[#allocation60_spill] sm:$0xff] %v3781_v58  ;;  %5545 = vst [vmem:[#allocation61_spill] sm:$0xff] %v3785_v59  ;;  %v3787_v55 = vld [vmem:[#allocation6 + $0x10c] ss:$16 sps:$4 sm:$0xff]  }
  0x7a   :  { %5546 = vst [vmem:[#allocation62_spill] sm:$0xff] %v3787_v55 }
  0x7b   :  { %924 = vmatpush2.bf16.msra.mxu0 %v3767_v62  ;;  %v3793_v62 = vld [vmem:[#allocation6 + $0x108] ss:$16 sps:$4 sm:$0xff]  }
  0x7c   :  { %965 = vmatpush2.bf16.msra.mxu1 %v3769_v57  ;;  %925 = vmatprep.subr.bf16.mxu0 %v3773_v0  ;;  %5548 = vst [vmem:[#allocation64_spill] sm:$0xff] %v3793_v62  ;;  %v57_v57 = vld [vmem:[#allocation2] ss:$8 sm:$0xf] }
  0x7d   :  { %966 = vmatprep.subr.bf16.mxu1 %v3775_v56  ;;  %v3459_v56 = vmov 1  }
  0x7e   :  { %2782 = vset.pattern.permute.xlu0 %v3459_v56 }
  0x7f   :  { %926 = vmatpush2.bf16.msra.mxu0 %v3779_v61  ;;  %123 = vperm.xlu0 %2782, %v3580_v27  }
  0x80   :  { %967 = vmatpush2.bf16.msra.mxu1 %v3781_v58  ;;  %927 = vmatprep.subr.bf16.mxu0 %v3785_v59  ;;  %v73_v58 = vlaneseq }
  0x81   :  { %968 = vmatprep.subr.bf16.mxu1 %v3787_v55 }
  0x82   :  { %v74_v61 = vshrl.u32 %v73_v58, 7 }
  0x83   :  { %928 = vmatpush2.bf16.msra.mxu0 %v3791_v63 }
  0x84   :  { %969 = vmatpush2.bf16.msra.mxu1 %v3793_v62  ;;  %1029 = vmatprep.subr.bf16.mxu0 %v3503_v1  ;;  %v3802_v0 = vsub.s32 0, %v74_v61  ;;  %v3804_v59 = vsub.s32 1, %v74_v61  ;;  %v59_v62 = vld [vmem:[#allocation2 + $0x1] ss:$8 sm:$0xf]  ;;  %v3820_v60 = vsub.s32 3, %v74_v61 }
  0x85   :  { %1070 = vmatprep.subr.bf16.mxu1 %v3505_v2  ;;  %v3827_v49 = vsub.s32 2, %v74_v61 }
  0x86   :  { %5549 = vst [vmem:[#allocation65_spill] sm:$0xff] %v3802_v0  ;;  %5550 = vst [vmem:[#allocation66_spill] sm:$0xff] %v3804_v59  ;;  %v3807_v55 = vrot.slane %v57_v57, %v3802_v0  ;;  %v3810_v1 = vrot.slane %v57_v57, %v3804_v59  ;;  %v3814_v56 = vrot.slane %v59_v62, %v3802_v0 }
  0x87   :  { %v3818_v27 = vrot.slane %v59_v62, %v3804_v59  ;;  %v3825_v50 = vrot.slane %v57_v57, %v3820_v60  ;;  %v3831_v46 = vrot.slane %v59_v62, %v3820_v60 }
  0x88   :  { %5551 = vst [vmem:[#allocation67_spill] sm:$0xff] %v3807_v55  ;;  %5552 = vst [vmem:[#allocation68_spill] sm:$0xff] %v3810_v1 }
  0x89   :  { %5553 = vst [vmem:[#allocation69_spill] sm:$0xff] %v3814_v56  ;;  %5554 = vst [vmem:[#allocation70_spill] sm:$0xff] %v3818_v27 }
  0x8a   :  { %5555 = vst [vmem:[#allocation71_spill] sm:$0xff] %v3825_v50 }
  0xaa   :  { %v70_v63 = vpop.permute.xlu0 %69 }
  0xab   :  { %v93_v2 = vmul.f32 %v3807_v55, %v70_v63  ;;  %v94_v58 = vmul.f32 %v3810_v1, %v70_v63  ;;  %v96_v59 = vmul.f32 %v3825_v50, %v70_v63 }
  0xad   :  { %v118_v54 = vadd.f32 %v3814_v56, %v93_v2  ;;  %v119_v53 = vadd.f32 %v3818_v27, %v94_v58  ;;  %v3834_v27 = vrot.slane %v57_v57, %v3827_v49 }
  0xaf   :  { %5556 = vst [vmem:[#allocation72_spill] sm:$0xff] %v3834_v27 }
 0x106   :  { %v432_v52 = vpop.f32.mrf.mxu0 }
 0x107   :  { %v473_v51 = vpop.f32.mrf.mxu1  ;;  %v480_v55 = vadd.f32 %v432_v52, %v118_v54  ;;  %v121_v54 = vadd.f32 %v3831_v46, %v96_v59 }
 0x108   :  { %v434_v0 = vpop.f32.mrf.mxu0 }
 0x109   :  { %v475_v48 = vpop.f32.mrf.mxu1  ;;  %v2655_v1 = vmul.f32 -1.442695, %v480_v55  ;;  %v481_v47 = vadd.f32 %v434_v0, %v119_v53  ;;  %v95_v55 = vmul.f32 %v3834_v27, %v70_v63  ;;  %v3839_v0 = vrot.slane %v59_v62, %v3827_v49 }
 0x10a   :  { %v436_v2 = vpop.f32.mrf.mxu0  ;;  %v483_v53 = vadd.f32 %v475_v48, %v121_v54 }
 0x10b   :  { %v477_v56 = vpop.f32.mrf.mxu1  ;;  %2934 = vpow2.f32 %v2655_v1  ;;  %v2656_v58 = vmul.f32 -1.442695, %v481_v47  ;;  %v120_v61 = vadd.f32 %v3839_v0, %v95_v55 }
 0x10c   :  { %v437_v45 = vpop.f32.mrf.mxu0  ;;  %v2657_v2 = vmul.f32 -1.442695, %v483_v53  ;;  %v3845_v53 = vld [vmem:[#allocation2 + $0x3] ss:$0 sm:$0xff] }
 0x10d   :  { %v478_v52 = vpop.f32.mrf.mxu1  ;;  %2936 = vpow2.f32 %v2656_v58  ;;  %v482_v1 = vadd.f32 %v473_v51, %v120_v61  ;;  %v3847_v61 = vld [vmem:[#allocation2 + $0xb] ss:$0 sm:$0xff] }
 0x10e   :  { %2938 = vpow2.f32 %v2657_v2 }
 0x118   :  { %v2935_v56 = vpop.eup %2934 }
 0x119   :  { %v487_v47 = vadd.f32 1.0, %v2935_v56 }
 0x11a   :  { %v2937_v50 = vpop.eup %2936 }
 0x11b   :  { %2940 = vrcp.f32 %v487_v47  ;;  %v493_v45 = vadd.f32 1.0, %v2937_v50  ;;  %v2939_v57 = vpop.eup %2938  ;;  %v5585_v47 = vld [vmem:[#allocation39_spill] sm:$0xff] }
 0x11c   :  { %2942 = vtanh.f32 %v482_v1  ;;  %v500_v52 = vadd.f32 1.0, %v2939_v57  ;;  %v5587_v57 = vld [vmem:[#allocation41_spill] sm:$0xff] }
 0x11d   :  { %2944 = vrcp.f32 %v493_v45  ;;  %v5586_v45 = vld [vmem:[#allocation40_spill] sm:$0xff] }
 0x11e   :  { %2946 = vrcp.f32 %v500_v52  ;;  %v5591_v52 = vld [vmem:[#allocation45_spill] sm:$0xff] }
 0x128   :  { %v2941_v59 = vpop.eup %2940 }
 0x129   :  { %v2943_v58 = vpop.eup %2942 }
 0x12a   :  { %v2945_v63 = vpop.eup %2944  ;;  %v504_v27 = vmul.f32 %v2943_v58, %v2941_v59  ;;  %v5588_v59 = vld [vmem:[#allocation42_spill] sm:$0xff]  ;;  %v5589_v58 = vld [vmem:[#allocation43_spill] sm:$0xff] }
 0x12b   :  { %v503_v62 = vmul.f32 0.0, %v2945_v63  ;;  %v2947_v51 = vpop.eup %2946  ;;  %v5590_v63 = vld [vmem:[#allocation44_spill] sm:$0xff] }
 0x12d   :  { %v3842_v48 = vadd.f32 %v504_v27, %v503_v62  ;;  %v5557_v27 = vmov 0   ;;  %v5592_v62 = vld [vmem:[#allocation46_spill] sm:$0xff] }
 0x12f   :  { %2948 = vtanh.f32 %v3842_v48 }
 0x13c   :  { %v2949_v54 = vpop.eup %2948 }
 0x13d   :  { %v507_v55 = vmul.f32 %v2949_v54, %v2947_v51  ;;  %v5593_v51 = vld [vmem:[#allocation47_spill] sm:$0xff]  ;;  %v5594_v54 = vld [vmem:[#allocation48_spill] sm:$0xff] }
 0x13f   :  { %v508_v50 = vmax.f32 %v507_v55, 0.0 }
 0x141   :  { %v509_v2 = vmul.f32 %v508_v50, %v3845_v53  ;;  %v5596_v50 = vld [vmem:[#allocation50_spill] sm:$0xff] }
 0x143   :  { %v510_v56 = vadd.f32 %v509_v2, %v3847_v61  ;;  %v5597_v2 = vld [vmem:[#allocation51_spill] sm:$0xff] }
 0x145   :  { %v511_v1 = vpack.c.bf16 %v510_v56, %v510_v56  ;;  %v5598_v56 = vld [vmem:[#allocation52_spill] sm:$0xff] }
 0x147   :  { %930 = vmatmul.mubr.bf16.vlgmr.msra.gmra.mxu0 %v511_v1  ;;  %971 = vmatmul.mubr.bf16.vlgmr.msra.gmra.mxu1 %v511_v1  ;;  %v5599_v1 = vld [vmem:[#allocation53_spill] sm:$0xff] }
 0x148   :  { %1030 = vmatpush1.bf16.msra.mxu0 %v3508_v3  ;;  %1071 = vmatpush1.bf16.msra.mxu1 %v3510_v4  ;;  %v1028_v3 = vpack.c.bf16 %v507_v55, %v507_v55  ;;  %v5558_v4 = vld [vmem:[#allocation12_spill] sm:$0xff]  ;;  %v5595_v55 = vld [vmem:[#allocation49_spill] sm:$0xff] }
 0x149   :  { %1031 = vmatprep.subr.bf16.mxu0 %v3513_v5  ;;  %1072 = vmatprep.subr.bf16.mxu1 %v3517_v6  ;;  %v5559_v5 = vld [vmem:[#allocation13_spill] sm:$0xff]  ;;  %v5560_v6 = vld [vmem:[#allocation14_spill] sm:$0xff] }
 0x14a   :  { %1061 = vmatprep.mubr.bf16.mxu0 %v5557_v27  ;;  %1102 = vmatprep.mubr.bf16.mxu1 %v5557_v27 }
 0x14c   :  { %1032 = vmatpush1.bf16.msra.mxu0 %v3519_v7  ;;  %1073 = vmatpush1.bf16.msra.mxu1 %v3522_v8  ;;  %v5561_v7 = vld [vmem:[#allocation15_spill] sm:$0xff]  ;;  %v5562_v8 = vld [vmem:[#allocation16_spill] sm:$0xff] }
 0x14d   :  { %1033 = vmatprep.subr.bf16.mxu0 %v3525_v9  ;;  %1074 = vmatprep.subr.bf16.mxu1 %v3527_v10  ;;  %v5563_v9 = vld [vmem:[#allocation17_spill] sm:$0xff]  ;;  %v5564_v10 = vld [vmem:[#allocation18_spill] sm:$0xff] }
 0x150   :  { %1034 = vmatpush1.bf16.msra.mxu0 %v3529_v11  ;;  %1075 = vmatpush1.bf16.msra.mxu1 %v3531_v12  ;;  %v5565_v11 = vld [vmem:[#allocation19_spill] sm:$0xff]  ;;  %v5566_v12 = vld [vmem:[#allocation20_spill] sm:$0xff] }
 0x151   :  { %1035 = vmatprep.subr.bf16.mxu0 %v3535_v13  ;;  %1076 = vmatprep.subr.bf16.mxu1 %v3539_v14  ;;  %v5567_v13 = vld [vmem:[#allocation21_spill] sm:$0xff]  ;;  %v5568_v14 = vld [vmem:[#allocation22_spill] sm:$0xff] }
 0x154   :  { %1036 = vmatpush1.bf16.msra.mxu0 %v3541_v15  ;;  %1077 = vmatpush1.bf16.msra.mxu1 %v3545_v16  ;;  %v5569_v15 = vld [vmem:[#allocation23_spill] sm:$0xff]  ;;  %v5570_v16 = vld [vmem:[#allocation24_spill] sm:$0xff] }
 0x155   :  { %1037 = vmatprep.subr.bf16.mxu0 %v3547_v17  ;;  %1078 = vmatprep.subr.bf16.mxu1 %v3551_v18  ;;  %v5571_v17 = vld [vmem:[#allocation25_spill] sm:$0xff]  ;;  %v5572_v18 = vld [vmem:[#allocation26_spill] sm:$0xff] }
 0x158   :  { %1038 = vmatpush1.bf16.msra.mxu0 %v3553_v19  ;;  %1079 = vmatpush1.bf16.msra.mxu1 %v3555_v20  ;;  %v5573_v19 = vld [vmem:[#allocation27_spill] sm:$0xff]  ;;  %v5574_v20 = vld [vmem:[#allocation28_spill] sm:$0xff] }
 0x159   :  { %1039 = vmatprep.subr.bf16.mxu0 %v3559_v21  ;;  %1080 = vmatprep.subr.bf16.mxu1 %v3563_v22  ;;  %v5575_v21 = vld [vmem:[#allocation29_spill] sm:$0xff]  ;;  %v5576_v22 = vld [vmem:[#allocation30_spill] sm:$0xff] }
 0x15c   :  { %1040 = vmatpush1.bf16.msra.mxu0 %v3567_v23  ;;  %1081 = vmatpush1.bf16.msra.mxu1 %v3569_v24  ;;  %v5577_v23 = vld [vmem:[#allocation31_spill] sm:$0xff]  ;;  %v5578_v24 = vld [vmem:[#allocation32_spill] sm:$0xff] }
 0x15d   :  { %1041 = vmatprep.subr.bf16.mxu0 %v3573_v25  ;;  %1082 = vmatprep.subr.bf16.mxu1 %v3575_v26  ;;  %v5579_v25 = vld [vmem:[#allocation33_spill] sm:$0xff]  ;;  %v5580_v26 = vld [vmem:[#allocation34_spill] sm:$0xff] }
 0x160   :  { %1042 = vmatpush1.bf16.msra.mxu0 %v3582_v28  ;;  %1083 = vmatpush1.bf16.msra.mxu1 %v3584_v29  ;;  %v5581_v28 = vld [vmem:[#allocation35_spill] sm:$0xff]  ;;  %v5582_v29 = vld [vmem:[#allocation36_spill] sm:$0xff] }
 0x161   :  { %1043 = vmatprep.subr.bf16.mxu0 %v3587_v30  ;;  %1084 = vmatprep.subr.bf16.mxu1 %v3589_v31  ;;  %v5583_v30 = vld [vmem:[#allocation37_spill] sm:$0xff]  ;;  %v5584_v31 = vld [vmem:[#allocation38_spill] sm:$0xff] }
 0x164   :  { %1044 = vmatpush1.bf16.msra.mxu0 %v3595_v32  ;;  %1085 = vmatpush1.bf16.msra.mxu1 %v3597_v33 }
 0x165   :  { %1144 = vmatprep.subr.bf16.mxu0 %v3607_v34  ;;  %1185 = vmatprep.subr.bf16.mxu1 %v3609_v35 }
 0x167   :  { %1062 = vmatmul.mubr.bf16.vlgmr.msra.gmra.mxu0 %v1028_v3  ;;  %1103 = vmatmul.mubr.bf16.vlgmr.msra.gmra.mxu1 %v1028_v3  ;;  %v5600_v3 = vld [vmem:[#allocation54_spill] sm:$0xff] }
 0x168   :  { %1145 = vmatpush1.bf16.msra.mxu0 %v3611_v36  ;;  %1186 = vmatpush1.bf16.msra.mxu1 %v3613_v37 }
 0x169   :  { %1146 = vmatprep.subr.bf16.mxu0 %v3619_v38  ;;  %1187 = vmatprep.subr.bf16.mxu1 %v3621_v39 }
 0x16c   :  { %1147 = vmatpush1.bf16.msra.mxu0 %v3623_v40  ;;  %1188 = vmatpush1.bf16.msra.mxu1 %v3625_v41 }
 0x16d   :  { %1148 = vmatprep.subr.bf16.mxu0 %v3631_v42  ;;  %1189 = vmatprep.subr.bf16.mxu1 %v3633_v43 }
 0x170   :  { %1149 = vmatpush1.bf16.msra.mxu0 %v3635_v44  ;;  %1190 = vmatpush1.bf16.msra.mxu1 %v5558_v4 }
 0x171   :  { %1150 = vmatprep.subr.bf16.mxu0 %v5559_v5  ;;  %1191 = vmatprep.subr.bf16.mxu1 %v5560_v6 }
 0x174   :  { %1151 = vmatpush1.bf16.msra.mxu0 %v5561_v7  ;;  %1192 = vmatpush1.bf16.msra.mxu1 %v5562_v8 }
 0x175   :  { %1152 = vmatprep.subr.bf16.mxu0 %v5563_v9  ;;  %1193 = vmatprep.subr.bf16.mxu1 %v5564_v10 }
 0x178   :  { %1153 = vmatpush1.bf16.msra.mxu0 %v5565_v11  ;;  %1194 = vmatpush1.bf16.msra.mxu1 %v5566_v12 }
 0x179   :  { %1154 = vmatprep.subr.bf16.mxu0 %v5567_v13  ;;  %1195 = vmatprep.subr.bf16.mxu1 %v5568_v14 }
 0x17c   :  { %1155 = vmatpush1.bf16.msra.mxu0 %v5569_v15  ;;  %1196 = vmatpush1.bf16.msra.mxu1 %v5570_v16 }
 0x17d   :  { %1156 = vmatprep.subr.bf16.mxu0 %v5571_v17  ;;  %1197 = vmatprep.subr.bf16.mxu1 %v5572_v18 }
 0x180   :  { %1157 = vmatpush1.bf16.msra.mxu0 %v5573_v19  ;;  %1198 = vmatpush1.bf16.msra.mxu1 %v5574_v20 }
 0x181   :  { %1158 = vmatprep.subr.bf16.mxu0 %v5575_v21  ;;  %1199 = vmatprep.subr.bf16.mxu1 %v5576_v22 }
 0x184   :  { %1159 = vmatpush1.bf16.msra.mxu0 %v5577_v23  ;;  %1200 = vmatpush1.bf16.msra.mxu1 %v5578_v24 }
 0x185   :  { %1160 = vmatprep.subr.bf16.mxu0 %v5579_v25  ;;  %1201 = vmatprep.subr.bf16.mxu1 %v5580_v26 }
 0x188   :  { %1161 = vmatpush2.bf16.msra.mxu0 %v5581_v28  ;;  %1202 = vmatpush2.bf16.msra.mxu1 %v5582_v29  ;;  %v5624_v28 = vld [vmem:[#allocation71_spill] sm:$0xff] }
 0x189   :  { %1162 = vmatprep.subr.bf16.mxu0 %v5583_v30  ;;  %1203 = vmatprep.subr.bf16.mxu1 %v5584_v31 }
 0x18c   :  { %1163 = vmatpush2.bf16.msra.mxu0 %v5585_v47  ;;  %1204 = vmatpush2.bf16.msra.mxu1 %v5586_v45  ;;  %v5617_v45 = vld [vmem:[#allocation11_spill] sm:$0xff] }
 0x18d   :  { %1164 = vmatprep.subr.bf16.mxu0 %v5587_v57  ;;  %1205 = vmatprep.subr.bf16.mxu1 %v5588_v59 }
 0x190   :  { %1165 = vmatpush2.bf16.msra.mxu0 %v5589_v58  ;;  %1206 = vmatpush2.bf16.msra.mxu1 %v5590_v63  ;;  %v5601_v63 = vld [vmem:[#allocation55_spill] sm:$0xff] }
 0x191   :  { %1166 = vmatprep.subr.bf16.mxu0 %v5591_v52  ;;  %1207 = vmatprep.subr.bf16.mxu1 %v5592_v62  ;;  %v5602_v52 = vld [vmem:[#allocation56_spill] sm:$0xff]  ;;  %v5603_v62 = vld [vmem:[#allocation57_spill] sm:$0xff] }
 0x194   :  { %1167 = vmatpush2.bf16.msra.mxu0 %v5593_v51  ;;  %1208 = vmatpush2.bf16.msra.mxu1 %v5594_v54  ;;  %v5604_v51 = vld [vmem:[#allocation58_spill] sm:$0xff]  ;;  %v5605_v54 = vld [vmem:[#allocation59_spill] sm:$0xff] }
 0x195   :  { %1168 = vmatprep.subr.bf16.mxu0 %v5595_v55  ;;  %1209 = vmatprep.subr.bf16.mxu1 %v5596_v50  ;;  %v5606_v55 = vld [vmem:[#allocation60_spill] sm:$0xff]  ;;  %v5607_v50 = vld [vmem:[#allocation61_spill] sm:$0xff] }
 0x198   :  { %1169 = vmatpush2.bf16.msra.mxu0 %v5597_v2  ;;  %1210 = vmatpush2.bf16.msra.mxu1 %v5598_v56  ;;  %v5608_v2 = vld [vmem:[#allocation62_spill] sm:$0xff]  ;;  %v5609_v56 = vld [vmem:[#allocation63_spill] sm:$0xff] }
 0x199   :  { %1170 = vmatprep.subr.bf16.mxu0 %v5599_v1  ;;  %1211 = vmatprep.subr.bf16.mxu1 %v5600_v3  ;;  %v5610_v1 = vld [vmem:[#allocation64_spill] sm:$0xff]  ;;  %v5611_v3 = vld [vmem:[#allocation9_spill] sm:$0xff] }
 0x19c   :  { %1171 = vmatpush2.bf16.msra.mxu0 %v5601_v63  ;;  %1212 = vmatpush2.bf16.msra.mxu1 %v5602_v52  ;;  %v5612_v63 = vld [vmem:[#allocation10_spill] sm:$0xff] }
 0x19d   :  { %1172 = vmatprep.subr.bf16.mxu0 %v5603_v62  ;;  %1213 = vmatprep.subr.bf16.mxu1 %v5604_v51  ;;  %v61_v52 = vld [vmem:[#allocation2 + $0x2] ss:$8 sm:$0xf] }
 0x19e   :  { %v5613_v62 = vld [vmem:[#allocation65_spill] sm:$0xff]  ;;  %v5615_v51 = vld [vmem:[#allocation66_spill] sm:$0xff]  ;;  %v3959_v30 = vrot.slane %v61_v52, %v3820_v60 }
 0x19f   :  { %v3950_v58 = vrot.slane %v61_v52, %v5613_v62 }
 0x1a0   :  { %1173 = vmatpush2.bf16.msra.mxu0 %v5605_v54  ;;  %1214 = vmatpush2.bf16.msra.mxu1 %v5606_v55  ;;  %v3953_v54 = vrot.slane %v61_v52, %v5615_v51  ;;  %5618 = vst [vmem:[#allocation14_spill] sm:$0xff] %v3959_v30 }
 0x1a1   :  { %1174 = vmatprep.subr.bf16.mxu0 %v5607_v50  ;;  %1215 = vmatprep.subr.bf16.mxu1 %v5608_v2  ;;  %5614 = vst [vmem:[#allocation12_spill] sm:$0xff] %v3950_v58 }
 0x1a2   :  { %5616 = vst [vmem:[#allocation13_spill] sm:$0xff] %v3953_v54 }
 0x1a4   :  { %1175 = vmatpush2.bf16.msra.mxu0 %v5609_v56  ;;  %1216 = vmatpush2.bf16.msra.mxu1 %v5610_v1  ;;  %v3460_v56 = vmov 2  }
 0x1a5   :  { %1255 = vmatprep.subr.bf16.mxu0 %v5611_v3  ;;  %1296 = vmatprep.subr.bf16.mxu1 %v5612_v63 }
 0x1a6   :  { %2783 = vset.pattern.permute.xlu1 %v3460_v56 }
 0x1a7   :  { %135 = vperm.xlu1 %2783, %v5617_v45  }
 0x207   :  { %v931_v55 = vpop.f32.mrf.mxu0  ;;  %v972_v59 = vpop.f32.mrf.mxu1 }
 0x208   :  { %v1000_v50 = vadd.f32 %v3950_v58, %v931_v55  ;;  %v3963_v58 = vrot.slane %v61_v52, %v3827_v49  ;;  %v5623_v49 = vld [vmem:[#allocation70_spill] sm:$0xff] }
 0x209   :  { %v933_v2 = vpop.f32.mrf.mxu0  ;;  %v974_v57 = vpop.f32.mrf.mxu1 }
 0x20a   :  { %v2722_v1 = vmul.f32 -1.442695, %v1000_v50  ;;  %v1001_v3 = vadd.f32 %v3953_v54, %v933_v2  ;;  %v1003_v55 = vadd.f32 %v3959_v30, %v974_v57  ;;  %5619 = vst [vmem:[#allocation15_spill] sm:$0xff] %v3963_v58  ;;  %v1002_v2 = vadd.f32 %v3963_v58, %v972_v59  ;;  %v5622_v57 = vld [vmem:[#allocation69_spill] sm:$0xff] }
 0x20b   :  { %v935_v63 = vpop.f32.mrf.mxu0  ;;  %v976_v47 = vpop.f32.mrf.mxu1 }
 0x20c   :  { %2950 = vpow2.f32 %v2722_v1  ;;  %v2723_v62 = vmul.f32 -1.442695, %v1001_v3  ;;  %v2724_v50 = vmul.f32 -1.442695, %v1003_v55  ;;  %v5620_v1 = vld [vmem:[#allocation67_spill] sm:$0xff]  ;;  %v5621_v3 = vld [vmem:[#allocation68_spill] sm:$0xff] }
 0x20d   :  { %v936_v31 = vpop.f32.mrf.mxu0  ;;  %v977_v51 = vpop.f32.mrf.mxu1 }
 0x20e   :  { %2952 = vpow2.f32 %v2723_v62  ;;  %v124_v31 = vpop.permute.xlu0 %123 }
 0x20f   :  { %2954 = vpow2.f32 %v2724_v50  ;;  %v126_v60 = vmul.f32 %v124_v31, %v5620_v1  ;;  %v127_v62 = vmul.f32 %v124_v31, %v5621_v3  ;;  %v129_v1 = vmul.f32 %v124_v31, %v5624_v28 }
 0x211   :  { %v130_v51 = vadd.f32 %v126_v60, %v5622_v57  ;;  %v131_v52 = vadd.f32 %v127_v62, %v5623_v49 }
 0x219   :  { %v2951_v56 = vpop.eup %2950 }
 0x21a   :  { %v1007_v45 = vadd.f32 1.0, %v2951_v56 }
 0x21b   :  { %v2953_v63 = vpop.eup %2952 }
 0x21c   :  { %2956 = vrcp.f32 %v1007_v45  ;;  %v1013_v47 = vadd.f32 1.0, %v2953_v63  ;;  %v2955_v54 = vpop.eup %2954 }
 0x21d   :  { %2958 = vtanh.f32 %v1002_v2 }
 0x21e   :  { %2960 = vrcp.f32 %v1013_v47  ;;  %v1020_v47 = vadd.f32 1.0, %v2955_v54 }
 0x227   :  { %v1063_v55 = vpop.f32.mrf.mxu0  ;;  %v1104_v30 = vpop.f32.mrf.mxu1 }
 0x228   :  { %v1111_v59 = vadd.f32 %v1063_v55, %v130_v51  ;;  %v133_v51 = vadd.f32 %v129_v1, %v3831_v46 }
 0x229   :  { %v2957_v56 = vpop.eup %2956  ;;  %v1065_v58 = vpop.f32.mrf.mxu0 }
 0x22a   :  { %v1106_v50 = vpop.f32.mrf.mxu1  ;;  %v2959_v45 = vpop.eup %2958  ;;  %v2725_v63 = vmul.f32 -1.442695, %v1111_v59  ;;  %v1112_v2 = vadd.f32 %v1065_v58, %v131_v52  ;;  %v5625_v58 = vld [vmem:[#allocation72_spill] sm:$0xff] }
 0x22b   :  { %v2961_v29 = vpop.eup %2960  ;;  %v1067_v26 = vpop.f32.mrf.mxu0  ;;  %v1024_v60 = vmul.f32 %v2959_v45, %v2957_v56  ;;  %v128_v54 = vmul.f32 %v124_v31, %v5625_v58  ;;  %v1114_v52 = vadd.f32 %v1106_v50, %v133_v51 }
 0x22c   :  { %v1108_v3 = vpop.f32.mrf.mxu1  ;;  %v1023_v25 = vmul.f32 0.0, %v2961_v29  ;;  %2962 = vpow2.f32 %v2725_v63  ;;  %v2726_v62 = vmul.f32 -1.442695, %v1112_v2 }
 0x22d   :  { %v1068_v49 = vpop.f32.mrf.mxu0  ;;  %v132_v26 = vadd.f32 %v128_v54, %v3839_v0  ;;  %v2727_v3 = vmul.f32 -1.442695, %v1114_v52 }
 0x22e   :  { %v1109_v57 = vpop.f32.mrf.mxu1  ;;  %v3971_v24 = vadd.f32 %v1024_v60, %v1023_v25  ;;  %2964 = vpow2.f32 %v2726_v62 }
 0x22f   :  { %2966 = vrcp.f32 %v1020_v47  ;;  %v1113_v55 = vadd.f32 %v1104_v30, %v132_v26 }
 0x230   :  { %2968 = vtanh.f32 %v3971_v24 }
 0x231   :  { %2970 = vpow2.f32 %v2727_v3 }
 0x239   :  { %v2963_v29 = vpop.eup %2962 }
 0x23a   :  { %v1118_v59 = vadd.f32 1.0, %v2963_v29 }
 0x23b   :  { %v2965_v56 = vpop.eup %2964 }
 0x23c   :  { %v2967_v57 = vpop.eup %2966  ;;  %2972 = vrcp.f32 %v1118_v59  ;;  %v1124_v25 = vadd.f32 1.0, %v2965_v56  ;;  %v3986_v59 = vld [vmem:[#allocation4 + $0xe0] ss:$16 sps:$4 sm:$0xff]   ;;  %v3992_v56 = vld [vmem:[#allocation4 + $0xc4] ss:$16 sps:$4 sm:$0xff]  }
 0x23d   :  { %v2969_v49 = vpop.eup %2968  ;;  %2974 = vtanh.f32 %v1113_v55 }
 0x23e   :  { %2976 = vrcp.f32 %v1124_v25  ;;  %v1027_v1 = vmul.f32 %v2969_v49, %v2967_v57  ;;  %v2971_v31 = vpop.eup %2970  ;;  %v3995_v57 = vld [vmem:[#allocation4 + $0xcc] ss:$16 sps:$4 sm:$0xff]   ;;  %v4000_v25 = vld [vmem:[#allocation4 + $0xc0] ss:$16 sps:$4 sm:$0xff]   ;;  %v4003_v49 = vld [vmem:[#allocation4 + $0xc8] ss:$16 sps:$4 sm:$0xff]  }
 0x23f   :  { %v1131_v47 = vadd.f32 1.0, %v2971_v31  ;;  %v4012_v31 = vld [vmem:[#allocation4 + $0xa0] ss:$16 sps:$4 sm:$0xff]  }
 0x240   :  { %v1143_v45 = vpack.c.bf16 %v1027_v1, %v1027_v1  ;;  %v4006_v1 = vld [vmem:[#allocation4 + $0xa4] ss:$16 sps:$4 sm:$0xff]  }
 0x241   :  { %2978 = vrcp.f32 %v1131_v47  ;;  %v4024_v47 = vld [vmem:[#allocation4 + $0x80] ss:$16 sps:$4 sm:$0xff]  }
 0x242   :  { %1176 = vmatprep.mubr.bf16.mxu0 %v1143_v45  ;;  %1217 = vmatprep.mubr.bf16.mxu1 %v1143_v45  ;;  %v4009_v45 = vld [vmem:[#allocation4 + $0xac] ss:$16 sps:$4 sm:$0xff]  }
 0x249   :  { %v2973_v50 = vpop.eup %2972 }
 0x24a   :  { %v2975_v63 = vpop.eup %2974 }
 0x24b   :  { %v2977_v2 = vpop.eup %2976  ;;  %v1135_v60 = vmul.f32 %v2975_v63, %v2973_v50  ;;  %v4015_v50 = vld [vmem:[#allocation4 + $0xa8] ss:$16 sps:$4 sm:$0xff]   ;;  %v4018_v63 = vld [vmem:[#allocation4 + $0x84] ss:$16 sps:$4 sm:$0xff]  }
 0x24c   :  { %v1134_v30 = vmul.f32 %v2977_v2, %v3842_v48  ;;  %v3989_v48 = vld [vmem:[#allocation4 + $0xe8] ss:$16 sps:$4 sm:$0xff]   ;;  %v4021_v2 = vld [vmem:[#allocation4 + $0x8c] ss:$16 sps:$4 sm:$0xff]  }
 0x24e   :  { %v3978_v62 = vadd.f32 %v1135_v60, %v1134_v30  ;;  %v2979_v51 = vpop.eup %2978  ;;  %v4027_v60 = vld [vmem:[#allocation4 + $0x88] ss:$16 sps:$4 sm:$0xff]   ;;  %v4030_v30 = vld [vmem:[#allocation4 + $0x64] ss:$16 sps:$4 sm:$0xff]  }
 0x250   :  { %2980 = vtanh.f32 %v3978_v62 }
 0x25d   :  { %v2981_v54 = vpop.eup %2980 }
 0x25e   :  { %v3981_v52 = vmul.f32 %v2981_v54, %v2979_v51  ;;  %v4033_v51 = vld [vmem:[#allocation4 + $0x6c] ss:$16 sps:$4 sm:$0xff]   ;;  %v4036_v54 = vld [vmem:[#allocation4 + $0x60] ss:$16 sps:$4 sm:$0xff]  }
 0x25f   :  { %5626 = vst [vmem:[#allocation16_spill] sm:$0xff] %v4033_v51  ;;  %5627 = vst [vmem:[#allocation17_spill] sm:$0xff] %v4036_v54 }
 0x260   :  { %v1139_v26 = vmax.f32 %v3981_v52, 0.0 }
 0x262   :  { %v1140_v3 = vmul.f32 %v1139_v26, %v3845_v53  ;;  %v4039_v26 = vld [vmem:[#allocation4 + $0x68] ss:$16 sps:$4 sm:$0xff]  }
 0x263   :  { %5628 = vst [vmem:[#allocation18_spill] sm:$0xff] %v4039_v26 }
 0x264   :  { %v1141_v29 = vadd.f32 %v1140_v3, %v3847_v61  ;;  %v4042_v3 = vld [vmem:[#allocation4 + $0x44] ss:$16 sps:$4 sm:$0xff]  }
 0x265   :  { %5629 = vst [vmem:[#allocation19_spill] sm:$0xff] %v4042_v3 }
 0x266   :  { %v1142_v55 = vpack.c.bf16 %v1141_v29, %v1141_v29  ;;  %v4045_v29 = vld [vmem:[#allocation4 + $0x4c] ss:$16 sps:$4 sm:$0xff]  }
 0x267   :  { %5630 = vst [vmem:[#allocation20_spill] sm:$0xff] %v4045_v29 }
 0x268   :  { %1177 = vmatmul.mubr.bf16.vlgmr.msra.gmra.mxu0 %v1142_v55  ;;  %1218 = vmatmul.mubr.bf16.vlgmr.msra.gmra.mxu1 %v1142_v55  ;;  %v4048_v55 = vld [vmem:[#allocation4 + $0x40] ss:$16 sps:$4 sm:$0xff]  }
 0x269   :  { %1256 = vmatpush1.bf16.msra.mxu0 %v3986_v59  ;;  %1297 = vmatpush1.bf16.msra.mxu1 %v3989_v48  ;;  %5631 = vst [vmem:[#allocation21_spill] sm:$0xff] %v4048_v55 }
 0x26a   :  { %1257 = vmatprep.subr.bf16.mxu0 %v3992_v56  ;;  %1298 = vmatprep.subr.bf16.mxu1 %v3995_v57 }
 0x26b   :  { %1287 = vmatprep.mubr.bf16.mxu0 %v5557_v27  ;;  %1328 = vmatprep.mubr.bf16.mxu1 %v5557_v27 }
 0x26d   :  { %1258 = vmatpush1.bf16.msra.mxu0 %v4000_v25  ;;  %1299 = vmatpush1.bf16.msra.mxu1 %v4003_v49 }
 0x26e   :  { %1259 = vmatprep.subr.bf16.mxu0 %v4006_v1  ;;  %1300 = vmatprep.subr.bf16.mxu1 %v4009_v45 }
 0x271   :  { %1260 = vmatpush1.bf16.msra.mxu0 %v4012_v31  ;;  %1301 = vmatpush1.bf16.msra.mxu1 %v4015_v50 }
 0x272   :  { %1261 = vmatprep.subr.bf16.mxu0 %v4018_v63  ;;  %1302 = vmatprep.subr.bf16.mxu1 %v4021_v2 }
 0x275   :  { %1262 = vmatpush1.bf16.msra.mxu0 %v4024_v47  ;;  %1303 = vmatpush1.bf16.msra.mxu1 %v4027_v60 }
 0x276   :  { %1263 = vmatprep.subr.bf16.mxu0 %v4030_v30  ;;  %1304 = vmatprep.subr.bf16.mxu1 %v4033_v51  ;;  %v4051_v51 = vld [vmem:[#allocation4 + $0x48] ss:$16 sps:$4 sm:$0xff]  }
 0x277   :  { %5632 = vst [vmem:[#allocation22_spill] sm:$0xff] %v4051_v51 }
 0x279   :  { %1264 = vmatpush1.bf16.msra.mxu0 %v4036_v54  ;;  %1305 = vmatpush1.bf16.msra.mxu1 %v4039_v26  ;;  %v4054_v54 = vld [vmem:[#allocation4 + $0x24] ss:$16 sps:$4 sm:$0xff]   ;;  %v4057_v26 = vld [vmem:[#allocation4 + $0x2c] ss:$16 sps:$4 sm:$0xff]  }
 0x27a   :  { %1265 = vmatprep.subr.bf16.mxu0 %v4042_v3  ;;  %1306 = vmatprep.subr.bf16.mxu1 %v4045_v29  ;;  %5633 = vst [vmem:[#allocation23_spill] sm:$0xff] %v4057_v26  ;;  %v4060_v3 = vld [vmem:[#allocation4 + $0x20] ss:$16 sps:$4 sm:$0xff]   ;;  %v4063_v29 = vld [vmem:[#allocation4 + $0x28] ss:$16 sps:$4 sm:$0xff]  }
 0x27d   :  { %1266 = vmatpush1.bf16.msra.mxu0 %v4048_v55  ;;  %1307 = vmatpush1.bf16.msra.mxu1 %v4051_v51  ;;  %v4066_v55 = vld [vmem:[#allocation4 + $0x4] ss:$16 sps:$4 sm:$0xff]   ;;  %v4069_v51 = vld [vmem:[#allocation4 + $0xc] ss:$16 sps:$4 sm:$0xff]  }
 0x27e   :  { %1267 = vmatprep.subr.bf16.mxu0 %v4054_v54  ;;  %1308 = vmatprep.subr.bf16.mxu1 %v4057_v26  ;;  %v1254_v26 = vpack.c.bf16 %v3981_v52, %v3981_v52  ;;  %v4140_v52 = vld [vmem:[#allocation4 + $0xe4] ss:$16 sps:$4 sm:$0xff]  }
 0x27f   :  { %5667 = vst [vmem:[#allocation24_spill] sm:$0xff] %v4140_v52 }
 0x281   :  { %1268 = vmatpush1.bf16.msra.mxu0 %v4060_v3  ;;  %1309 = vmatpush1.bf16.msra.mxu1 %v4063_v29 }
 0x282   :  { %1269 = vmatprep.subr.bf16.mxu0 %v4066_v55  ;;  %1310 = vmatprep.subr.bf16.mxu1 %v4069_v51 }
 0x285   :  { %1270 = vmatpush1.bf16.msra.mxu0 %v3595_v32  ;;  %1311 = vmatpush1.bf16.msra.mxu1 %v3597_v33  ;;  %v5634_v32 = vld [vmem:[#allocation32_spill] sm:$0xff]  ;;  %v5635_v33 = vld [vmem:[#allocation33_spill] sm:$0xff] }
 0x286   :  { %1370 = vmatprep.subr.bf16.mxu0 %v3607_v34  ;;  %1411 = vmatprep.subr.bf16.mxu1 %v3609_v35  ;;  %v5636_v34 = vld [vmem:[#allocation34_spill] sm:$0xff]  ;;  %v5637_v35 = vld [vmem:[#allocation35_spill] sm:$0xff] }
 0x288   :  { %1288 = vmatmul.mubr.bf16.vlgmr.msra.gmra.mxu0 %v1254_v26  ;;  %1329 = vmatmul.mubr.bf16.vlgmr.msra.gmra.mxu1 %v1254_v26  ;;  %v4143_v26 = vld [vmem:[#allocation4 + $0xec] ss:$16 sps:$4 sm:$0xff]  }
 0x289   :  { %1371 = vmatpush1.bf16.msra.mxu0 %v3611_v36  ;;  %1412 = vmatpush1.bf16.msra.mxu1 %v3613_v37  ;;  %v5638_v36 = vld [vmem:[#allocation36_spill] sm:$0xff]  ;;  %v5639_v37 = vld [vmem:[#allocation37_spill] sm:$0xff]  ;;  %5668 = vst [vmem:[#allocation25_spill] sm:$0xff] %v4143_v26 }
 0x28a   :  { %1372 = vmatprep.subr.bf16.mxu0 %v3619_v38  ;;  %1413 = vmatprep.subr.bf16.mxu1 %v3621_v39  ;;  %v5640_v38 = vld [vmem:[#allocation38_spill] sm:$0xff]  ;;  %v5641_v39 = vld [vmem:[#allocation39_spill] sm:$0xff] }
 0x28d   :  { %1373 = vmatpush1.bf16.msra.mxu0 %v3623_v40  ;;  %1414 = vmatpush1.bf16.msra.mxu1 %v3625_v41  ;;  %v5642_v40 = vld [vmem:[#allocation40_spill] sm:$0xff]  ;;  %v5643_v41 = vld [vmem:[#allocation41_spill] sm:$0xff] }
 0x28e   :  { %1374 = vmatprep.subr.bf16.mxu0 %v3631_v42  ;;  %1415 = vmatprep.subr.bf16.mxu1 %v3633_v43  ;;  %v5644_v42 = vld [vmem:[#allocation42_spill] sm:$0xff]  ;;  %v5645_v43 = vld [vmem:[#allocation43_spill] sm:$0xff] }
 0x291   :  { %1375 = vmatpush1.bf16.msra.mxu0 %v3635_v44  ;;  %1416 = vmatpush1.bf16.msra.mxu1 %v5558_v4  ;;  %v5646_v44 = vld [vmem:[#allocation44_spill] sm:$0xff]  ;;  %v5647_v4 = vld [vmem:[#allocation45_spill] sm:$0xff] }
 0x292   :  { %1376 = vmatprep.subr.bf16.mxu0 %v5559_v5  ;;  %1417 = vmatprep.subr.bf16.mxu1 %v5560_v6  ;;  %v5648_v5 = vld [vmem:[#allocation46_spill] sm:$0xff]  ;;  %v5649_v6 = vld [vmem:[#allocation47_spill] sm:$0xff] }
 0x295   :  { %1377 = vmatpush1.bf16.msra.mxu0 %v5561_v7  ;;  %1418 = vmatpush1.bf16.msra.mxu1 %v5562_v8  ;;  %v5650_v7 = vld [vmem:[#allocation48_spill] sm:$0xff]  ;;  %v5651_v8 = vld [vmem:[#allocation49_spill] sm:$0xff] }
 0x296   :  { %1378 = vmatprep.subr.bf16.mxu0 %v5563_v9  ;;  %1419 = vmatprep.subr.bf16.mxu1 %v5564_v10  ;;  %v5652_v9 = vld [vmem:[#allocation50_spill] sm:$0xff]  ;;  %v5653_v10 = vld [vmem:[#allocation51_spill] sm:$0xff] }
 0x299   :  { %1379 = vmatpush1.bf16.msra.mxu0 %v5565_v11  ;;  %1420 = vmatpush1.bf16.msra.mxu1 %v5566_v12  ;;  %v5654_v11 = vld [vmem:[#allocation52_spill] sm:$0xff]  ;;  %v5655_v12 = vld [vmem:[#allocation53_spill] sm:$0xff] }
 0x29a   :  { %1380 = vmatprep.subr.bf16.mxu0 %v5567_v13  ;;  %1421 = vmatprep.subr.bf16.mxu1 %v5568_v14  ;;  %v5656_v13 = vld [vmem:[#allocation54_spill] sm:$0xff]  ;;  %v5657_v14 = vld [vmem:[#allocation55_spill] sm:$0xff] }
 0x29d   :  { %1381 = vmatpush1.bf16.msra.mxu0 %v5569_v15  ;;  %1422 = vmatpush1.bf16.msra.mxu1 %v5570_v16  ;;  %v5658_v15 = vld [vmem:[#allocation56_spill] sm:$0xff]  ;;  %v5659_v16 = vld [vmem:[#allocation57_spill] sm:$0xff] }
 0x29e   :  { %1382 = vmatprep.subr.bf16.mxu0 %v5571_v17  ;;  %1423 = vmatprep.subr.bf16.mxu1 %v5572_v18  ;;  %v5660_v17 = vld [vmem:[#allocation58_spill] sm:$0xff]  ;;  %v5661_v18 = vld [vmem:[#allocation59_spill] sm:$0xff] }
 0x2a1   :  { %1383 = vmatpush1.bf16.msra.mxu0 %v5573_v19  ;;  %1424 = vmatpush1.bf16.msra.mxu1 %v5574_v20  ;;  %v5662_v19 = vld [vmem:[#allocation60_spill] sm:$0xff]  ;;  %v5663_v20 = vld [vmem:[#allocation61_spill] sm:$0xff] }
 0x2a2   :  { %1384 = vmatprep.subr.bf16.mxu0 %v5575_v21  ;;  %1425 = vmatprep.subr.bf16.mxu1 %v5576_v22  ;;  %v5664_v21 = vld [vmem:[#allocation62_spill] sm:$0xff]  ;;  %v5665_v22 = vld [vmem:[#allocation63_spill] sm:$0xff] }
 0x2a5   :  { %1385 = vmatpush1.bf16.msra.mxu0 %v5577_v23  ;;  %1426 = vmatpush1.bf16.msra.mxu1 %v5634_v32  ;;  %v5666_v23 = vld [vmem:[#allocation64_spill] sm:$0xff] }
 0x2a6   :  { %1386 = vmatprep.subr.bf16.mxu0 %v5635_v33  ;;  %1427 = vmatprep.subr.bf16.mxu1 %v5636_v34  ;;  %v5669_v34 = vld [vmem:[#allocation12_spill] sm:$0xff] }
 0x2a9   :  { %1387 = vmatpush2.bf16.msra.mxu0 %v5637_v35  ;;  %1428 = vmatpush2.bf16.msra.mxu1 %v5638_v36 }
 0x2aa   :  { %1388 = vmatprep.subr.bf16.mxu0 %v5639_v37  ;;  %1429 = vmatprep.subr.bf16.mxu1 %v5640_v38  ;;  %v3461_v38 = vmov 3  }
 0x2ab   :  { %2784 = vset.pattern.permute.xlu1 %v3461_v38 }
 0x2ad   :  { %1389 = vmatpush2.bf16.msra.mxu0 %v5641_v39  ;;  %1430 = vmatpush2.bf16.msra.mxu1 %v5642_v40  ;;  %v5670_v40 = vld [vmem:[#allocation13_spill] sm:$0xff] }
 0x2ae   :  { %1390 = vmatprep.subr.bf16.mxu0 %v5643_v41  ;;  %1431 = vmatprep.subr.bf16.mxu1 %v5644_v42  ;;  %v4151_v42 = vld [vmem:[%s5123_s0] sm:$0xff] }
 0x2af   :  { %147 = vperm.xlu1 %2784, %v4151_v42  }
 0x2b1   :  { %1391 = vmatpush2.bf16.msra.mxu0 %v5645_v43  ;;  %1432 = vmatpush2.bf16.msra.mxu1 %v5646_v44 }
 0x2b2   :  { %1392 = vmatprep.subr.bf16.mxu0 %v5647_v4  ;;  %1433 = vmatprep.subr.bf16.mxu1 %v5648_v5 }
 0x2b5   :  { %1393 = vmatpush2.bf16.msra.mxu0 %v5649_v6  ;;  %1434 = vmatpush2.bf16.msra.mxu1 %v5650_v7  ;;  %v5671_v7 = vld [vmem:[#allocation14_spill] sm:$0xff] }
 0x2b6   :  { %1394 = vmatprep.subr.bf16.mxu0 %v5651_v8  ;;  %1435 = vmatprep.subr.bf16.mxu1 %v5652_v9 }
 0x2b9   :  { %1395 = vmatpush2.bf16.msra.mxu0 %v5653_v10  ;;  %1436 = vmatpush2.bf16.msra.mxu1 %v5654_v11  ;;  %v5672_v11 = vld [vmem:[#allocation15_spill] sm:$0xff] }
 0x2ba   :  { %1396 = vmatprep.subr.bf16.mxu0 %v5655_v12  ;;  %1437 = vmatprep.subr.bf16.mxu1 %v5656_v13 }
 0x2bd   :  { %1397 = vmatpush2.bf16.msra.mxu0 %v5657_v14  ;;  %1438 = vmatpush2.bf16.msra.mxu1 %v5658_v15 }
 0x2be   :  { %1398 = vmatprep.subr.bf16.mxu0 %v5659_v16  ;;  %1439 = vmatprep.subr.bf16.mxu1 %v5660_v17  ;;  %v136_v16 = vpop.permute.xlu1 %135  ;;  %v5673_v17 = vld [vmem:[#allocation67_spill] sm:$0xff] }
 0x2c1   :  { %1399 = vmatpush2.bf16.msra.mxu0 %v5661_v18  ;;  %1440 = vmatpush2.bf16.msra.mxu1 %v5662_v19  ;;  %v138_v18 = vmul.f32 %v136_v16, %v5673_v17  ;;  %v5674_v19 = vld [vmem:[#allocation68_spill] sm:$0xff] }
 0x2c2   :  { %1400 = vmatprep.subr.bf16.mxu0 %v5663_v20  ;;  %1441 = vmatprep.subr.bf16.mxu1 %v5664_v21  ;;  %v139_v20 = vmul.f32 %v136_v16, %v5674_v19  ;;  %v5675_v21 = vld [vmem:[#allocation69_spill] sm:$0xff] }
 0x2c5   :  { %1401 = vmatpush2.bf16.msra.mxu0 %v5665_v22  ;;  %1442 = vmatpush2.bf16.msra.mxu1 %v5666_v23  ;;  %v142_v22 = vadd.f32 %v138_v18, %v5675_v21  ;;  %v5676_v23 = vld [vmem:[#allocation70_spill] sm:$0xff] }
 0x2c6   :  { %1481 = vmatprep.subr.bf16.mxu0 %v4140_v52  ;;  %1522 = vmatprep.subr.bf16.mxu1 %v4143_v26 }
 0x328   :  { %v1178_v32 = vpop.f32.mrf.mxu0  ;;  %v1219_v33 = vpop.f32.mrf.mxu1 }
 0x329   :  { %v1226_v35 = vadd.f32 %v1178_v32, %v5669_v34  ;;  %v1228_v12 = vadd.f32 %v1219_v33, %v5672_v11  ;;  %v143_v32 = vadd.f32 %v139_v20, %v5676_v23 }
 0x32a   :  { %v1180_v36 = vpop.f32.mrf.mxu0  ;;  %v1221_v37 = vpop.f32.mrf.mxu1 }
 0x32b   :  { %v2728_v39 = vmul.f32 -1.442695, %v1226_v35  ;;  %v1227_v41 = vadd.f32 %v1180_v36, %v5670_v40  ;;  %v1229_v8 = vadd.f32 %v1221_v37, %v5671_v7 }
 0x32c   :  { %v1182_v43 = vpop.f32.mrf.mxu0  ;;  %v1223_v44 = vpop.f32.mrf.mxu1 }
 0x32d   :  { %2982 = vpow2.f32 %v2728_v39  ;;  %v2729_v4 = vmul.f32 -1.442695, %v1227_v41  ;;  %v2730_v9 = vmul.f32 -1.442695, %v1229_v8  ;;  %v141_v8 = vmul.f32 %v136_v16, %v5624_v28 }
 0x32e   :  { %v1183_v5 = vpop.f32.mrf.mxu0  ;;  %v1224_v6 = vpop.f32.mrf.mxu1 }
 0x32f   :  { %2984 = vpow2.f32 %v2729_v4 }
 0x330   :  { %2986 = vpow2.f32 %v2730_v9 }
 0x33a   :  { %v2983_v10 = vpop.eup %2982 }
 0x33b   :  { %v1233_v13 = vadd.f32 1.0, %v2983_v10 }
 0x33c   :  { %v2985_v14 = vpop.eup %2984 }
 0x33d   :  { %2988 = vrcp.f32 %v1233_v13  ;;  %v1239_v15 = vadd.f32 1.0, %v2985_v14  ;;  %v2987_v37 = vpop.eup %2986 }
 0x33e   :  { %2990 = vtanh.f32 %v1228_v12  ;;  %v1246_v6 = vadd.f32 1.0, %v2987_v37 }
 0x33f   :  { %2992 = vrcp.f32 %v1239_v15 }
 0x348   :  { %v1289_v35 = vpop.f32.mrf.mxu0  ;;  %v1330_v36 = vpop.f32.mrf.mxu1 }
 0x349   :  { %v1337_v33 = vadd.f32 %v1289_v35, %v142_v22  ;;  %v145_v22 = vadd.f32 %v141_v8, %v3831_v46 }
 0x34a   :  { %v2989_v38 = vpop.eup %2988  ;;  %v1291_v39 = vpop.f32.mrf.mxu0 }
 0x34b   :  { %v1332_v41 = vpop.f32.mrf.mxu1  ;;  %v2991_v43 = vpop.eup %2990  ;;  %v2731_v44 = vmul.f32 -1.442695, %v1337_v33  ;;  %v1338_v4 = vadd.f32 %v1291_v39, %v143_v32  ;;  %v140_v32 = vmul.f32 %v136_v16, %v5625_v58 }
 0x34c   :  { %v2993_v5 = vpop.eup %2992  ;;  %v1293_v9 = vpop.f32.mrf.mxu0  ;;  %v1250_v12 = vmul.f32 %v2991_v43, %v2989_v38  ;;  %v1340_v35 = vadd.f32 %v1332_v41, %v145_v22 }
 0x34d   :  { %v1334_v10 = vpop.f32.mrf.mxu1  ;;  %v1249_v13 = vmul.f32 %v2993_v5, %v3971_v24  ;;  %2994 = vpow2.f32 %v2731_v44  ;;  %v2732_v14 = vmul.f32 -1.442695, %v1338_v4  ;;  %v144_v37 = vadd.f32 %v140_v32, %v3839_v0 }
 0x34e   :  { %v1294_v15 = vpop.f32.mrf.mxu0  ;;  %v2733_v33 = vmul.f32 -1.442695, %v1340_v35 }
 0x34f   :  { %v1335_v18 = vpop.f32.mrf.mxu1  ;;  %2996 = vpow2.f32 %v2732_v14  ;;  %v4162_v20 = vadd.f32 %v1250_v12, %v1249_v13  ;;  %v1339_v24 = vadd.f32 %v1330_v36, %v144_v37 }
 0x350   :  { %2998 = vrcp.f32 %v1246_v6 }
 0x351   :  { %3000 = vtanh.f32 %v4162_v20 }
 0x352   :  { %3002 = vpow2.f32 %v2733_v33 }
 0x35a   :  { %v2995_v38 = vpop.eup %2994 }
 0x35b   :  { %v1344_v39 = vadd.f32 1.0, %v2995_v38  ;;  %v5680_v38 = vld [vmem:[#allocation19_spill] sm:$0xff] }
 0x35c   :  { %v2997_v43 = vpop.eup %2996 }
 0x35d   :  { %v2999_v44 = vpop.eup %2998  ;;  %3004 = vrcp.f32 %v1344_v39  ;;  %v1350_v4 = vadd.f32 1.0, %v2997_v43  ;;  %v5682_v39 = vld [vmem:[#allocation21_spill] sm:$0xff]  ;;  %v5683_v43 = vld [vmem:[#allocation22_spill] sm:$0xff] }
 0x35e   :  { %v3001_v5 = vpop.eup %3000  ;;  %3006 = vtanh.f32 %v1339_v24  ;;  %v5681_v24 = vld [vmem:[#allocation20_spill] sm:$0xff] }
 0x35f   :  { %3008 = vrcp.f32 %v1350_v4  ;;  %v1253_v6 = vmul.f32 %v3001_v5, %v2999_v44  ;;  %v3003_v16 = vpop.eup %3002  ;;  %v5684_v44 = vld [vmem:[#allocation23_spill] sm:$0xff]  ;;  %v4207_v5 = vld [vmem:[#allocation4 + $0x8] ss:$16 sps:$4 sm:$0xff]  }
 0x360   :  { %v1357_v12 = vadd.f32 1.0, %v3003_v16  ;;  %v4204_v4 = vld [vmem:[#allocation4] ss:$16 sps:$4 sm:$0xff]   ;;  %v4213_v16 = vld [vmem:[#allocation6 + $0xec] ss:$16 sps:$4 sm:$0xff]  }
 0x361   :  { %v1369_v8 = vpack.c.bf16 %v1253_v6, %v1253_v6 }
 0x362   :  { %3010 = vrcp.f32 %v1357_v12  ;;  %v4225_v12 = vld [vmem:[#allocation6 + $0xcc] ss:$16 sps:$4 sm:$0xff]  }
 0x363   :  { %1402 = vmatprep.mubr.bf16.mxu0 %v1369_v8  ;;  %1443 = vmatprep.mubr.bf16.mxu1 %v1369_v8  ;;  %v4210_v8 = vld [vmem:[#allocation6 + $0xe4] ss:$16 sps:$4 sm:$0xff]   ;;  %5688 = vst [vmem:[#allocation29_spill] sm:$0xff] %v4225_v12 }
 0x36a   :  { %v3005_v41 = vpop.eup %3004 }
 0x36b   :  { %v3007_v9 = vpop.eup %3006 }
 0x36c   :  { %v3009_v10 = vpop.eup %3008  ;;  %v1361_v13 = vmul.f32 %v3007_v9, %v3005_v41  ;;  %v4216_v41 = vld [vmem:[#allocation6 + $0xe0] ss:$16 sps:$4 sm:$0xff]   ;;  %v4219_v9 = vld [vmem:[#allocation6 + $0xe8] ss:$16 sps:$4 sm:$0xff]  }
 0x36d   :  { %v1360_v36 = vmul.f32 %v3009_v10, %v3978_v62  ;;  %v5679_v62 = vld [vmem:[#allocation18_spill] sm:$0xff]  ;;  %5685 = vst [vmem:[#allocation26_spill] sm:$0xff] %v4216_v41  ;;  %5686 = vst [vmem:[#allocation27_spill] sm:$0xff] %v4219_v9  ;;  %v4222_v10 = vld [vmem:[#allocation6 + $0xc4] ss:$16 sps:$4 sm:$0xff]  }
 0x36e   :  { %5687 = vst [vmem:[#allocation28_spill] sm:$0xff] %v4222_v10 }
 0x36f   :  { %v4169_v14 = vadd.f32 %v1361_v13, %v1360_v36  ;;  %v3011_v15 = vpop.eup %3010  ;;  %v4228_v13 = vld [vmem:[#allocation6 + $0xc0] ss:$16 sps:$4 sm:$0xff]   ;;  %v4231_v36 = vld [vmem:[#allocation6 + $0xc8] ss:$16 sps:$4 sm:$0xff]  }
 0x370   :  { %5689 = vst [vmem:[#allocation30_spill] sm:$0xff] %v4228_v13  ;;  %5690 = vst [vmem:[#allocation31_spill] sm:$0xff] %v4231_v36 }
 0x371   :  { %3012 = vtanh.f32 %v4169_v14 }
 0x37e   :  { %v3013_v18 = vpop.eup %3012 }
 0x37f   :  { %v1364_v22 = vmul.f32 %v3013_v18, %v3011_v15  ;;  %v4234_v15 = vld [vmem:[#allocation6 + $0xa4] ss:$16 sps:$4 sm:$0xff]   ;;  %v4237_v18 = vld [vmem:[#allocation6 + $0xac] ss:$16 sps:$4 sm:$0xff]  }
 0x380   :  { %5691 = vst [vmem:[#allocation9_spill] sm:$0xff] %v4234_v15  ;;  %5692 = vst [vmem:[#allocation10_spill] sm:$0xff] %v4237_v18 }
 0x381   :  { %v1365_v32 = vmax.f32 %v1364_v22, 0.0  ;;  %v1480_v6 = vpack.c.bf16 %v1364_v22, %v1364_v22  ;;  %v4240_v22 = vld [vmem:[#allocation6 + $0xa0] ss:$16 sps:$4 sm:$0xff]  }
 0x382   :  { %5693 = vst [vmem:[#allocation65_spill] sm:$0xff] %v4240_v22 }
 0x383   :  { %v1366_v35 = vmul.f32 %v1365_v32, %v3845_v53  ;;  %v5677_v53 = vld [vmem:[#allocation16_spill] sm:$0xff] }
 0x384   :  { %v4243_v32 = vld [vmem:[#allocation6 + $0xa8] ss:$16 sps:$4 sm:$0xff]  }
 0x385   :  { %v1367_v37 = vadd.f32 %v1366_v35, %v3847_v61  ;;  %v5678_v61 = vld [vmem:[#allocation17_spill] sm:$0xff]  ;;  %5694 = vst [vmem:[#allocation66_spill] sm:$0xff] %v4243_v32 }
 0x386   :  { %v4246_v35 = vld [vmem:[#allocation6 + $0x84] ss:$16 sps:$4 sm:$0xff]  }
 0x387   :  { %v1368_v33 = vpack.c.bf16 %v1367_v37, %v1367_v37  ;;  %5695 = vst [vmem:[#allocation11_spill] sm:$0xff] %v4246_v35  ;;  %v4249_v37 = vld [vmem:[#allocation6 + $0x8c] ss:$16 sps:$4 sm:$0xff]  }
 0x388   :  { %5696 = vst [vmem:[#allocation71_spill] sm:$0xff] %v4249_v37 }
 0x389   :  { %1403 = vmatmul.mubr.bf16.vlgmr.msra.gmra.mxu0 %v1368_v33  ;;  %1444 = vmatmul.mubr.bf16.vlgmr.msra.gmra.mxu1 %v1368_v33  ;;  %v4252_v33 = vld [vmem:[#allocation6 + $0x80] ss:$16 sps:$4 sm:$0xff]  }
 0x38a   :  { %1482 = vmatpush1.bf16.msra.mxu0 %v3986_v59  ;;  %1523 = vmatpush1.bf16.msra.mxu1 %v3989_v48  ;;  %5697 = vst [vmem:[#allocation72_spill] sm:$0xff] %v4252_v33 }
 0x38b   :  { %1483 = vmatprep.subr.bf16.mxu0 %v3992_v56  ;;  %1524 = vmatprep.subr.bf16.mxu1 %v3995_v57 }
 0x38c   :  { %1513 = vmatprep.mubr.bf16.mxu0 %v5557_v27  ;;  %1554 = vmatprep.mubr.bf16.mxu1 %v5557_v27 }
 0x38e   :  { %1484 = vmatpush1.bf16.msra.mxu0 %v4000_v25  ;;  %1525 = vmatpush1.bf16.msra.mxu1 %v4003_v49 }
 0x38f   :  { %1485 = vmatprep.subr.bf16.mxu0 %v4006_v1  ;;  %1526 = vmatprep.subr.bf16.mxu1 %v4009_v45 }
 0x392   :  { %1486 = vmatpush1.bf16.msra.mxu0 %v4012_v31  ;;  %1527 = vmatpush1.bf16.msra.mxu1 %v4015_v50 }
 0x393   :  { %1487 = vmatprep.subr.bf16.mxu0 %v4018_v63  ;;  %1528 = vmatprep.subr.bf16.mxu1 %v4021_v2 }
 0x396   :  { %1488 = vmatpush1.bf16.msra.mxu0 %v4024_v47  ;;  %1529 = vmatpush1.bf16.msra.mxu1 %v4027_v60 }
 0x397   :  { %1489 = vmatprep.subr.bf16.mxu0 %v4030_v30  ;;  %1530 = vmatprep.subr.bf16.mxu1 %v5677_v53 }
 0x39a   :  { %1490 = vmatpush1.bf16.msra.mxu0 %v5678_v61  ;;  %1531 = vmatpush1.bf16.msra.mxu1 %v5679_v62 }
 0x39b   :  { %1491 = vmatprep.subr.bf16.mxu0 %v5680_v38  ;;  %1532 = vmatprep.subr.bf16.mxu1 %v5681_v24 }
 0x39e   :  { %1492 = vmatpush1.bf16.msra.mxu0 %v5682_v39  ;;  %1533 = vmatpush1.bf16.msra.mxu1 %v5683_v43 }
 0x39f   :  { %1493 = vmatprep.subr.bf16.mxu0 %v4054_v54  ;;  %1534 = vmatprep.subr.bf16.mxu1 %v5684_v44 }
 0x3a2   :  { %1494 = vmatpush1.bf16.msra.mxu0 %v4060_v3  ;;  %1535 = vmatpush1.bf16.msra.mxu1 %v4063_v29 }
 0x3a3   :  { %1495 = vmatprep.subr.bf16.mxu0 %v4066_v55  ;;  %1536 = vmatprep.subr.bf16.mxu1 %v4069_v51 }
 0x3a6   :  { %1496 = vmatpush1.bf16.msra.mxu0 %v4204_v4  ;;  %1537 = vmatpush1.bf16.msra.mxu1 %v4207_v5 }
 0x3a7   :  { %1596 = vmatprep.subr.bf16.mxu0 %v4210_v8  ;;  %1637 = vmatprep.subr.bf16.mxu1 %v4213_v16 }
 0x3a9   :  { %1514 = vmatmul.mubr.bf16.vlgmr.msra.gmra.mxu0 %v1480_v6  ;;  %1555 = vmatmul.mubr.bf16.vlgmr.msra.gmra.mxu1 %v1480_v6  ;;  %v4255_v6 = vld [vmem:[#allocation6 + $0x88] ss:$16 sps:$4 sm:$0xff]  }
 0x3aa   :  { %1597 = vmatpush1.bf16.msra.mxu0 %v4216_v41  ;;  %1638 = vmatpush1.bf16.msra.mxu1 %v4219_v9  ;;  %5698 = vst [vmem:[#allocation32_spill] sm:$0xff] %v4255_v6 }
 0x3ab   :  { %1598 = vmatprep.subr.bf16.mxu0 %v4222_v10  ;;  %1639 = vmatprep.subr.bf16.mxu1 %v4225_v12 }
 0x3ae   :  { %1599 = vmatpush1.bf16.msra.mxu0 %v4228_v13  ;;  %1640 = vmatpush1.bf16.msra.mxu1 %v4231_v36  ;;  %v3462_v36 = vmov 4  }
 0x3af   :  { %1600 = vmatprep.subr.bf16.mxu0 %v4234_v15  ;;  %1641 = vmatprep.subr.bf16.mxu1 %v4237_v18 }
 0x3b0   :  { %2785 = vset.pattern.permute.xlu1 %v3462_v36 }
 0x3b1   :  { %159 = vperm.xlu1 %2785, %v4151_v42  }
 0x3b2   :  { %1601 = vmatpush1.bf16.msra.mxu0 %v4240_v22  ;;  %1642 = vmatpush1.bf16.msra.mxu1 %v4243_v32  ;;  %v4258_v22 = vld [vmem:[#allocation6 + $0x64] ss:$16 sps:$4 sm:$0xff]   ;;  %v4261_v32 = vld [vmem:[#allocation6 + $0x6c] ss:$16 sps:$4 sm:$0xff]  }
 0x3b3   :  { %1602 = vmatprep.subr.bf16.mxu0 %v4246_v35  ;;  %1643 = vmatprep.subr.bf16.mxu1 %v4249_v37  ;;  %5699 = vst [vmem:[#allocation33_spill] sm:$0xff] %v4258_v22  ;;  %5700 = vst [vmem:[#allocation34_spill] sm:$0xff] %v4261_v32  ;;  %v4264_v35 = vld [vmem:[#allocation6 + $0x60] ss:$16 sps:$4 sm:$0xff]   ;;  %v4267_v37 = vld [vmem:[#allocation6 + $0x68] ss:$16 sps:$4 sm:$0xff]  }
 0x3b4   :  { %5701 = vst [vmem:[#allocation35_spill] sm:$0xff] %v4264_v35  ;;  %5702 = vst [vmem:[#allocation36_spill] sm:$0xff] %v4267_v37 }
 0x3b6   :  { %1603 = vmatpush1.bf16.msra.mxu0 %v4252_v33  ;;  %1644 = vmatpush1.bf16.msra.mxu1 %v4255_v6  ;;  %v4270_v33 = vld [vmem:[#allocation6 + $0x44] ss:$16 sps:$4 sm:$0xff]   ;;  %v4273_v6 = vld [vmem:[#allocation6 + $0x4c] ss:$16 sps:$4 sm:$0xff]  }
 0x3b7   :  { %1604 = vmatprep.subr.bf16.mxu0 %v4258_v22  ;;  %1645 = vmatprep.subr.bf16.mxu1 %v4261_v32  ;;  %5703 = vst [vmem:[#allocation37_spill] sm:$0xff] %v4270_v33  ;;  %5704 = vst [vmem:[#allocation38_spill] sm:$0xff] %v4273_v6  ;;  %v4276_v22 = vld [vmem:[#allocation6 + $0x40] ss:$16 sps:$4 sm:$0xff]   ;;  %v4279_v32 = vld [vmem:[#allocation6 + $0x48] ss:$16 sps:$4 sm:$0xff]  }
 0x3b8   :  { %5705 = vst [vmem:[#allocation39_spill] sm:$0xff] %v4276_v22  ;;  %5706 = vst [vmem:[#allocation40_spill] sm:$0xff] %v4279_v32 }
 0x3ba   :  { %1605 = vmatpush1.bf16.msra.mxu0 %v4264_v35  ;;  %1646 = vmatpush1.bf16.msra.mxu1 %v4267_v37  ;;  %v4282_v35 = vld [vmem:[#allocation6 + $0x24] ss:$16 sps:$4 sm:$0xff]   ;;  %v4285_v37 = vld [vmem:[#allocation6 + $0x2c] ss:$16 sps:$4 sm:$0xff]  }
 0x3bb   :  { %1606 = vmatprep.subr.bf16.mxu0 %v4270_v33  ;;  %1647 = vmatprep.subr.bf16.mxu1 %v4273_v6  ;;  %5707 = vst [vmem:[#allocation41_spill] sm:$0xff] %v4282_v35  ;;  %5708 = vst [vmem:[#allocation42_spill] sm:$0xff] %v4285_v37  ;;  %v4288_v33 = vld [vmem:[#allocation6 + $0x20] ss:$16 sps:$4 sm:$0xff]   ;;  %v4291_v6 = vld [vmem:[#allocation6 + $0x28] ss:$16 sps:$4 sm:$0xff]  }
 0x3bc   :  { %5709 = vst [vmem:[#allocation43_spill] sm:$0xff] %v4288_v33  ;;  %5710 = vst [vmem:[#allocation44_spill] sm:$0xff] %v4291_v6 }
 0x3be   :  { %1607 = vmatpush1.bf16.msra.mxu0 %v4276_v22  ;;  %1648 = vmatpush1.bf16.msra.mxu1 %v4279_v32  ;;  %v4294_v22 = vld [vmem:[#allocation6 + $0x4] ss:$16 sps:$4 sm:$0xff]   ;;  %v4297_v32 = vld [vmem:[#allocation6 + $0xc] ss:$16 sps:$4 sm:$0xff]  }
 0x3bf   :  { %1608 = vmatprep.subr.bf16.mxu0 %v4282_v35  ;;  %1649 = vmatprep.subr.bf16.mxu1 %v4285_v37  ;;  %5711 = vst [vmem:[#allocation45_spill] sm:$0xff] %v4294_v22  ;;  %5712 = vst [vmem:[#allocation46_spill] sm:$0xff] %v4297_v32  ;;  %v4300_v35 = vld [vmem:[#allocation6] ss:$16 sps:$4 sm:$0xff]   ;;  %v4303_v37 = vld [vmem:[#allocation6 + $0x8] ss:$16 sps:$4 sm:$0xff]  }
 0x3c0   :  { %5713 = vst [vmem:[#allocation47_spill] sm:$0xff] %v4300_v35  ;;  %5714 = vst [vmem:[#allocation48_spill] sm:$0xff] %v4303_v37 }
 0x3c2   :  { %1609 = vmatpush1.bf16.msra.mxu0 %v4288_v33  ;;  %1650 = vmatpush1.bf16.msra.mxu1 %v4291_v6  ;;  %v4306_v33 = vld [vmem:[#allocation6 + $0x1e4] ss:$16 sps:$4 sm:$0xff]   ;;  %v4309_v6 = vld [vmem:[#allocation6 + $0x1ec] ss:$16 sps:$4 sm:$0xff]  }
 0x3c3   :  { %1610 = vmatprep.subr.bf16.mxu0 %v4294_v22  ;;  %1651 = vmatprep.subr.bf16.mxu1 %v4297_v32  ;;  %5715 = vst [vmem:[#allocation49_spill] sm:$0xff] %v4306_v33  ;;  %5716 = vst [vmem:[#allocation50_spill] sm:$0xff] %v4309_v6  ;;  %v4312_v22 = vld [vmem:[#allocation6 + $0x1e0] ss:$16 sps:$4 sm:$0xff]   ;;  %v4315_v32 = vld [vmem:[#allocation6 + $0x1e8] ss:$16 sps:$4 sm:$0xff]  }
 0x3c4   :  { %5717 = vst [vmem:[#allocation51_spill] sm:$0xff] %v4312_v22  ;;  %5718 = vst [vmem:[#allocation52_spill] sm:$0xff] %v4315_v32 }
 0x3c6   :  { %1611 = vmatpush1.bf16.msra.mxu0 %v4300_v35  ;;  %1652 = vmatpush1.bf16.msra.mxu1 %v4303_v37  ;;  %v4318_v35 = vld [vmem:[#allocation6 + $0x1c4] ss:$16 sps:$4 sm:$0xff]   ;;  %v4321_v37 = vld [vmem:[#allocation6 + $0x1cc] ss:$16 sps:$4 sm:$0xff]  }
 0x3c7   :  { %1612 = vmatprep.subr.bf16.mxu0 %v4306_v33  ;;  %1653 = vmatprep.subr.bf16.mxu1 %v4309_v6  ;;  %5719 = vst [vmem:[#allocation53_spill] sm:$0xff] %v4318_v35  ;;  %5720 = vst [vmem:[#allocation54_spill] sm:$0xff] %v4321_v37  ;;  %v4324_v33 = vld [vmem:[#allocation6 + $0x1c0] ss:$16 sps:$4 sm:$0xff]   ;;  %v4327_v6 = vld [vmem:[#allocation6 + $0x1c8] ss:$16 sps:$4 sm:$0xff]  }
 0x3c8   :  { %5721 = vst [vmem:[#allocation55_spill] sm:$0xff] %v4324_v33  ;;  %5722 = vst [vmem:[#allocation56_spill] sm:$0xff] %v4327_v6 }
 0x3ca   :  { %1613 = vmatpush2.bf16.msra.mxu0 %v4312_v22  ;;  %1654 = vmatpush2.bf16.msra.mxu1 %v4315_v32  ;;  %v4330_v22 = vld [vmem:[#allocation6 + $0x1a4] ss:$16 sps:$4 sm:$0xff]   ;;  %v4333_v32 = vld [vmem:[#allocation6 + $0x1ac] ss:$16 sps:$4 sm:$0xff]  }
 0x3cb   :  { %1614 = vmatprep.subr.bf16.mxu0 %v4318_v35  ;;  %1655 = vmatprep.subr.bf16.mxu1 %v4321_v37  ;;  %5723 = vst [vmem:[#allocation57_spill] sm:$0xff] %v4330_v22  ;;  %5724 = vst [vmem:[#allocation58_spill] sm:$0xff] %v4333_v32  ;;  %v4336_v35 = vld [vmem:[#allocation6 + $0x1a0] ss:$16 sps:$4 sm:$0xff]   ;;  %v4339_v37 = vld [vmem:[#allocation6 + $0x1a8] ss:$16 sps:$4 sm:$0xff]  }
 0x3cc   :  { %5725 = vst [vmem:[#allocation59_spill] sm:$0xff] %v4336_v35  ;;  %5726 = vst [vmem:[#allocation60_spill] sm:$0xff] %v4339_v37 }
 0x3ce   :  { %1615 = vmatpush2.bf16.msra.mxu0 %v4324_v33  ;;  %1656 = vmatpush2.bf16.msra.mxu1 %v4327_v6  ;;  %v4342_v33 = vld [vmem:[#allocation6 + $0x184] ss:$16 sps:$4 sm:$0xff]   ;;  %v4345_v6 = vld [vmem:[#allocation6 + $0x18c] ss:$16 sps:$4 sm:$0xff]  }
 0x3cf   :  { %1616 = vmatprep.subr.bf16.mxu0 %v4330_v22  ;;  %1657 = vmatprep.subr.bf16.mxu1 %v4333_v32  ;;  %5727 = vst [vmem:[#allocation61_spill] sm:$0xff] %v4342_v33  ;;  %5728 = vst [vmem:[#allocation62_spill] sm:$0xff] %v4345_v6  ;;  %v4348_v22 = vld [vmem:[#allocation6 + $0x180] ss:$16 sps:$4 sm:$0xff]   ;;  %v4351_v32 = vld [vmem:[#allocation6 + $0x188] ss:$16 sps:$4 sm:$0xff]  }
 0x3d0   :  { %5729 = vst [vmem:[#allocation63_spill] sm:$0xff] %v4348_v22  ;;  %5730 = vst [vmem:[#allocation64_spill] sm:$0xff] %v4351_v32 }
 0x3d2   :  { %1617 = vmatpush2.bf16.msra.mxu0 %v4336_v35  ;;  %1658 = vmatpush2.bf16.msra.mxu1 %v4339_v37  ;;  %v4354_v35 = vld [vmem:[#allocation6 + $0x164] ss:$16 sps:$4 sm:$0xff]   ;;  %v4357_v37 = vld [vmem:[#allocation6 + $0x16c] ss:$16 sps:$4 sm:$0xff]  }
 0x3d3   :  { %1618 = vmatprep.subr.bf16.mxu0 %v4342_v33  ;;  %1659 = vmatprep.subr.bf16.mxu1 %v4345_v6  ;;  %5731 = vst [vmem:[#allocation16_spill] sm:$0xff] %v4354_v35  ;;  %5732 = vst [vmem:[#allocation17_spill] sm:$0xff] %v4357_v37  ;;  %v4360_v33 = vld [vmem:[#allocation6 + $0x160] ss:$16 sps:$4 sm:$0xff]   ;;  %v4363_v6 = vld [vmem:[#allocation6 + $0x168] ss:$16 sps:$4 sm:$0xff]  }
 0x3d4   :  { %5733 = vst [vmem:[#allocation18_spill] sm:$0xff] %v4360_v33  ;;  %5734 = vst [vmem:[#allocation19_spill] sm:$0xff] %v4363_v6 }
 0x3d6   :  { %1619 = vmatpush2.bf16.msra.mxu0 %v4348_v22  ;;  %1660 = vmatpush2.bf16.msra.mxu1 %v4351_v32  ;;  %v4366_v22 = vld [vmem:[#allocation6 + $0x144] ss:$16 sps:$4 sm:$0xff]   ;;  %v4369_v32 = vld [vmem:[#allocation6 + $0x14c] ss:$16 sps:$4 sm:$0xff]  }
 0x3d7   :  { %1620 = vmatprep.subr.bf16.mxu0 %v4354_v35  ;;  %1661 = vmatprep.subr.bf16.mxu1 %v4357_v37  ;;  %5735 = vst [vmem:[#allocation20_spill] sm:$0xff] %v4366_v22  ;;  %5736 = vst [vmem:[#allocation21_spill] sm:$0xff] %v4369_v32  ;;  %v4372_v35 = vld [vmem:[#allocation6 + $0x140] ss:$16 sps:$4 sm:$0xff]   ;;  %v4375_v37 = vld [vmem:[#allocation6 + $0x148] ss:$16 sps:$4 sm:$0xff]  }
 0x3d8   :  { %5737 = vst [vmem:[#allocation22_spill] sm:$0xff] %v4372_v35  ;;  %5738 = vst [vmem:[#allocation23_spill] sm:$0xff] %v4375_v37 }
 0x3da   :  { %1621 = vmatpush2.bf16.msra.mxu0 %v4360_v33  ;;  %1662 = vmatpush2.bf16.msra.mxu1 %v4363_v6  ;;  %v4378_v33 = vld [vmem:[#allocation6 + $0x124] ss:$16 sps:$4 sm:$0xff]   ;;  %v4381_v6 = vld [vmem:[#allocation6 + $0x12c] ss:$16 sps:$4 sm:$0xff]  }
 0x3db   :  { %1622 = vmatprep.subr.bf16.mxu0 %v4366_v22  ;;  %1663 = vmatprep.subr.bf16.mxu1 %v4369_v32  ;;  %5739 = vst [vmem:[#allocation73_spill] sm:$0xff] %v4378_v33  ;;  %5740 = vst [vmem:[#allocation74_spill] sm:$0xff] %v4381_v6  ;;  %v4384_v22 = vld [vmem:[#allocation6 + $0x120] ss:$16 sps:$4 sm:$0xff]   ;;  %v4387_v32 = vld [vmem:[#allocation6 + $0x128] ss:$16 sps:$4 sm:$0xff]  }
 0x3dc   :  { %5741 = vst [vmem:[#allocation75_spill] sm:$0xff] %v4384_v22  ;;  %5742 = vst [vmem:[#allocation76_spill] sm:$0xff] %v4387_v32 }
 0x3de   :  { %1623 = vmatpush2.bf16.msra.mxu0 %v4372_v35  ;;  %1664 = vmatpush2.bf16.msra.mxu1 %v4375_v37  ;;  %v4390_v35 = vld [vmem:[#allocation6 + $0x104] ss:$16 sps:$4 sm:$0xff]   ;;  %v4393_v37 = vld [vmem:[#allocation6 + $0x10c] ss:$16 sps:$4 sm:$0xff]  }
 0x3df   :  { %1624 = vmatprep.subr.bf16.mxu0 %v4378_v33  ;;  %1665 = vmatprep.subr.bf16.mxu1 %v4381_v6  ;;  %5743 = vst [vmem:[#allocation77_spill] sm:$0xff] %v4390_v35  ;;  %5744 = vst [vmem:[#allocation78_spill] sm:$0xff] %v4393_v37  ;;  %v4396_v33 = vld [vmem:[#allocation6 + $0x100] ss:$16 sps:$4 sm:$0xff]   ;;  %v4399_v6 = vld [vmem:[#allocation6 + $0x108] ss:$16 sps:$4 sm:$0xff]  }
 0x3e0   :  { %5745 = vst [vmem:[#allocation79_spill] sm:$0xff] %v4396_v33  ;;  %5746 = vst [vmem:[#allocation80_spill] sm:$0xff] %v4399_v6 }
 0x3e2   :  { %1625 = vmatpush2.bf16.msra.mxu0 %v4384_v22  ;;  %1666 = vmatpush2.bf16.msra.mxu1 %v4387_v32 }
 0x3e3   :  { %1626 = vmatprep.subr.bf16.mxu0 %v4390_v35  ;;  %1667 = vmatprep.subr.bf16.mxu1 %v4393_v37 }
 0x3e6   :  { %1627 = vmatpush2.bf16.msra.mxu0 %v4396_v33  ;;  %1668 = vmatpush2.bf16.msra.mxu1 %v4399_v6 }
 0x3e7   :  { %1707 = vmatprep.subr.bf16.mxu0 %v4140_v52  ;;  %1748 = vmatprep.subr.bf16.mxu1 %v4143_v26 }
 0x449   :  { %v1404_v32 = vpop.f32.mrf.mxu0  ;;  %v1445_v22 = vpop.f32.mrf.mxu1 }
 0x44a   :  { %v1452_v35 = vadd.f32 %v1404_v32, %v5669_v34  ;;  %v1454_v34 = vadd.f32 %v1445_v22, %v5672_v11 }
 0x44b   :  { %v1406_v18 = vpop.f32.mrf.mxu0  ;;  %v1447_v15 = vpop.f32.mrf.mxu1 }
 0x44c   :  { %v2734_v37 = vmul.f32 -1.442695, %v1452_v35  ;;  %v1453_v13 = vadd.f32 %v1406_v18, %v5670_v40  ;;  %v1455_v26 = vadd.f32 %v1447_v15, %v5671_v7  ;;  %v148_v35 = vpop.permute.xlu1 %147 }
 0x44d   :  { %v1408_v33 = vpop.f32.mrf.mxu0  ;;  %v1449_v12 = vpop.f32.mrf.mxu1 }
 0x44e   :  { %3014 = vpow2.f32 %v2734_v37  ;;  %v2735_v6 = vmul.f32 -1.442695, %v1453_v13  ;;  %v2736_v9 = vmul.f32 -1.442695, %v1455_v26  ;;  %v150_v12 = vmul.f32 %v148_v35, %v5673_v17 }
 0x44f   :  { %v1409_v52 = vpop.f32.mrf.mxu0  ;;  %v1450_v10 = vpop.f32.mrf.mxu1  ;;  %v153_v17 = vmul.f32 %v148_v35, %v5624_v28 }
 0x450   :  { %3016 = vpow2.f32 %v2735_v6  ;;  %v151_v52 = vmul.f32 %v148_v35, %v5674_v19  ;;  %v154_v10 = vadd.f32 %v150_v12, %v5675_v21 }
 0x451   :  { %3018 = vpow2.f32 %v2736_v9 }
 0x452   :  { %v155_v13 = vadd.f32 %v151_v52, %v5676_v23 }
 0x45b   :  { %v3015_v32 = vpop.eup %3014 }
 0x45c   :  { %v1459_v41 = vadd.f32 1.0, %v3015_v32 }
 0x45d   :  { %v3017_v36 = vpop.eup %3016 }
 0x45e   :  { %3020 = vrcp.f32 %v1459_v41  ;;  %v1465_v18 = vadd.f32 1.0, %v3017_v36  ;;  %v3019_v37 = vpop.eup %3018 }
 0x45f   :  { %3022 = vtanh.f32 %v1454_v34 }
 0x460   :  { %3024 = vrcp.f32 %v1465_v18  ;;  %v1472_v18 = vadd.f32 1.0, %v3019_v37 }
 0x469   :  { %v1515_v26 = vpop.f32.mrf.mxu0  ;;  %v1556_v15 = vpop.f32.mrf.mxu1 }
 0x46a   :  { %v1563_v22 = vadd.f32 %v1515_v26, %v154_v10  ;;  %v157_v26 = vadd.f32 %v153_v17, %v3831_v46 }
 0x46b   :  { %v3021_v33 = vpop.eup %3020  ;;  %v1517_v6 = vpop.f32.mrf.mxu0 }
 0x46c   :  { %v1558_v9 = vpop.f32.mrf.mxu1  ;;  %v3023_v41 = vpop.eup %3022  ;;  %v2737_v32 = vmul.f32 -1.442695, %v1563_v22  ;;  %v1564_v34 = vadd.f32 %v1517_v6, %v155_v13  ;;  %v152_v13 = vmul.f32 %v148_v35, %v5625_v58 }
 0x46d   :  { %v3025_v36 = vpop.eup %3024  ;;  %v1519_v11 = vpop.f32.mrf.mxu0  ;;  %v1476_v7 = vmul.f32 %v3023_v41, %v3021_v33  ;;  %v1566_v37 = vadd.f32 %v1558_v9, %v157_v26 }
 0x46e   :  { %v1560_v19 = vpop.f32.mrf.mxu1  ;;  %v1475_v12 = vmul.f32 %v3025_v36, %v4162_v20  ;;  %3026 = vpow2.f32 %v2737_v32  ;;  %v2738_v52 = vmul.f32 -1.442695, %v1564_v34  ;;  %v156_v11 = vadd.f32 %v152_v13, %v3839_v0 }
 0x46f   :  { %v1520_v23 = vpop.f32.mrf.mxu0  ;;  %v2739_v19 = vmul.f32 -1.442695, %v1566_v37 }
 0x470   :  { %v1561_v21 = vpop.f32.mrf.mxu1  ;;  %3028 = vpow2.f32 %v2738_v52  ;;  %v4415_v10 = vadd.f32 %v1476_v7, %v1475_v12  ;;  %v1565_v20 = vadd.f32 %v1556_v15, %v156_v11  ;;  %v4425_v11 = vld [vmem:[#allocation2 + $0x3] ss:$0 sm:$0xff] }
 0x471   :  { %3030 = vrcp.f32 %v1472_v18 }
 0x472   :  { %3032 = vtanh.f32 %v4415_v10 }
 0x473   :  { %3034 = vpow2.f32 %v2739_v19 }
 0x47b   :  { %v3027_v22 = vpop.eup %3026 }
 0x47c   :  { %v1570_v33 = vadd.f32 1.0, %v3027_v22  ;;  %v4428_v22 = vld [vmem:[#allocation2 + $0xb] ss:$0 sm:$0xff] }
 0x47d   :  { %v3029_v6 = vpop.eup %3028 }
 0x47e   :  { %v3031_v21 = vpop.eup %3030  ;;  %3036 = vrcp.f32 %v1570_v33  ;;  %v1576_v7 = vadd.f32 1.0, %v3029_v6  ;;  %v5775_v6 = vld [vmem:[#allocation47_spill] sm:$0xff] }
 0x47f   :  { %v3033_v23 = vpop.eup %3032  ;;  %3038 = vtanh.f32 %v1565_v20 }
 0x480   :  { %3040 = vrcp.f32 %v1576_v7  ;;  %v1479_v17 = vmul.f32 %v3033_v23, %v3031_v21  ;;  %v3035_v35 = vpop.eup %3034  ;;  %v5776_v21 = vld [vmem:[#allocation48_spill] sm:$0xff]  ;;  %v5777_v7 = vld [vmem:[#allocation49_spill] sm:$0xff]  ;;  %v5778_v23 = vld [vmem:[#allocation50_spill] sm:$0xff] }
 0x481   :  { %v1583_v36 = vadd.f32 1.0, %v3035_v35  ;;  %v5781_v35 = vld [vmem:[#allocation53_spill] sm:$0xff] }
 0x482   :  { %v1595_v41 = vpack.c.bf16 %v1479_v17, %v1479_v17  ;;  %v5779_v17 = vld [vmem:[#allocation51_spill] sm:$0xff] }
 0x483   :  { %3042 = vrcp.f32 %v1583_v36  ;;  %v5785_v36 = vld [vmem:[#allocation57_spill] sm:$0xff] }
 0x484   :  { %1628 = vmatprep.mubr.bf16.mxu0 %v1595_v41  ;;  %1669 = vmatprep.mubr.bf16.mxu1 %v1595_v41  ;;  %v5780_v41 = vld [vmem:[#allocation52_spill] sm:$0xff] }
 0x48b   :  { %v3037_v9 = vpop.eup %3036 }
 0x48c   :  { %v3039_v32 = vpop.eup %3038 }
 0x48d   :  { %v3041_v34 = vpop.eup %3040  ;;  %v1587_v18 = vmul.f32 %v3039_v32, %v3037_v9  ;;  %v5782_v9 = vld [vmem:[#allocation54_spill] sm:$0xff]  ;;  %v5783_v32 = vld [vmem:[#allocation55_spill] sm:$0xff] }
 0x48e   :  { %v1586_v15 = vmul.f32 %v3041_v34, %v4169_v14  ;;  %v5766_v14 = vld [vmem:[#allocation38_spill] sm:$0xff]  ;;  %v5784_v34 = vld [vmem:[#allocation56_spill] sm:$0xff] }
 0x490   :  { %v4422_v12 = vadd.f32 %v1587_v18, %v1586_v15  ;;  %v3043_v52 = vpop.eup %3042  ;;  %v5786_v18 = vld [vmem:[#allocation58_spill] sm:$0xff]  ;;  %v5787_v15 = vld [vmem:[#allocation59_spill] sm:$0xff] }
 0x492   :  { %3044 = vtanh.f32 %v4422_v12 }
 0x49f   :  { %v3045_v26 = vpop.eup %3044 }
 0x4a0   :  { %v1590_v13 = vmul.f32 %v3045_v26, %v3043_v52  ;;  %v5788_v52 = vld [vmem:[#allocation60_spill] sm:$0xff]  ;;  %v5789_v26 = vld [vmem:[#allocation61_spill] sm:$0xff] }
 0x4a2   :  { %v1591_v37 = vmax.f32 %v1590_v13, 0.0 }
 0x4a4   :  { %v1592_v19 = vmul.f32 %v4425_v11, %v1591_v37  ;;  %v5791_v37 = vld [vmem:[#allocation63_spill] sm:$0xff] }
 0x4a6   :  { %v1593_v20 = vadd.f32 %v4428_v22, %v1592_v19  ;;  %v5792_v19 = vld [vmem:[#allocation64_spill] sm:$0xff] }
 0x4a8   :  { %v1594_v33 = vpack.c.bf16 %v1593_v20, %v1593_v20  ;;  %v5793_v20 = vld [vmem:[#allocation16_spill] sm:$0xff] }
 0x4aa   :  { %1629 = vmatmul.mubr.bf16.vlgmr.msra.gmra.mxu0 %v1594_v33  ;;  %1670 = vmatmul.mubr.bf16.vlgmr.msra.gmra.mxu1 %v1594_v33  ;;  %v5794_v33 = vld [vmem:[#allocation17_spill] sm:$0xff] }
 0x4ab   :  { %1708 = vmatpush1.bf16.msra.mxu0 %v3986_v59  ;;  %1749 = vmatpush1.bf16.msra.mxu1 %v3989_v48  ;;  %v1706_v59 = vpack.c.bf16 %v1590_v13, %v1590_v13  ;;  %v5747_v48 = vld [vmem:[#allocation26_spill] sm:$0xff] }
 0x4ac   :  { %1709 = vmatprep.subr.bf16.mxu0 %v3992_v56  ;;  %1750 = vmatprep.subr.bf16.mxu1 %v3995_v57  ;;  %v5748_v56 = vld [vmem:[#allocation27_spill] sm:$0xff]  ;;  %v5749_v57 = vld [vmem:[#allocation28_spill] sm:$0xff]  ;;  %v5790_v13 = vld [vmem:[#allocation62_spill] sm:$0xff] }
 0x4ad   :  { %1739 = vmatprep.mubr.bf16.mxu0 %v5557_v27  ;;  %1780 = vmatprep.mubr.bf16.mxu1 %v5557_v27 }
 0x4af   :  { %1710 = vmatpush1.bf16.msra.mxu0 %v4000_v25  ;;  %1751 = vmatpush1.bf16.msra.mxu1 %v4003_v49  ;;  %v5750_v25 = vld [vmem:[#allocation29_spill] sm:$0xff]  ;;  %v5751_v49 = vld [vmem:[#allocation30_spill] sm:$0xff] }
 0x4b0   :  { %1711 = vmatprep.subr.bf16.mxu0 %v4006_v1  ;;  %1752 = vmatprep.subr.bf16.mxu1 %v4009_v45  ;;  %v5752_v1 = vld [vmem:[#allocation31_spill] sm:$0xff]  ;;  %v5753_v45 = vld [vmem:[#allocation9_spill] sm:$0xff] }
 0x4b3   :  { %1712 = vmatpush1.bf16.msra.mxu0 %v4012_v31  ;;  %1753 = vmatpush1.bf16.msra.mxu1 %v4015_v50  ;;  %v5754_v31 = vld [vmem:[#allocation10_spill] sm:$0xff]  ;;  %v5755_v50 = vld [vmem:[#allocation65_spill] sm:$0xff] }
 0x4b4   :  { %1713 = vmatprep.subr.bf16.mxu0 %v4018_v63  ;;  %1754 = vmatprep.subr.bf16.mxu1 %v4021_v2  ;;  %v5756_v63 = vld [vmem:[#allocation66_spill] sm:$0xff]  ;;  %v5757_v2 = vld [vmem:[#allocation11_spill] sm:$0xff] }
 0x4b7   :  { %1714 = vmatpush1.bf16.msra.mxu0 %v4024_v47  ;;  %1755 = vmatpush1.bf16.msra.mxu1 %v4027_v60  ;;  %v5758_v47 = vld [vmem:[#allocation71_spill] sm:$0xff]  ;;  %v5759_v60 = vld [vmem:[#allocation72_spill] sm:$0xff] }
 0x4b8   :  { %1715 = vmatprep.subr.bf16.mxu0 %v4030_v30  ;;  %1756 = vmatprep.subr.bf16.mxu1 %v5677_v53  ;;  %v5760_v30 = vld [vmem:[#allocation32_spill] sm:$0xff]  ;;  %v5767_v53 = vld [vmem:[#allocation39_spill] sm:$0xff] }
 0x4bb   :  { %1716 = vmatpush1.bf16.msra.mxu0 %v5678_v61  ;;  %1757 = vmatpush1.bf16.msra.mxu1 %v5679_v62  ;;  %v5768_v61 = vld [vmem:[#allocation40_spill] sm:$0xff]  ;;  %v5769_v62 = vld [vmem:[#allocation41_spill] sm:$0xff] }
 0x4bc   :  { %1717 = vmatprep.subr.bf16.mxu0 %v5680_v38  ;;  %1758 = vmatprep.subr.bf16.mxu1 %v5681_v24  ;;  %v5770_v38 = vld [vmem:[#allocation42_spill] sm:$0xff]  ;;  %v5771_v24 = vld [vmem:[#allocation43_spill] sm:$0xff] }
 0x4bf   :  { %1718 = vmatpush1.bf16.msra.mxu0 %v5682_v39  ;;  %1759 = vmatpush1.bf16.msra.mxu1 %v5683_v43  ;;  %v5772_v39 = vld [vmem:[#allocation44_spill] sm:$0xff]  ;;  %v5773_v43 = vld [vmem:[#allocation45_spill] sm:$0xff] }
 0x4c0   :  { %1719 = vmatprep.subr.bf16.mxu0 %v4054_v54  ;;  %1760 = vmatprep.subr.bf16.mxu1 %v5684_v44  ;;  %v5762_v54 = vld [vmem:[#allocation34_spill] sm:$0xff] }
 0x4c1   :  { %v5774_v44 = vld [vmem:[#allocation46_spill] sm:$0xff] }
 0x4c3   :  { %1720 = vmatpush1.bf16.msra.mxu0 %v4060_v3  ;;  %1761 = vmatpush1.bf16.msra.mxu1 %v4063_v29  ;;  %v5763_v3 = vld [vmem:[#allocation35_spill] sm:$0xff]  ;;  %v5764_v29 = vld [vmem:[#allocation36_spill] sm:$0xff] }
 0x4c4   :  { %1721 = vmatprep.subr.bf16.mxu0 %v4066_v55  ;;  %1762 = vmatprep.subr.bf16.mxu1 %v4069_v51  ;;  %v5761_v51 = vld [vmem:[#allocation33_spill] sm:$0xff] }
 0x4c5   :  { %v5765_v55 = vld [vmem:[#allocation37_spill] sm:$0xff] }
 0x4c7   :  { %1722 = vmatpush1.bf16.msra.mxu0 %v4204_v4  ;;  %1763 = vmatpush1.bf16.msra.mxu1 %v4207_v5 }
 0x4c8   :  { %1822 = vmatprep.subr.bf16.mxu0 %v4210_v8  ;;  %1863 = vmatprep.subr.bf16.mxu1 %v4213_v16 }
 0x4ca   :  { %1740 = vmatmul.mubr.bf16.vlgmr.msra.gmra.mxu0 %v1706_v59  ;;  %1781 = vmatmul.mubr.bf16.vlgmr.msra.gmra.mxu1 %v1706_v59  ;;  %v5795_v59 = vld [vmem:[#allocation18_spill] sm:$0xff] }
 0x4cb   :  { %1823 = vmatpush1.bf16.msra.mxu0 %v5747_v48  ;;  %1864 = vmatpush1.bf16.msra.mxu1 %v5748_v56 }
 0x4cc   :  { %1824 = vmatprep.subr.bf16.mxu0 %v5749_v57  ;;  %1865 = vmatprep.subr.bf16.mxu1 %v5750_v25 }
 0x4cf   :  { %1825 = vmatpush1.bf16.msra.mxu0 %v5751_v49  ;;  %1866 = vmatpush1.bf16.msra.mxu1 %v5752_v1 }
 0x4d0   :  { %1826 = vmatprep.subr.bf16.mxu0 %v5753_v45  ;;  %1867 = vmatprep.subr.bf16.mxu1 %v5754_v31 }
 0x4d3   :  { %1827 = vmatpush1.bf16.msra.mxu0 %v5755_v50  ;;  %1868 = vmatpush1.bf16.msra.mxu1 %v5756_v63 }
 0x4d4   :  { %1828 = vmatprep.subr.bf16.mxu0 %v5757_v2  ;;  %1869 = vmatprep.subr.bf16.mxu1 %v5758_v47 }
 0x4d7   :  { %1829 = vmatpush1.bf16.msra.mxu0 %v5759_v60  ;;  %1870 = vmatpush1.bf16.msra.mxu1 %v5760_v30 }
 0x4d8   :  { %1830 = vmatprep.subr.bf16.mxu0 %v5761_v51  ;;  %1871 = vmatprep.subr.bf16.mxu1 %v5762_v54 }
 0x4db   :  { %1831 = vmatpush1.bf16.msra.mxu0 %v5763_v3  ;;  %1872 = vmatpush1.bf16.msra.mxu1 %v5764_v29 }
 0x4dc   :  { %1832 = vmatprep.subr.bf16.mxu0 %v5765_v55  ;;  %1873 = vmatprep.subr.bf16.mxu1 %v5766_v14 }
 0x4df   :  { %1833 = vmatpush1.bf16.msra.mxu0 %v5767_v53  ;;  %1874 = vmatpush1.bf16.msra.mxu1 %v5768_v61 }
 0x4e0   :  { %1834 = vmatprep.subr.bf16.mxu0 %v5769_v62  ;;  %1875 = vmatprep.subr.bf16.mxu1 %v5770_v38 }
 0x4e3   :  { %1835 = vmatpush1.bf16.msra.mxu0 %v5771_v24  ;;  %1876 = vmatpush1.bf16.msra.mxu1 %v5772_v39 }
 0x4e4   :  { %1836 = vmatprep.subr.bf16.mxu0 %v5773_v43  ;;  %1877 = vmatprep.subr.bf16.mxu1 %v5774_v44 }
 0x4e7   :  { %1837 = vmatpush1.bf16.msra.mxu0 %v5775_v6  ;;  %1878 = vmatpush1.bf16.msra.mxu1 %v5776_v21 }
 0x4e8   :  { %1838 = vmatprep.subr.bf16.mxu0 %v5777_v7  ;;  %1879 = vmatprep.subr.bf16.mxu1 %v5778_v23 }
 0x4eb   :  { %1839 = vmatpush2.bf16.msra.mxu0 %v5779_v17  ;;  %1880 = vmatpush2.bf16.msra.mxu1 %v5780_v41 }
 0x4ec   :  { %1840 = vmatprep.subr.bf16.mxu0 %v5781_v35  ;;  %1881 = vmatprep.subr.bf16.mxu1 %v5782_v9  ;;  %v3463_v9 = vmov 5  }
 0x4ed   :  { %2786 = vset.pattern.permute.xlu0 %v3463_v9 }
 0x4ee   :  { %171 = vperm.xlu0 %2786, %v4151_v42   ;;  %v160_v42 = vpop.permute.xlu1 %159 }
 0x4ef   :  { %1841 = vmatpush2.bf16.msra.mxu0 %v5783_v32  ;;  %1882 = vmatpush2.bf16.msra.mxu1 %v5784_v34  ;;  %v5811_v34 = vld [vmem:[#allocation12_spill] sm:$0xff] }
 0x4f0   :  { %1842 = vmatprep.subr.bf16.mxu0 %v5785_v36  ;;  %1883 = vmatprep.subr.bf16.mxu1 %v5786_v18  ;;  %v5796_v36 = vld [vmem:[#allocation19_spill] sm:$0xff]  ;;  %v5797_v18 = vld [vmem:[#allocation20_spill] sm:$0xff] }
 0x4f3   :  { %1843 = vmatpush2.bf16.msra.mxu0 %v5787_v15  ;;  %1884 = vmatpush2.bf16.msra.mxu1 %v5788_v52  ;;  %v5798_v15 = vld [vmem:[#allocation21_spill] sm:$0xff]  ;;  %v5799_v52 = vld [vmem:[#allocation22_spill] sm:$0xff] }
 0x4f4   :  { %1844 = vmatprep.subr.bf16.mxu0 %v5789_v26  ;;  %1885 = vmatprep.subr.bf16.mxu1 %v5790_v13  ;;  %v5800_v26 = vld [vmem:[#allocation23_spill] sm:$0xff]  ;;  %v5801_v13 = vld [vmem:[#allocation73_spill] sm:$0xff] }
 0x4f7   :  { %1845 = vmatpush2.bf16.msra.mxu0 %v5791_v37  ;;  %1886 = vmatpush2.bf16.msra.mxu1 %v5792_v19  ;;  %v5802_v37 = vld [vmem:[#allocation74_spill] sm:$0xff]  ;;  %v5803_v19 = vld [vmem:[#allocation75_spill] sm:$0xff] }
 0x4f8   :  { %1846 = vmatprep.subr.bf16.mxu0 %v5793_v20  ;;  %1887 = vmatprep.subr.bf16.mxu1 %v5794_v33  ;;  %v5804_v20 = vld [vmem:[#allocation76_spill] sm:$0xff]  ;;  %v5805_v33 = vld [vmem:[#allocation77_spill] sm:$0xff] }
 0x4fb   :  { %1847 = vmatpush2.bf16.msra.mxu0 %v5795_v59  ;;  %1888 = vmatpush2.bf16.msra.mxu1 %v5796_v36  ;;  %v5806_v59 = vld [vmem:[#allocation78_spill] sm:$0xff]  ;;  %v5807_v36 = vld [vmem:[#allocation79_spill] sm:$0xff] }
 0x4fc   :  { %1848 = vmatprep.subr.bf16.mxu0 %v5797_v18  ;;  %1889 = vmatprep.subr.bf16.mxu1 %v5798_v15  ;;  %v5808_v18 = vld [vmem:[#allocation80_spill] sm:$0xff] }
 0x4fd   :  { %v5809_v15 = vld [vmem:[#allocation24_spill] sm:$0xff] }
 0x4ff   :  { %1849 = vmatpush2.bf16.msra.mxu0 %v5799_v52  ;;  %1890 = vmatpush2.bf16.msra.mxu1 %v5800_v26  ;;  %v5810_v52 = vld [vmem:[#allocation25_spill] sm:$0xff] }
 0x500   :  { %1850 = vmatprep.subr.bf16.mxu0 %v5801_v13  ;;  %1891 = vmatprep.subr.bf16.mxu1 %v5802_v37 }
 0x503   :  { %1851 = vmatpush2.bf16.msra.mxu0 %v5803_v19  ;;  %1892 = vmatpush2.bf16.msra.mxu1 %v5804_v20 }
 0x504   :  { %1852 = vmatprep.subr.bf16.mxu0 %v5805_v33  ;;  %1893 = vmatprep.subr.bf16.mxu1 %v5806_v59 }
 0x507   :  { %1853 = vmatpush2.bf16.msra.mxu0 %v5807_v36  ;;  %1894 = vmatpush2.bf16.msra.mxu1 %v5808_v18 }
 0x508   :  { %1933 = vmatprep.subr.bf16.mxu0 %v5809_v15  ;;  %1974 = vmatprep.subr.bf16.mxu1 %v5810_v52  ;;  %v5812_v52 = vld [vmem:[#allocation14_spill] sm:$0xff] }
 0x56a   :  { %v1630_v26 = vpop.f32.mrf.mxu0  ;;  %v1671_v13 = vpop.f32.mrf.mxu1 }
 0x56b   :  { %v1678_v37 = vadd.f32 %v1630_v26, %v5811_v34  ;;  %v5813_v34 = vld [vmem:[#allocation15_spill] sm:$0xff] }
 0x56c   :  { %v1632_v32 = vpop.f32.mrf.mxu0  ;;  %v1673_v19 = vpop.f32.mrf.mxu1  ;;  %v1680_v23 = vadd.f32 %v1671_v13, %v5813_v34 }
 0x56d   :  { %v2740_v20 = vmul.f32 -1.442695, %v1678_v37  ;;  %v1679_v33 = vadd.f32 %v1632_v32, %v5670_v40  ;;  %v1681_v41 = vadd.f32 %v1673_v19, %v5812_v52 }
 0x56e   :  { %v1634_v36 = vpop.f32.mrf.mxu0  ;;  %v1675_v59 = vpop.f32.mrf.mxu1 }
 0x56f   :  { %3046 = vpow2.f32 %v2740_v20  ;;  %v2741_v18 = vmul.f32 -1.442695, %v1679_v33  ;;  %v2742_v17 = vmul.f32 -1.442695, %v1681_v41  ;;  %v5814_v36 = vld [vmem:[#allocation67_spill] sm:$0xff]  ;;  %v5815_v20 = vld [vmem:[#allocation68_spill] sm:$0xff] }
 0x570   :  { %v1635_v15 = vpop.f32.mrf.mxu0  ;;  %v1676_v35 = vpop.f32.mrf.mxu1  ;;  %v162_v37 = vmul.f32 %v160_v42, %v5814_v36  ;;  %v163_v33 = vmul.f32 %v160_v42, %v5815_v20  ;;  %v5817_v59 = vld [vmem:[#allocation70_spill] sm:$0xff]  ;;  %v165_v36 = vmul.f32 %v160_v42, %v5624_v28 }
 0x571   :  { %3048 = vpow2.f32 %v2741_v18  ;;  %v5816_v35 = vld [vmem:[#allocation69_spill] sm:$0xff] }
 0x572   :  { %3050 = vpow2.f32 %v2742_v17  ;;  %v166_v18 = vadd.f32 %v162_v37, %v5816_v35  ;;  %v167_v19 = vadd.f32 %v163_v33, %v5817_v59 }
 0x57c   :  { %v3047_v26 = vpop.eup %3046 }
 0x57d   :  { %v1685_v7 = vadd.f32 1.0, %v3047_v26 }
 0x57e   :  { %v3049_v9 = vpop.eup %3048 }
 0x57f   :  { %3052 = vrcp.f32 %v1685_v7  ;;  %v1691_v32 = vadd.f32 1.0, %v3049_v9  ;;  %v3051_v52 = vpop.eup %3050 }
 0x580   :  { %3054 = vtanh.f32 %v1680_v23 }
 0x581   :  { %3056 = vrcp.f32 %v1691_v32  ;;  %v1698_v32 = vadd.f32 1.0, %v3051_v52 }
 0x58a   :  { %v1741_v41 = vpop.f32.mrf.mxu0  ;;  %v1782_v15 = vpop.f32.mrf.mxu1 }
 0x58b   :  { %v1789_v13 = vadd.f32 %v1741_v41, %v166_v18  ;;  %v169_v41 = vadd.f32 %v165_v36, %v3831_v46 }
 0x58c   :  { %v3053_v26 = vpop.eup %3052  ;;  %v1743_v34 = vpop.f32.mrf.mxu0 }
 0x58d   :  { %v1784_v17 = vpop.f32.mrf.mxu1  ;;  %v3055_v7 = vpop.eup %3054  ;;  %v2743_v9 = vmul.f32 -1.442695, %v1789_v13  ;;  %v1790_v23 = vadd.f32 %v1743_v34, %v167_v19  ;;  %v164_v34 = vmul.f32 %v160_v42, %v5625_v58 }
 0x58e   :  { %v3057_v40 = vpop.eup %3056  ;;  %v1745_v21 = vpop.f32.mrf.mxu0  ;;  %v1702_v6 = vmul.f32 %v3055_v7, %v3053_v26  ;;  %v1792_v52 = vadd.f32 %v1784_v17, %v169_v41 }
 0x58f   :  { %v1786_v20 = vpop.f32.mrf.mxu1  ;;  %v1701_v37 = vmul.f32 %v3057_v40, %v4415_v10  ;;  %3058 = vpow2.f32 %v2743_v9  ;;  %v2744_v33 = vmul.f32 -1.442695, %v1790_v23  ;;  %v168_v21 = vadd.f32 %v164_v34, %v3839_v0 }
 0x590   :  { %v1746_v59 = vpop.f32.mrf.mxu0  ;;  %v2745_v20 = vmul.f32 -1.442695, %v1792_v52 }
 0x591   :  { %v1787_v35 = vpop.f32.mrf.mxu1  ;;  %3060 = vpow2.f32 %v2744_v33  ;;  %v4540_v18 = vadd.f32 %v1702_v6, %v1701_v37  ;;  %v1791_v40 = vadd.f32 %v1782_v15, %v168_v21 }
 0x592   :  { %3062 = vrcp.f32 %v1698_v32 }
 0x593   :  { %3064 = vtanh.f32 %v4540_v18 }
 0x594   :  { %3066 = vpow2.f32 %v2745_v20 }
 0x59c   :  { %v3059_v19 = vpop.eup %3058 }
 0x59d   :  { %v1796_v10 = vadd.f32 1.0, %v3059_v19 }
 0x59e   :  { %v3061_v13 = vpop.eup %3060 }
 0x59f   :  { %v3063_v35 = vpop.eup %3062  ;;  %3068 = vrcp.f32 %v1796_v10  ;;  %v1802_v6 = vadd.f32 1.0, %v3061_v13  ;;  %v4561_v10 = vld [vmem:[#allocation4 + $0xc4] ss:$16 sps:$4 sm:$0xff]   ;;  %v4564_v13 = vld [vmem:[#allocation4 + $0xcc] ss:$16 sps:$4 sm:$0xff]  }
 0x5a0   :  { %v3065_v59 = vpop.eup %3064  ;;  %3070 = vtanh.f32 %v1791_v40  ;;  %v4555_v40 = vld [vmem:[#allocation4 + $0xe0] ss:$16 sps:$4 sm:$0xff]  }
 0x5a1   :  { %3072 = vrcp.f32 %v1802_v6  ;;  %v1705_v36 = vmul.f32 %v3065_v59, %v3063_v35  ;;  %v3067_v42 = vpop.eup %3066  ;;  %v4569_v35 = vld [vmem:[#allocation4 + $0xc0] ss:$16 sps:$4 sm:$0xff]   ;;  %v4572_v6 = vld [vmem:[#allocation4 + $0xc8] ss:$16 sps:$4 sm:$0xff]   ;;  %v4575_v59 = vld [vmem:[#allocation4 + $0xa4] ss:$16 sps:$4 sm:$0xff]  }
 0x5a2   :  { %v1809_v23 = vadd.f32 1.0, %v3067_v42  ;;  %v4584_v42 = vld [vmem:[#allocation4 + $0xa8] ss:$16 sps:$4 sm:$0xff]  }
 0x5a3   :  { %v1821_v26 = vpack.c.bf16 %v1705_v36, %v1705_v36  ;;  %v4578_v36 = vld [vmem:[#allocation4 + $0xac] ss:$16 sps:$4 sm:$0xff]  }
 0x5a4   :  { %3074 = vrcp.f32 %v1809_v23  ;;  %v4596_v23 = vld [vmem:[#allocation4 + $0x88] ss:$16 sps:$4 sm:$0xff]  }
 0x5a5   :  { %1854 = vmatprep.mubr.bf16.mxu0 %v1821_v26  ;;  %1895 = vmatprep.mubr.bf16.mxu1 %v1821_v26  ;;  %v4581_v26 = vld [vmem:[#allocation4 + $0xa0] ss:$16 sps:$4 sm:$0xff]  }
 0x5ac   :  { %v3069_v17 = vpop.eup %3068 }
 0x5ad   :  { %v3071_v7 = vpop.eup %3070 }
 0x5ae   :  { %v3073_v9 = vpop.eup %3072  ;;  %v1813_v32 = vmul.f32 %v3071_v7, %v3069_v17  ;;  %v4587_v17 = vld [vmem:[#allocation4 + $0x84] ss:$16 sps:$4 sm:$0xff]   ;;  %v4590_v7 = vld [vmem:[#allocation4 + $0x8c] ss:$16 sps:$4 sm:$0xff]  }
 0x5af   :  { %v1812_v15 = vmul.f32 %v3073_v9, %v4422_v12  ;;  %v4558_v12 = vld [vmem:[#allocation4 + $0xe8] ss:$16 sps:$4 sm:$0xff]   ;;  %v4593_v9 = vld [vmem:[#allocation4 + $0x80] ss:$16 sps:$4 sm:$0xff]  }
 0x5b1   :  { %v4547_v37 = vadd.f32 %v1813_v32, %v1812_v15  ;;  %v3075_v33 = vpop.eup %3074  ;;  %v4599_v32 = vld [vmem:[#allocation4 + $0x64] ss:$16 sps:$4 sm:$0xff]   ;;  %v4602_v15 = vld [vmem:[#allocation4 + $0x6c] ss:$16 sps:$4 sm:$0xff]  }
 0x5b3   :  { %3076 = vtanh.f32 %v4547_v37 }
 0x5c0   :  { %v3077_v41 = vpop.eup %3076 }
 0x5c1   :  { %v4550_v34 = vmul.f32 %v3077_v41, %v3075_v33  ;;  %v4605_v33 = vld [vmem:[#allocation4 + $0x60] ss:$16 sps:$4 sm:$0xff]   ;;  %v4608_v41 = vld [vmem:[#allocation4 + $0x68] ss:$16 sps:$4 sm:$0xff]  }
 0x5c2   :  { %5818 = vst [vmem:[#allocation26_spill] sm:$0xff] %v4605_v33  ;;  %5819 = vst [vmem:[#allocation27_spill] sm:$0xff] %v4608_v41 }
 0x5c3   :  { %v1817_v52 = vmax.f32 %v4550_v34, 0.0 }
 0x5c5   :  { %v1818_v21 = vmul.f32 %v4425_v11, %v1817_v52  ;;  %v4611_v52 = vld [vmem:[#allocation4 + $0x44] ss:$16 sps:$4 sm:$0xff]  }
 0x5c6   :  { %5820 = vst [vmem:[#allocation28_spill] sm:$0xff] %v4611_v52 }
 0x5c7   :  { %v1819_v20 = vadd.f32 %v4428_v22, %v1818_v21  ;;  %v4614_v21 = vld [vmem:[#allocation4 + $0x4c] ss:$16 sps:$4 sm:$0xff]  }
 0x5c8   :  { %5821 = vst [vmem:[#allocation29_spill] sm:$0xff] %v4614_v21 }
 0x5c9   :  { %v1820_v19 = vpack.c.bf16 %v1819_v20, %v1819_v20  ;;  %v4617_v20 = vld [vmem:[#allocation4 + $0x40] ss:$16 sps:$4 sm:$0xff]  }
 0x5ca   :  { %5822 = vst [vmem:[#allocation30_spill] sm:$0xff] %v4617_v20 }
 0x5cb   :  { %1855 = vmatmul.mubr.bf16.vlgmr.msra.gmra.mxu0 %v1820_v19  ;;  %1896 = vmatmul.mubr.bf16.vlgmr.msra.gmra.mxu1 %v1820_v19  ;;  %v4620_v19 = vld [vmem:[#allocation4 + $0x48] ss:$16 sps:$4 sm:$0xff]  }
 0x5cc   :  { %1934 = vmatpush1.bf16.msra.mxu0 %v4555_v40  ;;  %1975 = vmatpush1.bf16.msra.mxu1 %v4558_v12  ;;  %5823 = vst [vmem:[#allocation31_spill] sm:$0xff] %v4620_v19 }
 0x5cd   :  { %1935 = vmatprep.subr.bf16.mxu0 %v4561_v10  ;;  %1976 = vmatprep.subr.bf16.mxu1 %v4564_v13 }
 0x5ce   :  { %1965 = vmatprep.mubr.bf16.mxu0 %v5557_v27  ;;  %2006 = vmatprep.mubr.bf16.mxu1 %v5557_v27 }
 0x5d0   :  { %1936 = vmatpush1.bf16.msra.mxu0 %v4569_v35  ;;  %1977 = vmatpush1.bf16.msra.mxu1 %v4572_v6 }
 0x5d1   :  { %1937 = vmatprep.subr.bf16.mxu0 %v4575_v59  ;;  %1978 = vmatprep.subr.bf16.mxu1 %v4578_v36 }
 0x5d4   :  { %1938 = vmatpush1.bf16.msra.mxu0 %v4581_v26  ;;  %1979 = vmatpush1.bf16.msra.mxu1 %v4584_v42 }
 0x5d5   :  { %1939 = vmatprep.subr.bf16.mxu0 %v4587_v17  ;;  %1980 = vmatprep.subr.bf16.mxu1 %v4590_v7 }
 0x5d8   :  { %1940 = vmatpush1.bf16.msra.mxu0 %v4593_v9  ;;  %1981 = vmatpush1.bf16.msra.mxu1 %v4596_v23 }
 0x5d9   :  { %1941 = vmatprep.subr.bf16.mxu0 %v4599_v32  ;;  %1982 = vmatprep.subr.bf16.mxu1 %v4602_v15 }
 0x5dc   :  { %1942 = vmatpush1.bf16.msra.mxu0 %v4605_v33  ;;  %1983 = vmatpush1.bf16.msra.mxu1 %v4608_v41  ;;  %v4623_v33 = vld [vmem:[#allocation4 + $0x24] ss:$16 sps:$4 sm:$0xff]   ;;  %v4626_v41 = vld [vmem:[#allocation4 + $0x2c] ss:$16 sps:$4 sm:$0xff]  }
 0x5dd   :  { %1943 = vmatprep.subr.bf16.mxu0 %v4611_v52  ;;  %1984 = vmatprep.subr.bf16.mxu1 %v4614_v21  ;;  %5824 = vst [vmem:[#allocation9_spill] sm:$0xff] %v4626_v41  ;;  %v4629_v52 = vld [vmem:[#allocation4 + $0x20] ss:$16 sps:$4 sm:$0xff]   ;;  %v4632_v21 = vld [vmem:[#allocation4 + $0x28] ss:$16 sps:$4 sm:$0xff]  }
 0x5e0   :  { %1944 = vmatpush1.bf16.msra.mxu0 %v4617_v20  ;;  %1985 = vmatpush1.bf16.msra.mxu1 %v4620_v19  ;;  %v4635_v20 = vld [vmem:[#allocation4 + $0x4] ss:$16 sps:$4 sm:$0xff]   ;;  %v4638_v19 = vld [vmem:[#allocation4 + $0xc] ss:$16 sps:$4 sm:$0xff]  }
 0x5e1   :  { %1945 = vmatprep.subr.bf16.mxu0 %v4623_v33  ;;  %1986 = vmatprep.subr.bf16.mxu1 %v4626_v41  ;;  %v1932_v41 = vpack.c.bf16 %v4550_v34, %v4550_v34  ;;  %v5857_v34 = vld [vmem:[#allocation79_spill] sm:$0xff] }
 0x5e4   :  { %1946 = vmatpush1.bf16.msra.mxu0 %v4629_v52  ;;  %1987 = vmatpush1.bf16.msra.mxu1 %v4632_v21 }
 0x5e5   :  { %1947 = vmatprep.subr.bf16.mxu0 %v4635_v20  ;;  %1988 = vmatprep.subr.bf16.mxu1 %v4638_v19 }
 0x5e8   :  { %1948 = vmatpush1.bf16.msra.mxu0 %v4204_v4  ;;  %1989 = vmatpush1.bf16.msra.mxu1 %v4207_v5  ;;  %v5825_v4 = vld [vmem:[#allocation47_spill] sm:$0xff]  ;;  %v5826_v5 = vld [vmem:[#allocation48_spill] sm:$0xff] }
 0x5e9   :  { %2048 = vmatprep.subr.bf16.mxu0 %v4210_v8  ;;  %2089 = vmatprep.subr.bf16.mxu1 %v4213_v16  ;;  %v5827_v8 = vld [vmem:[#allocation49_spill] sm:$0xff]  ;;  %v5828_v16 = vld [vmem:[#allocation50_spill] sm:$0xff] }
 0x5eb   :  { %1966 = vmatmul.mubr.bf16.vlgmr.msra.gmra.mxu0 %v1932_v41  ;;  %2007 = vmatmul.mubr.bf16.vlgmr.msra.gmra.mxu1 %v1932_v41  ;;  %v5858_v41 = vld [vmem:[#allocation80_spill] sm:$0xff] }
 0x5ec   :  { %2049 = vmatpush1.bf16.msra.mxu0 %v5747_v48  ;;  %2090 = vmatpush1.bf16.msra.mxu1 %v5748_v56  ;;  %v5829_v48 = vld [vmem:[#allocation51_spill] sm:$0xff]  ;;  %v5830_v56 = vld [vmem:[#allocation52_spill] sm:$0xff] }
 0x5ed   :  { %2050 = vmatprep.subr.bf16.mxu0 %v5749_v57  ;;  %2091 = vmatprep.subr.bf16.mxu1 %v5750_v25  ;;  %v5831_v57 = vld [vmem:[#allocation53_spill] sm:$0xff]  ;;  %v5832_v25 = vld [vmem:[#allocation54_spill] sm:$0xff] }
 0x5f0   :  { %2051 = vmatpush1.bf16.msra.mxu0 %v5751_v49  ;;  %2092 = vmatpush1.bf16.msra.mxu1 %v5752_v1  ;;  %v5833_v49 = vld [vmem:[#allocation55_spill] sm:$0xff]  ;;  %v5834_v1 = vld [vmem:[#allocation56_spill] sm:$0xff] }
 0x5f1   :  { %2052 = vmatprep.subr.bf16.mxu0 %v5753_v45  ;;  %2093 = vmatprep.subr.bf16.mxu1 %v5754_v31  ;;  %v5835_v45 = vld [vmem:[#allocation57_spill] sm:$0xff]  ;;  %v5836_v31 = vld [vmem:[#allocation58_spill] sm:$0xff] }
 0x5f4   :  { %2053 = vmatpush1.bf16.msra.mxu0 %v5755_v50  ;;  %2094 = vmatpush1.bf16.msra.mxu1 %v5756_v63  ;;  %v5837_v50 = vld [vmem:[#allocation59_spill] sm:$0xff]  ;;  %v5838_v63 = vld [vmem:[#allocation60_spill] sm:$0xff] }
 0x5f5   :  { %2054 = vmatprep.subr.bf16.mxu0 %v5757_v2  ;;  %2095 = vmatprep.subr.bf16.mxu1 %v5758_v47  ;;  %v5839_v2 = vld [vmem:[#allocation61_spill] sm:$0xff]  ;;  %v5840_v47 = vld [vmem:[#allocation62_spill] sm:$0xff] }
 0x5f8   :  { %2055 = vmatpush1.bf16.msra.mxu0 %v5759_v60  ;;  %2096 = vmatpush1.bf16.msra.mxu1 %v5760_v30  ;;  %v5841_v60 = vld [vmem:[#allocation63_spill] sm:$0xff]  ;;  %v5842_v30 = vld [vmem:[#allocation64_spill] sm:$0xff] }
 0x5f9   :  { %2056 = vmatprep.subr.bf16.mxu0 %v5761_v51  ;;  %2097 = vmatprep.subr.bf16.mxu1 %v5762_v54  ;;  %v5843_v51 = vld [vmem:[#allocation16_spill] sm:$0xff]  ;;  %v5844_v54 = vld [vmem:[#allocation17_spill] sm:$0xff] }
 0x5fc   :  { %2057 = vmatpush1.bf16.msra.mxu0 %v5763_v3  ;;  %2098 = vmatpush1.bf16.msra.mxu1 %v5764_v29  ;;  %v5845_v3 = vld [vmem:[#allocation18_spill] sm:$0xff]  ;;  %v5846_v29 = vld [vmem:[#allocation19_spill] sm:$0xff] }
 0x5fd   :  { %2058 = vmatprep.subr.bf16.mxu0 %v5765_v55  ;;  %2099 = vmatprep.subr.bf16.mxu1 %v5766_v14  ;;  %v5847_v55 = vld [vmem:[#allocation20_spill] sm:$0xff]  ;;  %v5848_v14 = vld [vmem:[#allocation21_spill] sm:$0xff] }
 0x600   :  { %2059 = vmatpush1.bf16.msra.mxu0 %v5767_v53  ;;  %2100 = vmatpush1.bf16.msra.mxu1 %v5768_v61  ;;  %v5849_v53 = vld [vmem:[#allocation22_spill] sm:$0xff]  ;;  %v5850_v61 = vld [vmem:[#allocation23_spill] sm:$0xff] }
 0x601   :  { %2060 = vmatprep.subr.bf16.mxu0 %v5769_v62  ;;  %2101 = vmatprep.subr.bf16.mxu1 %v5770_v38  ;;  %v5851_v62 = vld [vmem:[#allocation73_spill] sm:$0xff]  ;;  %v5852_v38 = vld [vmem:[#allocation74_spill] sm:$0xff] }
 0x604   :  { %2061 = vmatpush1.bf16.msra.mxu0 %v5771_v24  ;;  %2102 = vmatpush1.bf16.msra.mxu1 %v5772_v39  ;;  %v5853_v24 = vld [vmem:[#allocation75_spill] sm:$0xff]  ;;  %v5854_v39 = vld [vmem:[#allocation76_spill] sm:$0xff] }
 0x605   :  { %2062 = vmatprep.subr.bf16.mxu0 %v5773_v43  ;;  %2103 = vmatprep.subr.bf16.mxu1 %v5774_v44  ;;  %v5855_v43 = vld [vmem:[#allocation77_spill] sm:$0xff]  ;;  %v5856_v44 = vld [vmem:[#allocation78_spill] sm:$0xff] }
 0x608   :  { %2063 = vmatpush1.bf16.msra.mxu0 %v5825_v4  ;;  %2104 = vmatpush1.bf16.msra.mxu1 %v5826_v5  ;;  %v4709_v4 = vld [vmem:[#allocation4 + $0xe4] ss:$16 sps:$4 sm:$0xff]   ;;  %v4712_v5 = vld [vmem:[#allocation4 + $0xec] ss:$16 sps:$4 sm:$0xff]  }
 0x609   :  { %2064 = vmatprep.subr.bf16.mxu0 %v5827_v8  ;;  %2105 = vmatprep.subr.bf16.mxu1 %v5828_v16 }
 0x60c   :  { %2065 = vmatpush2.bf16.msra.mxu0 %v5829_v48  ;;  %2106 = vmatpush2.bf16.msra.mxu1 %v5830_v56  ;;  %v5859_v48 = vld [vmem:[#allocation12_spill] sm:$0xff] }
 0x60d   :  { %2066 = vmatprep.subr.bf16.mxu0 %v5831_v57  ;;  %2107 = vmatprep.subr.bf16.mxu1 %v5832_v25 }
 0x610   :  { %2067 = vmatpush2.bf16.msra.mxu0 %v5833_v49  ;;  %2108 = vmatpush2.bf16.msra.mxu1 %v5834_v1  ;;  %v3464_v49 = vmov 6  }
 0x611   :  { %2068 = vmatprep.subr.bf16.mxu0 %v5835_v45  ;;  %2109 = vmatprep.subr.bf16.mxu1 %v5836_v31  ;;  %v5860_v45 = vld [vmem:[#allocation13_spill] sm:$0xff] }
 0x612   :  { %2787 = vset.pattern.permute.xlu1 %v3464_v49 }
 0x614   :  { %2069 = vmatpush2.bf16.msra.mxu0 %v5837_v50  ;;  %2110 = vmatpush2.bf16.msra.mxu1 %v5838_v63  ;;  %v4720_v50 = vld [vmem:[%s5123_s0] sm:$0xff] }
 0x615   :  { %2070 = vmatprep.subr.bf16.mxu0 %v5839_v2  ;;  %2111 = vmatprep.subr.bf16.mxu1 %v5840_v47 }
 0x616   :  { %183 = vperm.xlu1 %2787, %v4720_v50  }
 0x618   :  { %2071 = vmatpush2.bf16.msra.mxu0 %v5841_v60  ;;  %2112 = vmatpush2.bf16.msra.mxu1 %v5842_v30 }
 0x619   :  { %2072 = vmatprep.subr.bf16.mxu0 %v5843_v51  ;;  %2113 = vmatprep.subr.bf16.mxu1 %v5844_v54  ;;  %v5861_v51 = vld [vmem:[#allocation14_spill] sm:$0xff] }
 0x61c   :  { %2073 = vmatpush2.bf16.msra.mxu0 %v5845_v3  ;;  %2114 = vmatpush2.bf16.msra.mxu1 %v5846_v29 }
 0x61d   :  { %2074 = vmatprep.subr.bf16.mxu0 %v5847_v55  ;;  %2115 = vmatprep.subr.bf16.mxu1 %v5848_v14  ;;  %v5862_v55 = vld [vmem:[#allocation15_spill] sm:$0xff] }
 0x620   :  { %2075 = vmatpush2.bf16.msra.mxu0 %v5849_v53  ;;  %2116 = vmatpush2.bf16.msra.mxu1 %v5850_v61 }
 0x621   :  { %2076 = vmatprep.subr.bf16.mxu0 %v5851_v62  ;;  %2117 = vmatprep.subr.bf16.mxu1 %v5852_v38  ;;  %v172_v38 = vpop.permute.xlu0 %171 }
 0x624   :  { %2077 = vmatpush2.bf16.msra.mxu0 %v5853_v24  ;;  %2118 = vmatpush2.bf16.msra.mxu1 %v5854_v39  ;;  %v5863_v24 = vld [vmem:[#allocation67_spill] sm:$0xff] }
 0x625   :  { %2078 = vmatprep.subr.bf16.mxu0 %v5855_v43  ;;  %2119 = vmatprep.subr.bf16.mxu1 %v5856_v44  ;;  %v174_v39 = vmul.f32 %v172_v38, %v5863_v24  ;;  %v5864_v43 = vld [vmem:[#allocation68_spill] sm:$0xff] }
 0x626   :  { %v175_v44 = vmul.f32 %v172_v38, %v5864_v43 }
 0x628   :  { %2079 = vmatpush2.bf16.msra.mxu0 %v5857_v34  ;;  %2120 = vmatpush2.bf16.msra.mxu1 %v5858_v41  ;;  %v5865_v34 = vld [vmem:[#allocation69_spill] sm:$0xff] }
 0x629   :  { %2159 = vmatprep.subr.bf16.mxu0 %v4709_v4  ;;  %2200 = vmatprep.subr.bf16.mxu1 %v4712_v5  ;;  %v178_v41 = vadd.f32 %v174_v39, %v5865_v34 }
 0x68b   :  { %v1856_v8 = vpop.f32.mrf.mxu0  ;;  %v1897_v16 = vpop.f32.mrf.mxu1 }
 0x68c   :  { %v1904_v56 = vadd.f32 %v1856_v8, %v5859_v48  ;;  %v1906_v14 = vadd.f32 %v1897_v16, %v5862_v55  ;;  %v5866_v8 = vld [vmem:[#allocation70_spill] sm:$0xff] }
 0x68d   :  { %v1858_v57 = vpop.f32.mrf.mxu0  ;;  %v1899_v25 = vpop.f32.mrf.mxu1 }
 0x68e   :  { %v2746_v1 = vmul.f32 -1.442695, %v1904_v56  ;;  %v1905_v31 = vadd.f32 %v1858_v57, %v5860_v45  ;;  %v1907_v54 = vadd.f32 %v1899_v25, %v5861_v51  ;;  %v179_v56 = vadd.f32 %v175_v44, %v5866_v8 }
 0x68f   :  { %v1860_v63 = vpop.f32.mrf.mxu0  ;;  %v1901_v2 = vpop.f32.mrf.mxu1 }
 0x690   :  { %3078 = vpow2.f32 %v2746_v1  ;;  %v2747_v47 = vmul.f32 -1.442695, %v1905_v31  ;;  %v2748_v3 = vmul.f32 -1.442695, %v1907_v54 }
 0x691   :  { %v1861_v60 = vpop.f32.mrf.mxu0  ;;  %v1902_v30 = vpop.f32.mrf.mxu1 }
 0x692   :  { %3080 = vpow2.f32 %v2747_v47 }
 0x693   :  { %3082 = vpow2.f32 %v2748_v3  ;;  %v177_v3 = vmul.f32 %v172_v38, %v5624_v28 }
 0x69d   :  { %v3079_v29 = vpop.eup %3078 }
 0x69e   :  { %v1911_v53 = vadd.f32 1.0, %v3079_v29 }
 0x69f   :  { %v3081_v61 = vpop.eup %3080 }
 0x6a0   :  { %3084 = vrcp.f32 %v1911_v53  ;;  %v1917_v62 = vadd.f32 1.0, %v3081_v61  ;;  %v3083_v49 = vpop.eup %3082 }
 0x6a1   :  { %3086 = vtanh.f32 %v1906_v14  ;;  %v1924_v54 = vadd.f32 1.0, %v3083_v49 }
 0x6a2   :  { %3088 = vrcp.f32 %v1917_v62 }
 0x6ab   :  { %v1967_v57 = vpop.f32.mrf.mxu0  ;;  %v2008_v25 = vpop.f32.mrf.mxu1 }
 0x6ac   :  { %v2015_v16 = vadd.f32 %v1967_v57, %v178_v41  ;;  %v181_v57 = vadd.f32 %v177_v3, %v3831_v46 }
 0x6ad   :  { %v3085_v1 = vpop.eup %3084  ;;  %v1969_v31 = vpop.f32.mrf.mxu0 }
 0x6ae   :  { %v2010_v63 = vpop.f32.mrf.mxu1  ;;  %v3087_v2 = vpop.eup %3086  ;;  %v2749_v47 = vmul.f32 -1.442695, %v2015_v16  ;;  %v2016_v60 = vadd.f32 %v1969_v31, %v179_v56  ;;  %v176_v56 = vmul.f32 %v172_v38, %v5625_v58 }
 0x6af   :  { %v3089_v30 = vpop.eup %3088  ;;  %v1971_v29 = vpop.f32.mrf.mxu0  ;;  %v1928_v53 = vmul.f32 %v3087_v2, %v3085_v1  ;;  %v2018_v49 = vadd.f32 %v2010_v63, %v181_v57 }
 0x6b0   :  { %v2012_v14 = vpop.f32.mrf.mxu1  ;;  %v1927_v61 = vmul.f32 %v3089_v30, %v4540_v18  ;;  %3090 = vpow2.f32 %v2749_v47  ;;  %v2750_v62 = vmul.f32 -1.442695, %v2016_v60  ;;  %v180_v16 = vadd.f32 %v176_v56, %v3839_v0 }
 0x6b1   :  { %v1972_v39 = vpop.f32.mrf.mxu0  ;;  %v2751_v1 = vmul.f32 -1.442695, %v2018_v49 }
 0x6b2   :  { %v2013_v44 = vpop.f32.mrf.mxu1  ;;  %3092 = vpow2.f32 %v2750_v62  ;;  %v4731_v41 = vadd.f32 %v1928_v53, %v1927_v61  ;;  %v2017_v18 = vadd.f32 %v2008_v25, %v180_v16 }
 0x6b3   :  { %3094 = vrcp.f32 %v1924_v54 }
 0x6b4   :  { %3096 = vtanh.f32 %v4731_v41 }
 0x6b5   :  { %3098 = vpow2.f32 %v2751_v1 }
 0x6bd   :  { %v3091_v31 = vpop.eup %3090 }
 0x6be   :  { %v2022_v2 = vadd.f32 1.0, %v3091_v31 }
 0x6bf   :  { %v3093_v47 = vpop.eup %3092 }
 0x6c0   :  { %v3095_v60 = vpop.eup %3094  ;;  %3100 = vrcp.f32 %v2022_v2  ;;  %v2028_v30 = vadd.f32 1.0, %v3093_v47  ;;  %v5871_v2 = vld [vmem:[#allocation30_spill] sm:$0xff]  ;;  %v5872_v47 = vld [vmem:[#allocation31_spill] sm:$0xff] }
 0x6c1   :  { %v3097_v29 = vpop.eup %3096  ;;  %3102 = vtanh.f32 %v2017_v18  ;;  %v5870_v18 = vld [vmem:[#allocation29_spill] sm:$0xff] }
 0x6c2   :  { %3104 = vrcp.f32 %v2028_v30  ;;  %v1931_v54 = vmul.f32 %v3097_v29, %v3095_v60  ;;  %v3099_v38 = vpop.eup %3098  ;;  %v5873_v60 = vld [vmem:[#allocation9_spill] sm:$0xff]  ;;  %v4776_v29 = vld [vmem:[#allocation4 + $0x8] ss:$16 sps:$4 sm:$0xff]  }
 0x6c3   :  { %v2035_v61 = vadd.f32 1.0, %v3099_v38  ;;  %v4773_v30 = vld [vmem:[#allocation4] ss:$16 sps:$4 sm:$0xff]   ;;  %v4782_v38 = vld [vmem:[#allocation6 + $0xec] ss:$16 sps:$4 sm:$0xff]  }
 0x6c4   :  { %v2047_v3 = vpack.c.bf16 %v1931_v54, %v1931_v54 }
 0x6c5   :  { %3106 = vrcp.f32 %v2035_v61  ;;  %v4794_v61 = vld [vmem:[#allocation6 + $0xcc] ss:$16 sps:$4 sm:$0xff]  }
 0x6c6   :  { %2080 = vmatprep.mubr.bf16.mxu0 %v2047_v3  ;;  %2121 = vmatprep.mubr.bf16.mxu1 %v2047_v3  ;;  %v4779_v3 = vld [vmem:[#allocation6 + $0xe4] ss:$16 sps:$4 sm:$0xff]   ;;  %5877 = vst [vmem:[#allocation11_spill] sm:$0xff] %v4794_v61 }
 0x6cd   :  { %v3101_v63 = vpop.eup %3100 }
 0x6ce   :  { %v3103_v14 = vpop.eup %3102 }
 0x6cf   :  { %v3105_v53 = vpop.eup %3104  ;;  %v2039_v62 = vmul.f32 %v3103_v14, %v3101_v63  ;;  %v4785_v63 = vld [vmem:[#allocation6 + $0xe0] ss:$16 sps:$4 sm:$0xff]   ;;  %v4788_v14 = vld [vmem:[#allocation6 + $0xe8] ss:$16 sps:$4 sm:$0xff]  }
 0x6d0   :  { %v2038_v25 = vmul.f32 %v3105_v53, %v4547_v37  ;;  %v5869_v37 = vld [vmem:[#allocation28_spill] sm:$0xff]  ;;  %5874 = vst [vmem:[#allocation10_spill] sm:$0xff] %v4785_v63  ;;  %5875 = vst [vmem:[#allocation65_spill] sm:$0xff] %v4788_v14  ;;  %v4791_v53 = vld [vmem:[#allocation6 + $0xc4] ss:$16 sps:$4 sm:$0xff]  }
 0x6d1   :  { %5876 = vst [vmem:[#allocation66_spill] sm:$0xff] %v4791_v53 }
 0x6d2   :  { %v4738_v39 = vadd.f32 %v2039_v62, %v2038_v25  ;;  %v3107_v44 = vpop.eup %3106  ;;  %v4797_v62 = vld [vmem:[#allocation6 + $0xc0] ss:$16 sps:$4 sm:$0xff]   ;;  %v4800_v25 = vld [vmem:[#allocation6 + $0xc8] ss:$16 sps:$4 sm:$0xff]  }
 0x6d3   :  { %5878 = vst [vmem:[#allocation71_spill] sm:$0xff] %v4797_v62  ;;  %5879 = vst [vmem:[#allocation72_spill] sm:$0xff] %v4800_v25 }
 0x6d4   :  { %3108 = vtanh.f32 %v4738_v39 }
 0x6e1   :  { %v3109_v57 = vpop.eup %3108 }
 0x6e2   :  { %v2042_v56 = vmul.f32 %v3109_v57, %v3107_v44  ;;  %v4803_v44 = vld [vmem:[#allocation6 + $0xa4] ss:$16 sps:$4 sm:$0xff]   ;;  %v4806_v57 = vld [vmem:[#allocation6 + $0xac] ss:$16 sps:$4 sm:$0xff]  }
 0x6e3   :  { %5880 = vst [vmem:[#allocation32_spill] sm:$0xff] %v4803_v44  ;;  %5881 = vst [vmem:[#allocation33_spill] sm:$0xff] %v4806_v57 }
 0x6e4   :  { %v2043_v49 = vmax.f32 %v2042_v56, 0.0  ;;  %v2158_v54 = vpack.c.bf16 %v2042_v56, %v2042_v56  ;;  %v4809_v56 = vld [vmem:[#allocation6 + $0xa0] ss:$16 sps:$4 sm:$0xff]  }
 0x6e5   :  { %5882 = vst [vmem:[#allocation34_spill] sm:$0xff] %v4809_v56 }
 0x6e6   :  { %v2044_v16 = vmul.f32 %v4425_v11, %v2043_v49  ;;  %v5867_v11 = vld [vmem:[#allocation26_spill] sm:$0xff] }
 0x6e7   :  { %v4812_v49 = vld [vmem:[#allocation6 + $0xa8] ss:$16 sps:$4 sm:$0xff]  }
 0x6e8   :  { %v2045_v1 = vadd.f32 %v4428_v22, %v2044_v16  ;;  %v5868_v22 = vld [vmem:[#allocation27_spill] sm:$0xff]  ;;  %5883 = vst [vmem:[#allocation35_spill] sm:$0xff] %v4812_v49 }
 0x6e9   :  { %v4815_v16 = vld [vmem:[#allocation6 + $0x84] ss:$16 sps:$4 sm:$0xff]  }
 0x6ea   :  { %v2046_v31 = vpack.c.bf16 %v2045_v1, %v2045_v1  ;;  %5884 = vst [vmem:[#allocation36_spill] sm:$0xff] %v4815_v16  ;;  %v4818_v1 = vld [vmem:[#allocation6 + $0x8c] ss:$16 sps:$4 sm:$0xff]  }
 0x6eb   :  { %5885 = vst [vmem:[#allocation37_spill] sm:$0xff] %v4818_v1 }
 0x6ec   :  { %2081 = vmatmul.mubr.bf16.vlgmr.msra.gmra.mxu0 %v2046_v31  ;;  %2122 = vmatmul.mubr.bf16.vlgmr.msra.gmra.mxu1 %v2046_v31  ;;  %v4821_v31 = vld [vmem:[#allocation6 + $0x80] ss:$16 sps:$4 sm:$0xff]  }
 0x6ed   :  { %2160 = vmatpush1.bf16.msra.mxu0 %v4555_v40  ;;  %2201 = vmatpush1.bf16.msra.mxu1 %v4558_v12  ;;  %5886 = vst [vmem:[#allocation38_spill] sm:$0xff] %v4821_v31 }
 0x6ee   :  { %2161 = vmatprep.subr.bf16.mxu0 %v4561_v10  ;;  %2202 = vmatprep.subr.bf16.mxu1 %v4564_v13 }
 0x6ef   :  { %2191 = vmatprep.mubr.bf16.mxu0 %v5557_v27  ;;  %2232 = vmatprep.mubr.bf16.mxu1 %v5557_v27 }
 0x6f1   :  { %2162 = vmatpush1.bf16.msra.mxu0 %v4569_v35  ;;  %2203 = vmatpush1.bf16.msra.mxu1 %v4572_v6 }
 0x6f2   :  { %2163 = vmatprep.subr.bf16.mxu0 %v4575_v59  ;;  %2204 = vmatprep.subr.bf16.mxu1 %v4578_v36 }
 0x6f5   :  { %2164 = vmatpush1.bf16.msra.mxu0 %v4581_v26  ;;  %2205 = vmatpush1.bf16.msra.mxu1 %v4584_v42 }
 0x6f6   :  { %2165 = vmatprep.subr.bf16.mxu0 %v4587_v17  ;;  %2206 = vmatprep.subr.bf16.mxu1 %v4590_v7 }
 0x6f9   :  { %2166 = vmatpush1.bf16.msra.mxu0 %v4593_v9  ;;  %2207 = vmatpush1.bf16.msra.mxu1 %v4596_v23 }
 0x6fa   :  { %2167 = vmatprep.subr.bf16.mxu0 %v4599_v32  ;;  %2208 = vmatprep.subr.bf16.mxu1 %v4602_v15 }
 0x6fd   :  { %2168 = vmatpush1.bf16.msra.mxu0 %v5867_v11  ;;  %2209 = vmatpush1.bf16.msra.mxu1 %v5868_v22 }
 0x6fe   :  { %2169 = vmatprep.subr.bf16.mxu0 %v5869_v37  ;;  %2210 = vmatprep.subr.bf16.mxu1 %v5870_v18 }
 0x701   :  { %2170 = vmatpush1.bf16.msra.mxu0 %v5871_v2  ;;  %2211 = vmatpush1.bf16.msra.mxu1 %v5872_v47 }
 0x702   :  { %2171 = vmatprep.subr.bf16.mxu0 %v4623_v33  ;;  %2212 = vmatprep.subr.bf16.mxu1 %v5873_v60 }
 0x705   :  { %2172 = vmatpush1.bf16.msra.mxu0 %v4629_v52  ;;  %2213 = vmatpush1.bf16.msra.mxu1 %v4632_v21 }
 0x706   :  { %2173 = vmatprep.subr.bf16.mxu0 %v4635_v20  ;;  %2214 = vmatprep.subr.bf16.mxu1 %v4638_v19 }
 0x709   :  { %2174 = vmatpush1.bf16.msra.mxu0 %v4773_v30  ;;  %2215 = vmatpush1.bf16.msra.mxu1 %v4776_v29 }
 0x70a   :  { %2274 = vmatprep.subr.bf16.mxu0 %v4779_v3  ;;  %2315 = vmatprep.subr.bf16.mxu1 %v4782_v38 }
 0x70c   :  { %2192 = vmatmul.mubr.bf16.vlgmr.msra.gmra.mxu0 %v2158_v54  ;;  %2233 = vmatmul.mubr.bf16.vlgmr.msra.gmra.mxu1 %v2158_v54  ;;  %v4824_v54 = vld [vmem:[#allocation6 + $0x88] ss:$16 sps:$4 sm:$0xff]  }
 0x70d   :  { %2275 = vmatpush1.bf16.msra.mxu0 %v4785_v63  ;;  %2316 = vmatpush1.bf16.msra.mxu1 %v4788_v14  ;;  %5887 = vst [vmem:[#allocation39_spill] sm:$0xff] %v4824_v54 }
 0x70e   :  { %2276 = vmatprep.subr.bf16.mxu0 %v4791_v53  ;;  %2317 = vmatprep.subr.bf16.mxu1 %v4794_v61 }
 0x711   :  { %2277 = vmatpush1.bf16.msra.mxu0 %v4797_v62  ;;  %2318 = vmatpush1.bf16.msra.mxu1 %v4800_v25  ;;  %v3465_v25 = vmov 7  }
 0x712   :  { %2278 = vmatprep.subr.bf16.mxu0 %v4803_v44  ;;  %2319 = vmatprep.subr.bf16.mxu1 %v4806_v57 }
 0x713   :  { %2788 = vset.pattern.permute.xlu1 %v3465_v25  ;;  %2789 = vset.pattern.permute.xlu0 %v3465_v25 }
 0x714   :  { %195 = vperm.xlu1 %2788, %v4720_v50   ;;  %v184_v50 = vpop.permute.xlu1 %183 }
 0x715   :  { %2279 = vmatpush1.bf16.msra.mxu0 %v4809_v56  ;;  %2320 = vmatpush1.bf16.msra.mxu1 %v4812_v49  ;;  %v4827_v56 = vld [vmem:[#allocation6 + $0x64] ss:$16 sps:$4 sm:$0xff]   ;;  %v4830_v49 = vld [vmem:[#allocation6 + $0x6c] ss:$16 sps:$4 sm:$0xff]  }
 0x716   :  { %2280 = vmatprep.subr.bf16.mxu0 %v4815_v16  ;;  %2321 = vmatprep.subr.bf16.mxu1 %v4818_v1  ;;  %5888 = vst [vmem:[#allocation40_spill] sm:$0xff] %v4827_v56  ;;  %5889 = vst [vmem:[#allocation41_spill] sm:$0xff] %v4830_v49  ;;  %v4833_v16 = vld [vmem:[#allocation6 + $0x60] ss:$16 sps:$4 sm:$0xff]   ;;  %v4836_v1 = vld [vmem:[#allocation6 + $0x68] ss:$16 sps:$4 sm:$0xff]  }
 0x717   :  { %5890 = vst [vmem:[#allocation42_spill] sm:$0xff] %v4833_v16  ;;  %5891 = vst [vmem:[#allocation43_spill] sm:$0xff] %v4836_v1 }
 0x719   :  { %2281 = vmatpush1.bf16.msra.mxu0 %v4821_v31  ;;  %2322 = vmatpush1.bf16.msra.mxu1 %v4824_v54  ;;  %v4839_v31 = vld [vmem:[#allocation6 + $0x44] ss:$16 sps:$4 sm:$0xff]   ;;  %v4842_v54 = vld [vmem:[#allocation6 + $0x4c] ss:$16 sps:$4 sm:$0xff]  }
 0x71a   :  { %2282 = vmatprep.subr.bf16.mxu0 %v4827_v56  ;;  %2323 = vmatprep.subr.bf16.mxu1 %v4830_v49  ;;  %5892 = vst [vmem:[#allocation44_spill] sm:$0xff] %v4839_v31  ;;  %5893 = vst [vmem:[#allocation45_spill] sm:$0xff] %v4842_v54  ;;  %v4845_v56 = vld [vmem:[#allocation6 + $0x40] ss:$16 sps:$4 sm:$0xff]   ;;  %v4848_v49 = vld [vmem:[#allocation6 + $0x48] ss:$16 sps:$4 sm:$0xff]  }
 0x71b   :  { %5894 = vst [vmem:[#allocation46_spill] sm:$0xff] %v4845_v56  ;;  %5895 = vst [vmem:[#allocation24_spill] sm:$0xff] %v4848_v49 }
 0x71d   :  { %2283 = vmatpush1.bf16.msra.mxu0 %v4833_v16  ;;  %2324 = vmatpush1.bf16.msra.mxu1 %v4836_v1  ;;  %v4851_v16 = vld [vmem:[#allocation6 + $0x24] ss:$16 sps:$4 sm:$0xff]   ;;  %v4854_v1 = vld [vmem:[#allocation6 + $0x2c] ss:$16 sps:$4 sm:$0xff]  }
 0x71e   :  { %2284 = vmatprep.subr.bf16.mxu0 %v4839_v31  ;;  %2325 = vmatprep.subr.bf16.mxu1 %v4842_v54  ;;  %5896 = vst [vmem:[#allocation25_spill] sm:$0xff] %v4851_v16  ;;  %5897 = vst [vmem:[#allocation47_spill] sm:$0xff] %v4854_v1  ;;  %v4857_v31 = vld [vmem:[#allocation6 + $0x20] ss:$16 sps:$4 sm:$0xff]   ;;  %v4860_v54 = vld [vmem:[#allocation6 + $0x28] ss:$16 sps:$4 sm:$0xff]  }
 0x71f   :  { %5898 = vst [vmem:[#allocation48_spill] sm:$0xff] %v4857_v31  ;;  %5899 = vst [vmem:[#allocation49_spill] sm:$0xff] %v4860_v54 }
 0x721   :  { %2285 = vmatpush1.bf16.msra.mxu0 %v4845_v56  ;;  %2326 = vmatpush1.bf16.msra.mxu1 %v4848_v49  ;;  %v4863_v56 = vld [vmem:[#allocation6 + $0x4] ss:$16 sps:$4 sm:$0xff]   ;;  %v4866_v49 = vld [vmem:[#allocation6 + $0xc] ss:$16 sps:$4 sm:$0xff]  }
 0x722   :  { %2286 = vmatprep.subr.bf16.mxu0 %v4851_v16  ;;  %2327 = vmatprep.subr.bf16.mxu1 %v4854_v1  ;;  %5900 = vst [vmem:[#allocation50_spill] sm:$0xff] %v4863_v56  ;;  %5901 = vst [vmem:[#allocation51_spill] sm:$0xff] %v4866_v49  ;;  %v4869_v16 = vld [vmem:[#allocation6] ss:$16 sps:$4 sm:$0xff]   ;;  %v4872_v1 = vld [vmem:[#allocation6 + $0x8] ss:$16 sps:$4 sm:$0xff]  }
 0x723   :  { %5902 = vst [vmem:[#allocation52_spill] sm:$0xff] %v4869_v16  ;;  %5903 = vst [vmem:[#allocation53_spill] sm:$0xff] %v4872_v1 }
 0x725   :  { %2287 = vmatpush1.bf16.msra.mxu0 %v4857_v31  ;;  %2328 = vmatpush1.bf16.msra.mxu1 %v4860_v54  ;;  %v4875_v31 = vld [vmem:[#allocation6 + $0x1e4] ss:$16 sps:$4 sm:$0xff]   ;;  %v4878_v54 = vld [vmem:[#allocation6 + $0x1ec] ss:$16 sps:$4 sm:$0xff]  }
 0x726   :  { %2288 = vmatprep.subr.bf16.mxu0 %v4863_v56  ;;  %2329 = vmatprep.subr.bf16.mxu1 %v4866_v49  ;;  %5904 = vst [vmem:[#allocation54_spill] sm:$0xff] %v4875_v31  ;;  %5905 = vst [vmem:[#allocation55_spill] sm:$0xff] %v4878_v54  ;;  %v4881_v56 = vld [vmem:[#allocation6 + $0x1e0] ss:$16 sps:$4 sm:$0xff]   ;;  %v4884_v49 = vld [vmem:[#allocation6 + $0x1e8] ss:$16 sps:$4 sm:$0xff]  }
 0x727   :  { %5906 = vst [vmem:[#allocation56_spill] sm:$0xff] %v4881_v56  ;;  %5907 = vst [vmem:[#allocation57_spill] sm:$0xff] %v4884_v49 }
 0x729   :  { %2289 = vmatpush1.bf16.msra.mxu0 %v4869_v16  ;;  %2330 = vmatpush1.bf16.msra.mxu1 %v4872_v1  ;;  %v4887_v16 = vld [vmem:[#allocation6 + $0x1c4] ss:$16 sps:$4 sm:$0xff]   ;;  %v4890_v1 = vld [vmem:[#allocation6 + $0x1cc] ss:$16 sps:$4 sm:$0xff]  }
 0x72a   :  { %2290 = vmatprep.subr.bf16.mxu0 %v4875_v31  ;;  %2331 = vmatprep.subr.bf16.mxu1 %v4878_v54  ;;  %5908 = vst [vmem:[#allocation58_spill] sm:$0xff] %v4887_v16  ;;  %5909 = vst [vmem:[#allocation59_spill] sm:$0xff] %v4890_v1  ;;  %v4893_v31 = vld [vmem:[#allocation6 + $0x1c0] ss:$16 sps:$4 sm:$0xff]   ;;  %v4896_v54 = vld [vmem:[#allocation6 + $0x1c8] ss:$16 sps:$4 sm:$0xff]  }
 0x72b   :  { %5910 = vst [vmem:[#allocation60_spill] sm:$0xff] %v4893_v31  ;;  %5911 = vst [vmem:[#allocation61_spill] sm:$0xff] %v4896_v54 }
 0x72d   :  { %2291 = vmatpush2.bf16.msra.mxu0 %v4881_v56  ;;  %2332 = vmatpush2.bf16.msra.mxu1 %v4884_v49  ;;  %v4899_v56 = vld [vmem:[#allocation6 + $0x1a4] ss:$16 sps:$4 sm:$0xff]   ;;  %v4902_v49 = vld [vmem:[#allocation6 + $0x1ac] ss:$16 sps:$4 sm:$0xff]  }
 0x72e   :  { %2292 = vmatprep.subr.bf16.mxu0 %v4887_v16  ;;  %2333 = vmatprep.subr.bf16.mxu1 %v4890_v1  ;;  %5912 = vst [vmem:[#allocation62_spill] sm:$0xff] %v4899_v56  ;;  %5913 = vst [vmem:[#allocation63_spill] sm:$0xff] %v4902_v49  ;;  %v4905_v16 = vld [vmem:[#allocation6 + $0x1a0] ss:$16 sps:$4 sm:$0xff]   ;;  %v4908_v1 = vld [vmem:[#allocation6 + $0x1a8] ss:$16 sps:$4 sm:$0xff]  }
 0x72f   :  { %5914 = vst [vmem:[#allocation64_spill] sm:$0xff] %v4905_v16  ;;  %5915 = vst [vmem:[#allocation16_spill] sm:$0xff] %v4908_v1 }
 0x731   :  { %2293 = vmatpush2.bf16.msra.mxu0 %v4893_v31  ;;  %2334 = vmatpush2.bf16.msra.mxu1 %v4896_v54  ;;  %v4911_v31 = vld [vmem:[#allocation6 + $0x184] ss:$16 sps:$4 sm:$0xff]   ;;  %v4914_v54 = vld [vmem:[#allocation6 + $0x18c] ss:$16 sps:$4 sm:$0xff]  }
 0x732   :  { %2294 = vmatprep.subr.bf16.mxu0 %v4899_v56  ;;  %2335 = vmatprep.subr.bf16.mxu1 %v4902_v49  ;;  %5916 = vst [vmem:[#allocation17_spill] sm:$0xff] %v4911_v31  ;;  %5917 = vst [vmem:[#allocation18_spill] sm:$0xff] %v4914_v54  ;;  %v4917_v56 = vld [vmem:[#allocation6 + $0x180] ss:$16 sps:$4 sm:$0xff]   ;;  %v4920_v49 = vld [vmem:[#allocation6 + $0x188] ss:$16 sps:$4 sm:$0xff]  }
 0x733   :  { %5918 = vst [vmem:[#allocation19_spill] sm:$0xff] %v4917_v56  ;;  %5919 = vst [vmem:[#allocation20_spill] sm:$0xff] %v4920_v49 }
 0x735   :  { %2295 = vmatpush2.bf16.msra.mxu0 %v4905_v16  ;;  %2336 = vmatpush2.bf16.msra.mxu1 %v4908_v1  ;;  %v4923_v16 = vld [vmem:[#allocation6 + $0x164] ss:$16 sps:$4 sm:$0xff]   ;;  %v4926_v1 = vld [vmem:[#allocation6 + $0x16c] ss:$16 sps:$4 sm:$0xff]  }
 0x736   :  { %2296 = vmatprep.subr.bf16.mxu0 %v4911_v31  ;;  %2337 = vmatprep.subr.bf16.mxu1 %v4914_v54  ;;  %5920 = vst [vmem:[#allocation21_spill] sm:$0xff] %v4923_v16  ;;  %5921 = vst [vmem:[#allocation22_spill] sm:$0xff] %v4926_v1  ;;  %v4929_v31 = vld [vmem:[#allocation6 + $0x160] ss:$16 sps:$4 sm:$0xff]   ;;  %v4932_v54 = vld [vmem:[#allocation6 + $0x168] ss:$16 sps:$4 sm:$0xff]  }
 0x737   :  { %5922 = vst [vmem:[#allocation23_spill] sm:$0xff] %v4929_v31  ;;  %5923 = vst [vmem:[#allocation73_spill] sm:$0xff] %v4932_v54 }
 0x739   :  { %2297 = vmatpush2.bf16.msra.mxu0 %v4917_v56  ;;  %2338 = vmatpush2.bf16.msra.mxu1 %v4920_v49  ;;  %v4935_v56 = vld [vmem:[#allocation6 + $0x144] ss:$16 sps:$4 sm:$0xff]   ;;  %v4938_v49 = vld [vmem:[#allocation6 + $0x14c] ss:$16 sps:$4 sm:$0xff]  }
 0x73a   :  { %2298 = vmatprep.subr.bf16.mxu0 %v4923_v16  ;;  %2339 = vmatprep.subr.bf16.mxu1 %v4926_v1  ;;  %5924 = vst [vmem:[#allocation74_spill] sm:$0xff] %v4935_v56  ;;  %5925 = vst [vmem:[#allocation75_spill] sm:$0xff] %v4938_v49  ;;  %v4941_v16 = vld [vmem:[#allocation6 + $0x140] ss:$16 sps:$4 sm:$0xff]   ;;  %v4944_v1 = vld [vmem:[#allocation6 + $0x148] ss:$16 sps:$4 sm:$0xff]  }
 0x73b   :  { %5926 = vst [vmem:[#allocation76_spill] sm:$0xff] %v4941_v16  ;;  %5927 = vst [vmem:[#allocation77_spill] sm:$0xff] %v4944_v1 }
 0x73d   :  { %2299 = vmatpush2.bf16.msra.mxu0 %v4929_v31  ;;  %2340 = vmatpush2.bf16.msra.mxu1 %v4932_v54  ;;  %v4947_v31 = vld [vmem:[#allocation6 + $0x124] ss:$16 sps:$4 sm:$0xff]   ;;  %v4950_v54 = vld [vmem:[#allocation6 + $0x12c] ss:$16 sps:$4 sm:$0xff]  }
 0x73e   :  { %2300 = vmatprep.subr.bf16.mxu0 %v4935_v56  ;;  %2341 = vmatprep.subr.bf16.mxu1 %v4938_v49  ;;  %5928 = vst [vmem:[#allocation78_spill] sm:$0xff] %v4947_v31  ;;  %5929 = vst [vmem:[#allocation79_spill] sm:$0xff] %v4950_v54  ;;  %v4953_v56 = vld [vmem:[#allocation6 + $0x120] ss:$16 sps:$4 sm:$0xff]   ;;  %v4956_v49 = vld [vmem:[#allocation6 + $0x128] ss:$16 sps:$4 sm:$0xff]  }
 0x73f   :  { %5930 = vst [vmem:[#allocation80_spill] sm:$0xff] %v4953_v56  ;;  %5931 = vst [vmem:[#allocation13_spill] sm:$0xff] %v4956_v49 }
 0x741   :  { %2301 = vmatpush2.bf16.msra.mxu0 %v4941_v16  ;;  %2342 = vmatpush2.bf16.msra.mxu1 %v4944_v1  ;;  %v4959_v16 = vld [vmem:[#allocation6 + $0x104] ss:$16 sps:$4 sm:$0xff]   ;;  %v4962_v1 = vld [vmem:[#allocation6 + $0x10c] ss:$16 sps:$4 sm:$0xff]  }
 0x742   :  { %2302 = vmatprep.subr.bf16.mxu0 %v4947_v31  ;;  %2343 = vmatprep.subr.bf16.mxu1 %v4950_v54  ;;  %5932 = vst [vmem:[#allocation14_spill] sm:$0xff] %v4959_v16  ;;  %5933 = vst [vmem:[#allocation26_spill] sm:$0xff] %v4962_v1  ;;  %v4965_v31 = vld [vmem:[#allocation6 + $0x100] ss:$16 sps:$4 sm:$0xff]   ;;  %v4968_v54 = vld [vmem:[#allocation6 + $0x108] ss:$16 sps:$4 sm:$0xff]  }
 0x743   :  { %5934 = vst [vmem:[#allocation27_spill] sm:$0xff] %v4965_v31  ;;  %5935 = vst [vmem:[#allocation28_spill] sm:$0xff] %v4968_v54 }
 0x745   :  { %2303 = vmatpush2.bf16.msra.mxu0 %v4953_v56  ;;  %2344 = vmatpush2.bf16.msra.mxu1 %v4956_v49 }
 0x746   :  { %2304 = vmatprep.subr.bf16.mxu0 %v4959_v16  ;;  %2345 = vmatprep.subr.bf16.mxu1 %v4962_v1 }
 0x749   :  { %2305 = vmatpush2.bf16.msra.mxu0 %v4965_v31  ;;  %2346 = vmatpush2.bf16.msra.mxu1 %v4968_v54 }
 0x74a   :  { %2385 = vmatprep.subr.bf16.mxu0 %v4709_v4  ;;  %2426 = vmatprep.subr.bf16.mxu1 %v4712_v5 }
 0x7ac   :  { %v2082_v49 = vpop.f32.mrf.mxu0  ;;  %v2123_v56 = vpop.f32.mrf.mxu1 }
 0x7ad   :  { %v2130_v16 = vadd.f32 %v2082_v49, %v5859_v48  ;;  %v2132_v14 = vadd.f32 %v2123_v56, %v5862_v55 }
 0x7ae   :  { %v2084_v57 = vpop.f32.mrf.mxu0  ;;  %v2125_v44 = vpop.f32.mrf.mxu1 }
 0x7af   :  { %v2752_v1 = vmul.f32 -1.442695, %v2130_v16  ;;  %v2131_v31 = vadd.f32 %v2084_v57, %v5860_v45  ;;  %v2133_v53 = vadd.f32 %v2125_v44, %v5861_v51 }
 0x7b0   :  { %v2086_v62 = vpop.f32.mrf.mxu0  ;;  %v2127_v54 = vpop.f32.mrf.mxu1 }
 0x7b1   :  { %3110 = vpow2.f32 %v2752_v1  ;;  %v2753_v4 = vmul.f32 -1.442695, %v2131_v31  ;;  %v2754_v49 = vmul.f32 -1.442695, %v2133_v53  ;;  %v186_v62 = vmul.f32 %v184_v50, %v5863_v24 }
 0x7b2   :  { %v2087_v61 = vpop.f32.mrf.mxu0  ;;  %v2128_v5 = vpop.f32.mrf.mxu1 }
 0x7b3   :  { %3112 = vpow2.f32 %v2753_v4  ;;  %v187_v61 = vmul.f32 %v184_v50, %v5864_v43  ;;  %v190_v16 = vadd.f32 %v186_v62, %v5865_v34 }
 0x7b4   :  { %3114 = vpow2.f32 %v2754_v49 }
 0x7b5   :  { %v191_v44 = vadd.f32 %v187_v61, %v5866_v8 }
 0x7be   :  { %v3111_v48 = vpop.eup %3110 }
 0x7bf   :  { %v2137_v63 = vadd.f32 1.0, %v3111_v48 }
 0x7c0   :  { %v3113_v25 = vpop.eup %3112 }
 0x7c1   :  { %3116 = vrcp.f32 %v2137_v63  ;;  %v2143_v57 = vadd.f32 1.0, %v3113_v25  ;;  %v3115_v31 = vpop.eup %3114 }
 0x7c2   :  { %3118 = vtanh.f32 %v2132_v14  ;;  %v2150_v25 = vadd.f32 1.0, %v3115_v31 }
 0x7c3   :  { %3120 = vrcp.f32 %v2143_v57  ;;  %v189_v57 = vmul.f32 %v184_v50, %v5624_v28 }
 0x7cc   :  { %v2193_v53 = vpop.f32.mrf.mxu0  ;;  %v2234_v1 = vpop.f32.mrf.mxu1 }
 0x7cd   :  { %v2241_v56 = vadd.f32 %v2193_v53, %v190_v16  ;;  %v193_v53 = vadd.f32 %v189_v57, %v3831_v46 }
 0x7ce   :  { %v3117_v48 = vpop.eup %3116  ;;  %v2195_v54 = vpop.f32.mrf.mxu0 }
 0x7cf   :  { %v2236_v4 = vpop.f32.mrf.mxu1  ;;  %v3119_v63 = vpop.eup %3118  ;;  %v2755_v5 = vmul.f32 -1.442695, %v2241_v56  ;;  %v2242_v14 = vadd.f32 %v2195_v54, %v191_v44  ;;  %v188_v44 = vmul.f32 %v184_v50, %v5625_v58 }
 0x7d0   :  { %v3121_v49 = vpop.eup %3120  ;;  %v2197_v24 = vpop.f32.mrf.mxu0  ;;  %v2154_v55 = vmul.f32 %v3119_v63, %v3117_v48  ;;  %v2244_v31 = vadd.f32 %v2236_v4, %v193_v53 }
 0x7d1   :  { %v2238_v43 = vpop.f32.mrf.mxu1  ;;  %v2153_v62 = vmul.f32 %v3121_v49, %v4731_v41  ;;  %3122 = vpow2.f32 %v2755_v5  ;;  %v2756_v61 = vmul.f32 -1.442695, %v2242_v14  ;;  %v192_v24 = vadd.f32 %v188_v44, %v3839_v0 }
 0x7d2   :  { %v2198_v8 = vpop.f32.mrf.mxu0  ;;  %v2757_v43 = vmul.f32 -1.442695, %v2244_v31 }
 0x7d3   :  { %v2239_v34 = vpop.f32.mrf.mxu1  ;;  %3124 = vpow2.f32 %v2756_v61  ;;  %v4984_v16 = vadd.f32 %v2154_v55, %v2153_v62  ;;  %v2243_v41 = vadd.f32 %v2234_v1, %v192_v24  ;;  %v4994_v24 = vld [vmem:[#allocation2 + $0x3] ss:$0 sm:$0xff] }
 0x7d4   :  { %3126 = vrcp.f32 %v2150_v25 }
 0x7d5   :  { %3128 = vtanh.f32 %v4984_v16 }
 0x7d6   :  { %3130 = vpow2.f32 %v2757_v43 }
 0x7de   :  { %v3123_v56 = vpop.eup %3122 }
 0x7df   :  { %v2248_v48 = vadd.f32 1.0, %v3123_v56  ;;  %v4997_v56 = vld [vmem:[#allocation2 + $0xb] ss:$0 sm:$0xff] }
 0x7e0   :  { %v3125_v54 = vpop.eup %3124 }
 0x7e1   :  { %v3127_v34 = vpop.eup %3126  ;;  %3132 = vrcp.f32 %v2248_v48  ;;  %v2254_v55 = vadd.f32 1.0, %v3125_v54  ;;  %v5969_v54 = vld [vmem:[#allocation57_spill] sm:$0xff] }
 0x7e2   :  { %v3129_v8 = vpop.eup %3128  ;;  %3134 = vtanh.f32 %v2243_v41 }
 0x7e3   :  { %3136 = vrcp.f32 %v2254_v55  ;;  %v2157_v63 = vmul.f32 %v3129_v8, %v3127_v34  ;;  %v3131_v50 = vpop.eup %3130  ;;  %v5970_v34 = vld [vmem:[#allocation58_spill] sm:$0xff]  ;;  %v5971_v55 = vld [vmem:[#allocation59_spill] sm:$0xff]  ;;  %v5972_v8 = vld [vmem:[#allocation60_spill] sm:$0xff] }
 0x7e4   :  { %v2261_v25 = vadd.f32 1.0, %v3131_v50  ;;  %v5975_v50 = vld [vmem:[#allocation63_spill] sm:$0xff] }
 0x7e5   :  { %v2273_v5 = vpack.c.bf16 %v2157_v63, %v2157_v63  ;;  %v5973_v63 = vld [vmem:[#allocation61_spill] sm:$0xff] }
 0x7e6   :  { %3138 = vrcp.f32 %v2261_v25  ;;  %v5979_v25 = vld [vmem:[#allocation18_spill] sm:$0xff] }
 0x7e7   :  { %2306 = vmatprep.mubr.bf16.mxu0 %v2273_v5  ;;  %2347 = vmatprep.mubr.bf16.mxu1 %v2273_v5  ;;  %v5974_v5 = vld [vmem:[#allocation62_spill] sm:$0xff] }
 0x7ee   :  { %v3133_v4 = vpop.eup %3132 }
 0x7ef   :  { %v3135_v14 = vpop.eup %3134 }
 0x7f0   :  { %v3137_v49 = vpop.eup %3136  ;;  %v2265_v57 = vmul.f32 %v3135_v14, %v3133_v4  ;;  %v5976_v4 = vld [vmem:[#allocation64_spill] sm:$0xff] }
 0x7f1   :  { %v2264_v1 = vmul.f32 %v3137_v49, %v4738_v39  ;;  %v5957_v39 = vld [vmem:[#allocation24_spill] sm:$0xff]  ;;  %v5978_v49 = vld [vmem:[#allocation17_spill] sm:$0xff] }
 0x7f2   :  { %v5977_v14 = vld [vmem:[#allocation16_spill] sm:$0xff] }
 0x7f3   :  { %v4991_v62 = vadd.f32 %v2265_v57, %v2264_v1  ;;  %v3139_v61 = vpop.eup %3138  ;;  %v5980_v57 = vld [vmem:[#allocation19_spill] sm:$0xff]  ;;  %v5981_v1 = vld [vmem:[#allocation20_spill] sm:$0xff] }
 0x7f5   :  { %3140 = vtanh.f32 %v4991_v62 }
 0x802   :  { %v3141_v53 = vpop.eup %3140 }
 0x803   :  { %v2268_v44 = vmul.f32 %v3141_v53, %v3139_v61  ;;  %v5982_v61 = vld [vmem:[#allocation21_spill] sm:$0xff]  ;;  %v5983_v53 = vld [vmem:[#allocation22_spill] sm:$0xff] }
 0x805   :  { %v2269_v31 = vmax.f32 %v2268_v44, 0.0 }
 0x807   :  { %v2270_v43 = vmul.f32 %v4994_v24, %v2269_v31  ;;  %v5985_v31 = vld [vmem:[#allocation73_spill] sm:$0xff] }
 0x809   :  { %v2271_v41 = vadd.f32 %v4997_v56, %v2270_v43  ;;  %v5986_v43 = vld [vmem:[#allocation74_spill] sm:$0xff] }
 0x80b   :  { %v2272_v48 = vpack.c.bf16 %v2271_v41, %v2271_v41  ;;  %v5987_v41 = vld [vmem:[#allocation75_spill] sm:$0xff] }
 0x80d   :  { %2307 = vmatmul.mubr.bf16.vlgmr.msra.gmra.mxu0 %v2272_v48  ;;  %2348 = vmatmul.mubr.bf16.vlgmr.msra.gmra.mxu1 %v2272_v48  ;;  %v5988_v48 = vld [vmem:[#allocation76_spill] sm:$0xff] }
 0x80e   :  { %2386 = vmatpush1.bf16.msra.mxu0 %v4555_v40  ;;  %2427 = vmatpush1.bf16.msra.mxu1 %v4558_v12  ;;  %v5936_v40 = vld [vmem:[#allocation10_spill] sm:$0xff]  ;;  %v5937_v12 = vld [vmem:[#allocation65_spill] sm:$0xff] }
 0x80f   :  { %2387 = vmatprep.subr.bf16.mxu0 %v4561_v10  ;;  %2428 = vmatprep.subr.bf16.mxu1 %v4564_v13  ;;  %v5938_v10 = vld [vmem:[#allocation66_spill] sm:$0xff]  ;;  %v5939_v13 = vld [vmem:[#allocation11_spill] sm:$0xff] }
 0x810   :  { %2417 = vmatprep.mubr.bf16.mxu0 %v5557_v27  ;;  %2458 = vmatprep.mubr.bf16.mxu1 %v5557_v27  ;;  %v2384_v27 = vpack.c.bf16 %v2268_v44, %v2268_v44  ;;  %v5984_v44 = vld [vmem:[#allocation23_spill] sm:$0xff] }
 0x812   :  { %2388 = vmatpush1.bf16.msra.mxu0 %v4569_v35  ;;  %2429 = vmatpush1.bf16.msra.mxu1 %v4572_v6  ;;  %v5940_v35 = vld [vmem:[#allocation71_spill] sm:$0xff]  ;;  %v5941_v6 = vld [vmem:[#allocation72_spill] sm:$0xff] }
 0x813   :  { %2389 = vmatprep.subr.bf16.mxu0 %v4575_v59  ;;  %2430 = vmatprep.subr.bf16.mxu1 %v4578_v36  ;;  %v5942_v59 = vld [vmem:[#allocation32_spill] sm:$0xff]  ;;  %v5943_v36 = vld [vmem:[#allocation33_spill] sm:$0xff] }
 0x816   :  { %2390 = vmatpush1.bf16.msra.mxu0 %v4581_v26  ;;  %2431 = vmatpush1.bf16.msra.mxu1 %v4584_v42  ;;  %v5944_v26 = vld [vmem:[#allocation34_spill] sm:$0xff]  ;;  %v5945_v42 = vld [vmem:[#allocation35_spill] sm:$0xff] }
 0x817   :  { %2391 = vmatprep.subr.bf16.mxu0 %v4587_v17  ;;  %2432 = vmatprep.subr.bf16.mxu1 %v4590_v7  ;;  %v5946_v17 = vld [vmem:[#allocation36_spill] sm:$0xff]  ;;  %v5947_v7 = vld [vmem:[#allocation37_spill] sm:$0xff] }
 0x81a   :  { %2392 = vmatpush1.bf16.msra.mxu0 %v4593_v9  ;;  %2433 = vmatpush1.bf16.msra.mxu1 %v4596_v23  ;;  %v5948_v9 = vld [vmem:[#allocation38_spill] sm:$0xff]  ;;  %v5949_v23 = vld [vmem:[#allocation39_spill] sm:$0xff] }
 0x81b   :  { %2393 = vmatprep.subr.bf16.mxu0 %v4599_v32  ;;  %2434 = vmatprep.subr.bf16.mxu1 %v4602_v15  ;;  %v5950_v32 = vld [vmem:[#allocation40_spill] sm:$0xff]  ;;  %v5951_v15 = vld [vmem:[#allocation41_spill] sm:$0xff] }
 0x81e   :  { %2394 = vmatpush1.bf16.msra.mxu0 %v5867_v11  ;;  %2435 = vmatpush1.bf16.msra.mxu1 %v5868_v22  ;;  %v5958_v11 = vld [vmem:[#allocation25_spill] sm:$0xff]  ;;  %v5959_v22 = vld [vmem:[#allocation47_spill] sm:$0xff] }
 0x81f   :  { %2395 = vmatprep.subr.bf16.mxu0 %v5869_v37  ;;  %2436 = vmatprep.subr.bf16.mxu1 %v5870_v18  ;;  %v5960_v37 = vld [vmem:[#allocation48_spill] sm:$0xff]  ;;  %v5961_v18 = vld [vmem:[#allocation49_spill] sm:$0xff] }
 0x822   :  { %2396 = vmatpush1.bf16.msra.mxu0 %v5871_v2  ;;  %2437 = vmatpush1.bf16.msra.mxu1 %v5872_v47  ;;  %v5962_v2 = vld [vmem:[#allocation50_spill] sm:$0xff]  ;;  %v5963_v47 = vld [vmem:[#allocation51_spill] sm:$0xff] }
 0x823   :  { %2397 = vmatprep.subr.bf16.mxu0 %v4623_v33  ;;  %2438 = vmatprep.subr.bf16.mxu1 %v5873_v60  ;;  %v5952_v33 = vld [vmem:[#allocation42_spill] sm:$0xff]  ;;  %v5964_v60 = vld [vmem:[#allocation52_spill] sm:$0xff] }
 0x826   :  { %2398 = vmatpush1.bf16.msra.mxu0 %v4629_v52  ;;  %2439 = vmatpush1.bf16.msra.mxu1 %v4632_v21  ;;  %v5953_v52 = vld [vmem:[#allocation43_spill] sm:$0xff]  ;;  %v5954_v21 = vld [vmem:[#allocation44_spill] sm:$0xff] }
 0x827   :  { %2399 = vmatprep.subr.bf16.mxu0 %v4635_v20  ;;  %2440 = vmatprep.subr.bf16.mxu1 %v4638_v19  ;;  %v5955_v20 = vld [vmem:[#allocation45_spill] sm:$0xff]  ;;  %v5956_v19 = vld [vmem:[#allocation46_spill] sm:$0xff] }
 0x82a   :  { %2400 = vmatpush1.bf16.msra.mxu0 %v4773_v30  ;;  %2441 = vmatpush1.bf16.msra.mxu1 %v4776_v29  ;;  %v5965_v30 = vld [vmem:[#allocation53_spill] sm:$0xff]  ;;  %v5966_v29 = vld [vmem:[#allocation54_spill] sm:$0xff] }
 0x82b   :  { %2500 = vmatprep.subr.bf16.mxu0 %v4779_v3  ;;  %2541 = vmatprep.subr.bf16.mxu1 %v4782_v38  ;;  %v5967_v3 = vld [vmem:[#allocation55_spill] sm:$0xff]  ;;  %v5968_v38 = vld [vmem:[#allocation56_spill] sm:$0xff] }
 0x82d   :  { %2418 = vmatmul.mubr.bf16.vlgmr.msra.gmra.mxu0 %v2384_v27  ;;  %2459 = vmatmul.mubr.bf16.vlgmr.msra.gmra.mxu1 %v2384_v27  ;;  %v5989_v27 = vld [vmem:[#allocation77_spill] sm:$0xff] }
 0x82e   :  { %2501 = vmatpush1.bf16.msra.mxu0 %v5936_v40  ;;  %2542 = vmatpush1.bf16.msra.mxu1 %v5937_v12  ;;  %v5990_v40 = vld [vmem:[#allocation78_spill] sm:$0xff]  ;;  %v5991_v12 = vld [vmem:[#allocation79_spill] sm:$0xff] }
 0x82f   :  { %2502 = vmatprep.subr.bf16.mxu0 %v5938_v10  ;;  %2543 = vmatprep.subr.bf16.mxu1 %v5939_v13  ;;  %v5992_v10 = vld [vmem:[#allocation80_spill] sm:$0xff]  ;;  %v5993_v13 = vld [vmem:[#allocation13_spill] sm:$0xff] }
 0x832   :  { %2503 = vmatpush1.bf16.msra.mxu0 %v5940_v35  ;;  %2544 = vmatpush1.bf16.msra.mxu1 %v5941_v6  ;;  %v5994_v35 = vld [vmem:[#allocation14_spill] sm:$0xff] }
 0x833   :  { %2504 = vmatprep.subr.bf16.mxu0 %v5942_v59  ;;  %2545 = vmatprep.subr.bf16.mxu1 %v5943_v36  ;;  %v5995_v6 = vld [vmem:[#allocation26_spill] sm:$0xff]  ;;  %v5996_v59 = vld [vmem:[#allocation27_spill] sm:$0xff]  ;;  %v5997_v36 = vld [vmem:[#allocation28_spill] sm:$0xff] }
 0x836   :  { %2505 = vmatpush1.bf16.msra.mxu0 %v5944_v26  ;;  %2546 = vmatpush1.bf16.msra.mxu1 %v5945_v42 }
 0x837   :  { %2506 = vmatprep.subr.bf16.mxu0 %v5946_v17  ;;  %2547 = vmatprep.subr.bf16.mxu1 %v5947_v7  ;;  %v5998_v17 = vld [vmem:[#allocation12_spill] sm:$0xff] }
 0x83a   :  { %2507 = vmatpush1.bf16.msra.mxu0 %v5948_v9  ;;  %2548 = vmatpush1.bf16.msra.mxu1 %v5949_v23 }
 0x83b   :  { %2508 = vmatprep.subr.bf16.mxu0 %v5950_v32  ;;  %2549 = vmatprep.subr.bf16.mxu1 %v5951_v15 }
 0x83e   :  { %2509 = vmatpush1.bf16.msra.mxu0 %v5952_v33  ;;  %2550 = vmatpush1.bf16.msra.mxu1 %v5953_v52 }
 0x83f   :  { %2510 = vmatprep.subr.bf16.mxu0 %v5954_v21  ;;  %2551 = vmatprep.subr.bf16.mxu1 %v5955_v20 }
 0x842   :  { %2511 = vmatpush1.bf16.msra.mxu0 %v5956_v19  ;;  %2552 = vmatpush1.bf16.msra.mxu1 %v5957_v39 }
 0x843   :  { %2512 = vmatprep.subr.bf16.mxu0 %v5958_v11  ;;  %2553 = vmatprep.subr.bf16.mxu1 %v5959_v22 }
 0x846   :  { %2513 = vmatpush1.bf16.msra.mxu0 %v5960_v37  ;;  %2554 = vmatpush1.bf16.msra.mxu1 %v5961_v18  ;;  %v5999_v37 = vld [vmem:[#allocation15_spill] sm:$0xff] }
 0x847   :  { %2514 = vmatprep.subr.bf16.mxu0 %v5962_v2  ;;  %2555 = vmatprep.subr.bf16.mxu1 %v5963_v47 }
 0x84a   :  { %2515 = vmatpush1.bf16.msra.mxu0 %v5964_v60  ;;  %2556 = vmatpush1.bf16.msra.mxu1 %v5965_v30  ;;  %v196_v30 = vpop.permute.xlu1 %195 }
 0x84b   :  { %2516 = vmatprep.subr.bf16.mxu0 %v5966_v29  ;;  %2557 = vmatprep.subr.bf16.mxu1 %v5967_v3  ;;  %v6000_v29 = vld [vmem:[#allocation67_spill] sm:$0xff] }
 0x84c   :  { %v198_v3 = vmul.f32 %v196_v30, %v6000_v29 }
 0x84e   :  { %2517 = vmatpush2.bf16.msra.mxu0 %v5968_v38  ;;  %2558 = vmatpush2.bf16.msra.mxu1 %v5969_v54  ;;  %v6001_v38 = vld [vmem:[#allocation68_spill] sm:$0xff] }
 0x84f   :  { %2518 = vmatprep.subr.bf16.mxu0 %v5970_v34  ;;  %2559 = vmatprep.subr.bf16.mxu1 %v5971_v55  ;;  %v199_v54 = vmul.f32 %v196_v30, %v6001_v38  ;;  %v6002_v34 = vld [vmem:[#allocation69_spill] sm:$0xff] }
 0x850   :  { %v202_v55 = vadd.f32 %v198_v3, %v6002_v34 }
 0x852   :  { %2519 = vmatpush2.bf16.msra.mxu0 %v5972_v8  ;;  %2560 = vmatpush2.bf16.msra.mxu1 %v5973_v63  ;;  %v6003_v8 = vld [vmem:[#allocation70_spill] sm:$0xff] }
 0x853   :  { %2520 = vmatprep.subr.bf16.mxu0 %v5974_v5  ;;  %2561 = vmatprep.subr.bf16.mxu1 %v5975_v50  ;;  %v203_v63 = vadd.f32 %v199_v54, %v6003_v8 }
 0x856   :  { %2521 = vmatpush2.bf16.msra.mxu0 %v5976_v4  ;;  %2562 = vmatpush2.bf16.msra.mxu1 %v5977_v14 }
 0x857   :  { %2522 = vmatprep.subr.bf16.mxu0 %v5978_v49  ;;  %2563 = vmatprep.subr.bf16.mxu1 %v5979_v25 }
 0x85a   :  { %2523 = vmatpush2.bf16.msra.mxu0 %v5980_v57  ;;  %2564 = vmatpush2.bf16.msra.mxu1 %v5981_v1 }
 0x85b   :  { %2524 = vmatprep.subr.bf16.mxu0 %v5982_v61  ;;  %2565 = vmatprep.subr.bf16.mxu1 %v5983_v53 }
 0x85e   :  { %2525 = vmatpush2.bf16.msra.mxu0 %v5984_v44  ;;  %2566 = vmatpush2.bf16.msra.mxu1 %v5985_v31 }
 0x85f   :  { %2526 = vmatprep.subr.bf16.mxu0 %v5986_v43  ;;  %2567 = vmatprep.subr.bf16.mxu1 %v5987_v41  ;;  %v201_v43 = vmul.f32 %v196_v30, %v5624_v28 }
 0x862   :  { %2527 = vmatpush2.bf16.msra.mxu0 %v5988_v48  ;;  %2568 = vmatpush2.bf16.msra.mxu1 %v5989_v27 }
 0x863   :  { %2528 = vmatprep.subr.bf16.mxu0 %v5990_v40  ;;  %2569 = vmatprep.subr.bf16.mxu1 %v5991_v12 }
 0x866   :  { %2529 = vmatpush2.bf16.msra.mxu0 %v5992_v10  ;;  %2570 = vmatpush2.bf16.msra.mxu1 %v5993_v13 }
 0x867   :  { %2530 = vmatprep.subr.bf16.mxu0 %v5994_v35  ;;  %2571 = vmatprep.subr.bf16.mxu1 %v5995_v6  ;;  %v205_v6 = vadd.f32 %v201_v43, %v3831_v46 }
 0x86a   :  { %2531 = vmatpush2.bf16.msra.mxu0 %v5996_v59  ;;  %2572 = vmatpush2.bf16.msra.mxu1 %v5997_v36  ;;  %v200_v59 = vmul.f32 %v196_v30, %v5625_v58 }
 0x86c   :  { %v204_v36 = vadd.f32 %v200_v59, %v3839_v0 }
 0x8cd   :  { %v2308_v26 = vpop.f32.mrf.mxu0  ;;  %v2349_v42 = vpop.f32.mrf.mxu1 }
 0x8ce   :  { %v2356_v7 = vadd.f32 %v2308_v26, %v5998_v17  ;;  %v2358_v18 = vadd.f32 %v2349_v42, %v5999_v37 }
 0x8cf   :  { %v2310_v9 = vpop.f32.mrf.mxu0  ;;  %v2351_v23 = vpop.f32.mrf.mxu1 }
 0x8d0   :  { %v2758_v32 = vmul.f32 -1.442695, %v2356_v7  ;;  %v2357_v15 = vadd.f32 %v2310_v9, %v5860_v45  ;;  %v2359_v39 = vadd.f32 %v2351_v23, %v5861_v51 }
 0x8d1   :  { %v2312_v33 = vpop.f32.mrf.mxu0  ;;  %v2353_v52 = vpop.f32.mrf.mxu1 }
 0x8d2   :  { %3142 = vpow2.f32 %v2758_v32  ;;  %v2759_v21 = vmul.f32 -1.442695, %v2357_v15  ;;  %v2760_v11 = vmul.f32 -1.442695, %v2359_v39 }
 0x8d3   :  { %v2313_v20 = vpop.f32.mrf.mxu0  ;;  %v2354_v19 = vpop.f32.mrf.mxu1 }
 0x8d4   :  { %3144 = vpow2.f32 %v2759_v21 }
 0x8d5   :  { %3146 = vpow2.f32 %v2760_v11 }
 0x8df   :  { %v3143_v22 = vpop.eup %3142 }
 0x8e0   :  { %v2363_v2 = vadd.f32 1.0, %v3143_v22 }
 0x8e1   :  { %v3145_v47 = vpop.eup %3144 }
 0x8e2   :  { %3148 = vrcp.f32 %v2363_v2  ;;  %v2369_v60 = vadd.f32 1.0, %v3145_v47  ;;  %v3147_v4 = vpop.eup %3146 }
 0x8e3   :  { %3150 = vtanh.f32 %v2358_v18  ;;  %v2376_v31 = vadd.f32 1.0, %v3147_v4 }
 0x8e4   :  { %3152 = vrcp.f32 %v2369_v60 }
 0x8ed   :  { %v2419_v5 = vpop.f32.mrf.mxu0  ;;  %v2460_v50 = vpop.f32.mrf.mxu1 }
 0x8ee   :  { %v2467_v14 = vadd.f32 %v2419_v5, %v202_v55 }
 0x8ef   :  { %v3149_v49 = vpop.eup %3148  ;;  %v2421_v25 = vpop.f32.mrf.mxu0 }
 0x8f0   :  { %v2462_v57 = vpop.f32.mrf.mxu1  ;;  %v3151_v1 = vpop.eup %3150  ;;  %v2761_v61 = vmul.f32 -1.442695, %v2467_v14  ;;  %v2468_v53 = vadd.f32 %v2421_v25, %v203_v63 }
 0x8f1   :  { %v3153_v44 = vpop.eup %3152  ;;  %v2423_v41 = vpop.f32.mrf.mxu0  ;;  %v2380_v27 = vmul.f32 %v3151_v1, %v3149_v49  ;;  %v2470_v28 = vadd.f32 %v2462_v57, %v205_v6 }
 0x8f2   :  { %v2464_v48 = vpop.f32.mrf.mxu1  ;;  %v2379_v40 = vmul.f32 %v3153_v44, %v4984_v16  ;;  %3154 = vpow2.f32 %v2761_v61  ;;  %v2762_v12 = vmul.f32 -1.442695, %v2468_v53  ;;  %v2469_v16 = vadd.f32 %v2460_v50, %v204_v36 }
 0x8f3   :  { %v2424_v10 = vpop.f32.mrf.mxu0  ;;  %v2763_v26 = vmul.f32 -1.442695, %v2470_v28 }
 0x8f4   :  { %v2465_v13 = vpop.f32.mrf.mxu1  ;;  %3156 = vpow2.f32 %v2762_v12  ;;  %v5106_v35 = vadd.f32 %v2380_v27, %v2379_v40  ;;  %v64_v40 = vld [vmem:[#allocation2 + $0x13] ss:$0 sm:$0xff] }
 0x8f5   :  { %3158 = vrcp.f32 %v2376_v31  ;;  %v65_v13 = vld [vmem:[#allocation2 + $0x1b] ss:$0 sm:$0xff] }
 0x8f6   :  { %3160 = vtanh.f32 %v5106_v35 }
 0x8f7   :  { %3162 = vpow2.f32 %v2763_v26 }
 0x8ff   :  { %v3155_v42 = vpop.eup %3154 }
 0x900   :  { %v2474_v7 = vadd.f32 1.0, %v3155_v42 }
 0x901   :  { %v3157_v9 = vpop.eup %3156 }
 0x902   :  { %v3159_v23 = vpop.eup %3158  ;;  %3164 = vrcp.f32 %v2474_v7  ;;  %v2480_v32 = vadd.f32 1.0, %v3157_v9 }
 0x903   :  { %v3161_v15 = vpop.eup %3160  ;;  %3166 = vtanh.f32 %v2469_v16 }
 0x904   :  { %3168 = vrcp.f32 %v2480_v32  ;;  %v2383_v46 = vmul.f32 %v3161_v15, %v3159_v23  ;;  %v3163_v58 = vpop.eup %3162 }
 0x905   :  { %v2487_v20 = vadd.f32 1.0, %v3163_v58 }
 0x906   :  { %v2499_v33 = vpack.c.bf16 %v2383_v46, %v2383_v46 }
 0x907   :  { %3170 = vrcp.f32 %v2487_v20 }
 0x908   :  { %2532 = vmatprep.mubr.bf16.mxu0 %v2499_v33  ;;  %2573 = vmatprep.mubr.bf16.mxu1 %v2499_v33 }
 0x90f   :  { %v3165_v52 = vpop.eup %3164 }
 0x910   :  { %v3167_v21 = vpop.eup %3166 }
 0x911   :  { %v3169_v0 = vpop.eup %3168  ;;  %v2491_v19 = vmul.f32 %v3167_v21, %v3165_v52 }
 0x912   :  { %v2490_v39 = vmul.f32 %v3169_v0, %v4991_v62 }
 0x914   :  { %v2492_v11 = vadd.f32 %v2491_v19, %v2490_v39  ;;  %v3171_v22 = vpop.eup %3170 }
 0x916   :  { %3172 = vtanh.f32 %v2492_v11 }
 0x923   :  { %v3173_v18 = vpop.eup %3172 }
 0x924   :  { %v2494_v2 = vmul.f32 %v3173_v18, %v3171_v22 }
 0x926   :  { %v2495_v47 = vmax.f32 %v2494_v2, 0.0 }
 0x928   :  { %v2496_v60 = vmul.f32 %v4994_v24, %v2495_v47 }
 0x92a   :  { %v2497_v30 = vadd.f32 %v4997_v56, %v2496_v60 }
 0x92c   :  { %v2498_v29 = vpack.c.bf16 %v2497_v30, %v2497_v30 }
 0x92e   :  { %2533 = vmatmul.mubr.bf16.vlgmr.msra.gmra.mxu0 %v2498_v29  ;;  %2574 = vmatmul.mubr.bf16.vlgmr.msra.gmra.mxu1 %v2498_v29 }
 0x9ee   :  { %v2534_v3 = vpop.f32.mrf.mxu0  ;;  %v2575_v38 = vpop.f32.mrf.mxu1 }
 0x9ef   :  { %v2582_v54 = vadd.f32 %v2534_v3, %v5998_v17  ;;  %v2584_v25 = vadd.f32 %v2575_v38, %v5999_v37 }
 0x9f0   :  { %v2536_v34 = vpop.f32.mrf.mxu0  ;;  %v2577_v62 = vpop.f32.mrf.mxu1 }
 0x9f1   :  { %v2764_v55 = vmul.f32 -1.442695, %v2582_v54  ;;  %v2583_v8 = vadd.f32 %v2536_v34, %v5860_v45  ;;  %v2585_v56 = vadd.f32 %v2577_v62, %v5861_v51 }
 0x9f2   :  { %v2538_v63 = vpop.f32.mrf.mxu0  ;;  %v2579_v5 = vpop.f32.mrf.mxu1 }
 0x9f3   :  { %3174 = vpow2.f32 %v2764_v55  ;;  %v2765_v50 = vmul.f32 -1.442695, %v2583_v8  ;;  %v2766_v14 = vmul.f32 -1.442695, %v2585_v56 }
 0x9f4   :  { %v2539_v4 = vpop.f32.mrf.mxu0  ;;  %v2580_v24 = vpop.f32.mrf.mxu1 }
 0x9f5   :  { %3176 = vpow2.f32 %v2765_v50 }
 0x9f6   :  { %3178 = vpow2.f32 %v2766_v14 }
 0xa00   :  { %v3175_v49 = vpop.eup %3174 }
 0xa01   :  { %v2589_v57 = vadd.f32 1.0, %v3175_v49 }
 0xa02   :  { %v3177_v17 = vpop.eup %3176 }
 0xa03   :  { %3180 = vrcp.f32 %v2589_v57  ;;  %v2595_v1 = vadd.f32 1.0, %v3177_v17  ;;  %v3179_v45 = vpop.eup %3178 }
 0xa04   :  { %3182 = vtanh.f32 %v2584_v25  ;;  %v2602_v31 = vadd.f32 1.0, %v3179_v45 }
 0xa05   :  { %3184 = vrcp.f32 %v2595_v1 }
 0xa06   :  { %3186 = vrcp.f32 %v2602_v31 }
 0xa10   :  { %v3181_v61 = vpop.eup %3180 }
 0xa11   :  { %v3183_v53 = vpop.eup %3182 }
 0xa12   :  { %v3185_v44 = vpop.eup %3184  ;;  %v2606_v43 = vmul.f32 %v3183_v53, %v3181_v61 }
 0xa13   :  { %v2605_v41 = vmul.f32 %v3185_v44, %v5106_v35  ;;  %v3187_v48 = vpop.eup %3186 }
 0xa15   :  { %v2607_v51 = vadd.f32 %v2606_v43, %v2605_v41 }
 0xa17   :  { %3188 = vtanh.f32 %v2607_v51 }
 0xa24   :  { %v3189_v37 = vpop.eup %3188 }
 0xa25   :  { %v2609_v27 = vmul.f32 %v3189_v37, %v3187_v48 }
 0xa27   :  { %v2610_v12 = vmax.f32 %v2609_v27, 0.0 }
 0xa29   :  { %v2611_v10 = vmul.f32 %v2610_v12, %v64_v40 }
 0xa2b   :  { %2612 = vadd.xlane.f32.xlu0 %v2611_v10 }
 0xab4   :  { %v2613_v6 = vpop.xlane.xlu0 %2612 }
 0xab5   :  { %v2614_v59 = vadd.f32 %v2613_v6, %v65_v13 }
 0xab7   :  { %2616 = vst.msk [vmem:[%s5127_s4] sm:$0xff] %vm2615_vm0, %v2614_v59 }
 0xab8   :  { %2621 = vsyncpa [#allocation3], 1 }
 0xab9   :  { %2622 = vsyncpa [#allocation5], 1 }

</bundles_post_ra>
